<compile_context>
chip_gen: v7x
topology: tpu7x:2x2x1
jax: 0.10.0
libtpu: 0.0.40
codegen_flags: <defaults>
</compile_context>

<pallas_src>
import numpy as np
import jax
import jax.numpy as jnp
from jax import lax
from jax.experimental import pallas as pl
from jax.experimental.pallas import tpu as pltpu

# Set to jnp.bfloat16 on v6e/v7x for higher MXU throughput (accumulation stays f32, and all
# elementwise/transcendental math stays f32, which is also what v5e wants).
MATMUL_DTYPE = jnp.float32


def _mm(a, b):
    return jnp.dot(a.astype(MATMUL_DTYPE), b.astype(MATMUL_DTYPE),
                   preferred_element_type=jnp.float32)


# ----------------------------------------------------------------------------
# Fused CRNN kernel: one program = one batch element.
# ----------------------------------------------------------------------------
def crnn_fused_kernel(x_ref, w1_ref, b1_ref, w2_ref, b2_ref, w3_ref, b3_ref,
                      wg_ref, bg_ref, wh_ref, wo_ref, bo_ref,
                      out_ref,
                      padA, padB, zg_s, hh_s):
    """x_ref:   (1, T+2, F+2, 1)   zero-padded NHWC input block (one batch element)
       w{1,2,3}_ref: (9*Cin, Cout) im2col conv weights (BN folded), b*: (1, Cout)
       wg_ref:  (fc_in, 4H)  folded  Wfc @ Wx  (fc rows permuted to the kernel's
                freq-major flatten, LSTM gate order [i|f|g|o]),  bg_ref: (1, 4H)
       wh_ref:  (H, 4H) concatenated LSTM recurrent gate weights
       wo_ref:  (H, NL), bo: (1, NL)
       out_ref: (1, T, NL)
       scratch: padA (T+2, F+2, c1), padB (T+2, F/2+2, c1), zg_s (T, 4H), hh_s (T, H)
    """
    Tp2, Fp2 = x_ref.shape[1], x_ref.shape[2]
    T, F = Tp2 - 2, Fp2 - 2
    F2, F4 = F // 2, F // 4
    c3 = w3_ref.shape[1]
    H = wh_ref.shape[0]
    G = wh_ref.shape[1]                                          # 4*H

    def conv3x3_relu(xpad, w_ref, b_ref, Td, Fd):
        # 3x3 "same" conv on a zero-padded (Td+2, Fd+2, Cin) slab, as 9 MXU dots.
        cin = xpad.shape[-1]
        cout = w_ref.shape[1]
        wv = w_ref[...]
        acc = jnp.zeros((Td * Fd, cout), jnp.float32) + b_ref[...]
        for dy in range(3):
            for dx in range(3):
                k = dy * 3 + dx
                slab = xpad[dy:dy + Td, dx:dx + Fd, :].reshape(Td * Fd, cin)
                acc = acc + _mm(slab, wv[k * cin:(k + 1) * cin, :])
        return jnp.maximum(acc, 0.0).reshape(Td, Fd, cout)      # ReLU

    # ---- conv1 + BN + ReLU ----
    y1 = conv3x3_relu(x_ref[0], w1_ref, b1_ref, T, F)           # (T, F, c1)
    padA[...] = jnp.zeros(padA.shape, padA.dtype)
    padA[1:T + 1, 1:F + 1, :] = y1
    # ---- conv2 + BN + ReLU ----
    y2 = conv3x3_relu(padA[...], w2_ref, b2_ref, T, F)          # (T, F, c1)
    # ---- MaxPool2d((1,2)) over frequency, written straight into conv3's padded input ----
    padB[...] = jnp.zeros(padB.shape, padB.dtype)
    for f in range(F2):
        padB[1:T + 1, 1 + f:2 + f, :] = jnp.maximum(y2[:, 2 * f:2 * f + 1, :],
                                                    y2[:, 2 * f + 1:2 * f + 2, :])
    # ---- conv3 + BN + ReLU ----
    y3 = conv3x3_relu(padB[...], w3_ref, b3_ref, T, F2)         # (T, F2, c3)

    # ---- MaxPool2d((1,2)) + flatten + fc Linear + LSTM input-gate projection, all fused
    #      into one accumulation (Wfc and Wx folded offline; Dropouts are identity) ----
    wg = wg_ref[...]
    zg = jnp.zeros((T, G), jnp.float32) + bg_ref[...]
    for f in range(F4):
        pf = jnp.maximum(y3[:, 2 * f, :], y3[:, 2 * f + 1, :])  # (T, c3)
        zg = zg + _mm(pf, wg[f * c3:(f + 1) * c3, :])           # absorbs the flatten perm
    zg_s[...] = zg                                              # (T, 4H), hoisted out of loop

    # ---- sequential LSTM recurrence (only h @ Wh + elementwise left per step) ----
    wh = wh_ref[...]

    def step(t, carry):
        h, c = carry
        gates = zg_s[pl.ds(t, 1), :] + _mm(h, wh)               # (1, 4H)
        i = jax.nn.sigmoid(gates[:, 0:H])
        f = jax.nn.sigmoid(gates[:, H:2 * H])
        g = jnp.tanh(gates[:, 2 * H:3 * H])
        o = jax.nn.sigmoid(gates[:, 3 * H:4 * H])
        c_new = f * c + i * g
        h_new = o * jnp.tanh(c_new)
        hh_s[pl.ds(t, 1), :] = h_new
        return h_new, c_new

    h0 = jnp.zeros((1, H), jnp.float32)
    c0 = jnp.zeros((1, H), jnp.float32)
    lax.fori_loop(0, T, step, (h0, c0), unroll=True)

    # ---- deferred output Linear over the full h history: one (T,H)x(H,NL) matmul ----
    out_ref[0] = _mm(hh_s[...], wo_ref[...]) + bo_ref[...]      # (T, NL)


# ----------------------------------------------------------------------------
# Wrapper: one fused pallas_call, batch axis as a "parallel" grid.
# ----------------------------------------------------------------------------
def crnn_forward(x, P):
    """x: (B, 1, T, F) float32 -> (B, T, num_lbl) float32 (inference semantics)."""
    B, _, T, F = x.shape
    assert F % 4 == 0, "n_mels must be divisible by 4 (two (1,2) max-pools)"
    c1 = P['w1m'].shape[1]
    H = P['wh'].shape[0]
    NL = P['wo'].shape[1]

    # Glue on the raw input only: NHWC (channels-last) + zero border for conv1.
    x_nhwc = jnp.pad(jnp.transpose(x, (0, 2, 3, 1)), ((0, 0), (1, 1), (1, 1), (0, 0)))

    # Inference-time weight fold (constant-size, batch/time independent):
    #   zg = (feat @ Wfc + bfc) @ Wx + bg  ==  feat @ (Wfc @ Wx) + (bfc @ Wx + bg)
    wg = jnp.dot(P['wfc_k'], P['wx'], preferred_element_type=jnp.float32)   # (fc_in, 4H)
    bg = jnp.dot(P['bfc'], P['wx'], preferred_element_type=jnp.float32) + P['bg']  # (1, 4H)

    def full(a):
        return pl.BlockSpec(a.shape, lambda b: (0,) * a.ndim)

    w_args = (P['w1m'], P['b1'].reshape(1, -1), P['w2m'], P['b2'].reshape(1, -1),
              P['w3m'], P['b3'].reshape(1, -1), wg, bg,
              P['wh'], P['wo'], P['bo'])

    return pl.pallas_call(
        crnn_fused_kernel,
        out_shape=jax.ShapeDtypeStruct((B, T, NL), jnp.float32),
        grid_spec=pltpu.PrefetchScalarGridSpec(
            num_scalar_prefetch=0,
            grid=(B,),
            in_specs=[pl.BlockSpec((1, T + 2, F + 2, 1), lambda b: (b, 0, 0, 0))]
                     + [full(a) for a in w_args],
            out_specs=pl.BlockSpec((1, T, NL), lambda b: (b, 0, 0)),
            scratch_shapes=[
                pltpu.VMEM((T + 2, F + 2, c1), jnp.float32),        # conv1 out (padded)
                pltpu.VMEM((T + 2, F // 2 + 2, c1), jnp.float32),   # pooled conv2 out (padded)
                pltpu.VMEM((T, 4 * H), jnp.float32),                # hoisted gate pre-activations
                pltpu.VMEM((T, H), jnp.float32),                    # h history for deferred Linear
            ],
        ),
        compiler_params=pltpu.CompilerParams(
            dimension_semantics=("parallel",),   # batch splits across v7x's two TensorCores
        ),
    )(x_nhwc, *w_args)


# ----------------------------------------------------------------------------
# Deterministic synthetic parameters (shapes implied by the module __init__)
# ----------------------------------------------------------------------------
def init_params(key, F=16, model_size=32, num_lbl=8):
    c1 = model_size // 16
    c3 = model_size // 8
    F4 = F // 4
    fc_in = c3 * F4
    H = model_size

    keys = jax.random.split(key, 32)
    ki = iter(keys)

    def nrm(shape, s=0.1):
        return s * jax.random.normal(next(ki), shape, jnp.float32)

    def bn(ch):
        gamma = 1.0 + nrm((ch,))
        beta = nrm((ch,))
        mean = nrm((ch,))
        var = 0.9 + 0.1 * jnp.abs(jax.random.normal(next(ki), (ch,), jnp.float32))
        return gamma, beta, mean, var

    def fold(w, b, bnp):
        gamma, beta, mean, var = bnp
        s = gamma / jnp.sqrt(var + 1e-5)
        return w * s[:, None, None, None], (b - mean) * s + beta

    # Conv weights in torch (Cout, Cin, 3, 3) layout with eval-mode BatchNorm folded in.
    w1, b1 = fold(nrm((c1, 1, 3, 3), 0.3), nrm((c1,)), bn(c1))
    w2, b2 = fold(nrm((c1, c1, 3, 3), 0.3), nrm((c1,)), bn(c1))
    w3, b3 = fold(nrm((c3, c1, 3, 3), 0.3), nrm((c3,)), bn(c3))

    def conv_mat(w):
        # (Cout, Cin, 3, 3) -> (9*Cin, Cout), row = (dy*3+dx)*Cin + ci  (kernel tap layout)
        return jnp.transpose(w, (2, 3, 1, 0)).reshape(-1, w.shape[0])

    # ConvStack.fc: Linear(fc_in -> model_size).  Torch flatten is channel-major (c*F4 + f);
    # the kernel flattens freq-major (f*c3 + c), so permute the fc rows to absorb it.
    wfc_t = nrm((H, fc_in), 0.2)
    bfc = nrm((H,))
    wfc = wfc_t.T                                                         # rows: c*F4 + f
    wfc_k = wfc.reshape(c3, F4, H).transpose(1, 0, 2).reshape(fc_in, H)   # rows: f*c3 + c

    # LSTM(model_size -> model_size), torch gate order [i, f, g, o], gates concatenated.
    w_ih = nrm((4 * H, H), 0.2)
    w_hh = nrm((4 * H, H), 0.2)
    b_ih = nrm((4 * H,))
    b_hh = nrm((4 * H,))
    wx = w_ih.T                         # (H, 4H)
    wh = w_hh.T                         # (H, 4H)
    bg = (b_ih + b_hh).reshape(1, 4 * H)

    # Final Linear(model_size -> num_lbl)
    wo_t = nrm((num_lbl, H), 0.2)
    bo = nrm((num_lbl,))

    return dict(w1=w1, b1=b1, w2=w2, b2=b2, w3=w3, b3=b3,
                w1m=conv_mat(w1), w2m=conv_mat(w2), w3m=conv_mat(w3),
                wfc=wfc, wfc_k=wfc_k, bfc=bfc.reshape(1, H),
                wx=wx, wh=wh, bg=bg,
                wo=wo_t.T, bo=bo.reshape(1, num_lbl))


# ----------------------------------------------------------------------------
# Pure-JAX reference (torch-ordered weights/flatten) for a numerical sanity check
# ----------------------------------------------------------------------------
def ref_forward(x, P):
    pad = lambda a: jnp.pad(a, ((0, 0), (0, 0), (1, 1), (1, 1)))

    def conv(xp, w, b):
        y = lax.conv_general_dilated(xp, w, (1, 1), 'VALID',
                                     dimension_numbers=('NCHW', 'OIHW', 'NCHW'))
        return jnp.maximum(y + b[None, :, None, None], 0.0)

    h = conv(pad(x), P['w1'], P['b1'])
    h = conv(pad(h), P['w2'], P['b2'])
    h = jnp.maximum(h[..., 0::2], h[..., 1::2])
    h = conv(pad(h), P['w3'], P['b3'])
    h = jnp.maximum(h[..., 0::2], h[..., 1::2])
    B, C, T, W = h.shape
    feat = h.transpose(0, 2, 1, 3).reshape(B, T, C * W)     # torch flatten order
    z = jnp.dot(feat, P['wfc']) + P['bfc']

    H = P['wh'].shape[0]
    hs = jnp.zeros((B, H), jnp.float32)
    cs = jnp.zeros((B, H), jnp.float32)
    outs = []
    for t in range(T):
        g = jnp.dot(z[:, t], P['wx']) + jnp.dot(hs, P['wh']) + P['bg']
        i = jax.nn.sigmoid(g[:, 0:H])
        f = jax.nn.sigmoid(g[:, H:2 * H])
        gg = jnp.tanh(g[:, 2 * H:3 * H])
        o = jax.nn.sigmoid(g[:, 3 * H:4 * H])
        cs = f * cs + i * gg
        hs = o * jnp.tanh(cs)
        outs.append(jnp.dot(hs, P['wo']) + P['bo'])
    return jnp.stack(outs, axis=1)


if __name__ == "__main__":
    key = jax.random.PRNGKey(0)
    kp, kx = jax.random.split(key)

    # Small config consistent with the module:
    #   n_mels = 16, model_complexity = 2 -> model_size = 32, num_lbl = 8
    B, T, F = 2, 8, 16
    model_size, num_lbl = 32, 8

    params = init_params(kp, F=F, model_size=model_size, num_lbl=num_lbl)
    # Input is feat_ext(audio).transpose(1,2).unsqueeze(1): (batch, 1, time, n_mels)
    x = jax.random.normal(kx, (B, 1, T, F), jnp.float32)

    out = jax.jit(crnn_forward)(x, params)
    out = jax.block_until_ready(out)
    assert out.shape == (B, T, num_lbl), out.shape

    with jax.default_matmul_precision('highest'):
        ref = ref_forward(x, params)
    np.testing.assert_allclose(np.asarray(out), np.asarray(ref), atol=1e-2, rtol=1e-2)

    print("KERNEL_OK")
</pallas_src>

<mosaic_0001>
module attributes {stable_mosaic.version = 11 : i64} {
  func.func @crnn_fused_kernel(%arg0: i32, %arg1: memref<1x10x18x1xf32, #tpu.memory_space<vmem>>, %arg2: memref<9x2xf32, #tpu.memory_space<vmem>>, %arg3: memref<1x2xf32, #tpu.memory_space<vmem>>, %arg4: memref<18x2xf32, #tpu.memory_space<vmem>>, %arg5: memref<1x2xf32, #tpu.memory_space<vmem>>, %arg6: memref<18x4xf32, #tpu.memory_space<vmem>>, %arg7: memref<1x4xf32, #tpu.memory_space<vmem>>, %arg8: memref<16x128xf32, #tpu.memory_space<vmem>>, %arg9: memref<1x128xf32, #tpu.memory_space<vmem>>, %arg10: memref<32x128xf32, #tpu.memory_space<vmem>>, %arg11: memref<32x8xf32, #tpu.memory_space<vmem>>, %arg12: memref<1x8xf32, #tpu.memory_space<vmem>>, %arg13: memref<1x8x8xf32, #tpu.memory_space<vmem>>, %arg14: memref<10x18x2xf32, #tpu.memory_space<vmem>>, %arg15: memref<10x10x2xf32, #tpu.memory_space<vmem>>, %arg16: memref<8x128xf32, #tpu.memory_space<vmem>>, %arg17: memref<8x32xf32, #tpu.memory_space<vmem>>) attributes {dimension_semantics = [#tpu.dimension_semantics<parallel>], iteration_bounds = array<i64: 2>, scalar_prefetch = 0 : i64, scratch_operands = 4 : i64, tpu.core_type = #tpu.core_type<tc>, window_params = [{transform_indices = @transform_0, window_bounds = array<i64: 1, 10, 18, 1>}, {pipeline_mode = #tpu.pipeline_mode<synchronous>, transform_indices = @transform_1, window_bounds = array<i64: 9, 2>}, {pipeline_mode = #tpu.pipeline_mode<synchronous>, transform_indices = @transform_2, window_bounds = array<i64: 1, 2>}, {pipeline_mode = #tpu.pipeline_mode<synchronous>, transform_indices = @transform_3, window_bounds = array<i64: 18, 2>}, {pipeline_mode = #tpu.pipeline_mode<synchronous>, transform_indices = @transform_4, window_bounds = array<i64: 1, 2>}, {pipeline_mode = #tpu.pipeline_mode<synchronous>, transform_indices = @transform_5, window_bounds = array<i64: 18, 4>}, {pipeline_mode = #tpu.pipeline_mode<synchronous>, transform_indices = @transform_6, window_bounds = array<i64: 1, 4>}, {pipeline_mode = #tpu.pipeline_mode<synchronous>, transform_indices = @transform_7, window_bounds = array<i64: 16, 128>}, {pipeline_mode = #tpu.pipeline_mode<synchronous>, transform_indices = @transform_8, window_bounds = array<i64: 1, 128>}, {pipeline_mode = #tpu.pipeline_mode<synchronous>, transform_indices = @transform_9, window_bounds = array<i64: 32, 128>}, {pipeline_mode = #tpu.pipeline_mode<synchronous>, transform_indices = @transform_10, window_bounds = array<i64: 32, 8>}, {pipeline_mode = #tpu.pipeline_mode<synchronous>, transform_indices = @transform_11, window_bounds = array<i64: 1, 8>}, {transform_indices = @transform_12, window_bounds = array<i64: 1, 8, 8>}]} {
    %c0 = arith.constant 0 : index
    %c0_0 = arith.constant 0 : index
    %c0_1 = arith.constant 0 : index
    %c0_2 = arith.constant 0 : index
    %0 = vector.load %arg1[%c0, %c0_0, %c0_1, %c0_2] : memref<1x10x18x1xf32, #tpu.memory_space<vmem>>, vector<1x10x18x1xf32>
    %1 = vector.shape_cast %0 : vector<1x10x18x1xf32> to vector<10x18x1xf32>
    %c0_3 = arith.constant 0 : index
    %c0_4 = arith.constant 0 : index
    %2 = vector.load %arg2[%c0_3, %c0_4] : memref<9x2xf32, #tpu.memory_space<vmem>>, vector<9x2xf32>
    %cst = arith.constant 0.000000e+00 : f32
    %3 = vector.broadcast %cst : f32 to vector<128x2xf32>
    %c0_5 = arith.constant 0 : index
    %c0_6 = arith.constant 0 : index
    %4 = vector.load %arg3[%c0_5, %c0_6] : memref<1x2xf32, #tpu.memory_space<vmem>>, vector<1x2xf32>
    %5 = vector.broadcast %4 : vector<1x2xf32> to vector<128x2xf32>
    %6 = arith.addf %3, %5 : vector<128x2xf32>
    %7 = vector.extract_strided_slice %1 {offsets = [0, 0, 0], sizes = [8, 16, 1], strides = [1, 1, 1]} : vector<10x18x1xf32> to vector<8x16x1xf32>
    %8 = vector.shape_cast %7 : vector<8x16x1xf32> to vector<128x1xf32>
    %9 = vector.extract_strided_slice %2 {offsets = [0, 0], sizes = [1, 2], strides = [1, 1]} : vector<9x2xf32> to vector<1x2xf32>
    %cst_7 = arith.constant dense<0.000000e+00> : vector<128x2xf32>
    %10 = tpu.matmul %8, %9, %cst_7 {dimension_numbers = #tpu.dot_dimension_numbers<[1], [0], [0], [1], [0, 0, 1, 1], [], []>} : vector<128x1xf32>, vector<1x2xf32>, vector<128x2xf32> -> vector<128x2xf32>
    %11 = arith.addf %6, %10 : vector<128x2xf32>
    %12 = vector.extract_strided_slice %1 {offsets = [0, 1, 0], sizes = [8, 16, 1], strides = [1, 1, 1]} : vector<10x18x1xf32> to vector<8x16x1xf32>
    %13 = vector.shape_cast %12 : vector<8x16x1xf32> to vector<128x1xf32>
    %14 = vector.extract_strided_slice %2 {offsets = [1, 0], sizes = [1, 2], strides = [1, 1]} : vector<9x2xf32> to vector<1x2xf32>
    %cst_8 = arith.constant dense<0.000000e+00> : vector<128x2xf32>
    %15 = tpu.matmul %13, %14, %cst_8 {dimension_numbers = #tpu.dot_dimension_numbers<[1], [0], [0], [1], [0, 0, 1, 1], [], []>} : vector<128x1xf32>, vector<1x2xf32>, vector<128x2xf32> -> vector<128x2xf32>
    %16 = arith.addf %11, %15 : vector<128x2xf32>
    %17 = vector.extract_strided_slice %1 {offsets = [0, 2, 0], sizes = [8, 16, 1], strides = [1, 1, 1]} : vector<10x18x1xf32> to vector<8x16x1xf32>
    %18 = vector.shape_cast %17 : vector<8x16x1xf32> to vector<128x1xf32>
    %19 = vector.extract_strided_slice %2 {offsets = [2, 0], sizes = [1, 2], strides = [1, 1]} : vector<9x2xf32> to vector<1x2xf32>
    %cst_9 = arith.constant dense<0.000000e+00> : vector<128x2xf32>
    %20 = tpu.matmul %18, %19, %cst_9 {dimension_numbers = #tpu.dot_dimension_numbers<[1], [0], [0], [1], [0, 0, 1, 1], [], []>} : vector<128x1xf32>, vector<1x2xf32>, vector<128x2xf32> -> vector<128x2xf32>
    %21 = arith.addf %16, %20 : vector<128x2xf32>
    %22 = vector.extract_strided_slice %1 {offsets = [1, 0, 0], sizes = [8, 16, 1], strides = [1, 1, 1]} : vector<10x18x1xf32> to vector<8x16x1xf32>
    %23 = vector.shape_cast %22 : vector<8x16x1xf32> to vector<128x1xf32>
    %24 = vector.extract_strided_slice %2 {offsets = [3, 0], sizes = [1, 2], strides = [1, 1]} : vector<9x2xf32> to vector<1x2xf32>
    %cst_10 = arith.constant dense<0.000000e+00> : vector<128x2xf32>
    %25 = tpu.matmul %23, %24, %cst_10 {dimension_numbers = #tpu.dot_dimension_numbers<[1], [0], [0], [1], [0, 0, 1, 1], [], []>} : vector<128x1xf32>, vector<1x2xf32>, vector<128x2xf32> -> vector<128x2xf32>
    %26 = arith.addf %21, %25 : vector<128x2xf32>
    %27 = vector.extract_strided_slice %1 {offsets = [1, 1, 0], sizes = [8, 16, 1], strides = [1, 1, 1]} : vector<10x18x1xf32> to vector<8x16x1xf32>
    %28 = vector.shape_cast %27 : vector<8x16x1xf32> to vector<128x1xf32>
    %29 = vector.extract_strided_slice %2 {offsets = [4, 0], sizes = [1, 2], strides = [1, 1]} : vector<9x2xf32> to vector<1x2xf32>
    %cst_11 = arith.constant dense<0.000000e+00> : vector<128x2xf32>
    %30 = tpu.matmul %28, %29, %cst_11 {dimension_numbers = #tpu.dot_dimension_numbers<[1], [0], [0], [1], [0, 0, 1, 1], [], []>} : vector<128x1xf32>, vector<1x2xf32>, vector<128x2xf32> -> vector<128x2xf32>
    %31 = arith.addf %26, %30 : vector<128x2xf32>
    %32 = vector.extract_strided_slice %1 {offsets = [1, 2, 0], sizes = [8, 16, 1], strides = [1, 1, 1]} : vector<10x18x1xf32> to vector<8x16x1xf32>
    %33 = vector.shape_cast %32 : vector<8x16x1xf32> to vector<128x1xf32>
    %34 = vector.extract_strided_slice %2 {offsets = [5, 0], sizes = [1, 2], strides = [1, 1]} : vector<9x2xf32> to vector<1x2xf32>
    %cst_12 = arith.constant dense<0.000000e+00> : vector<128x2xf32>
    %35 = tpu.matmul %33, %34, %cst_12 {dimension_numbers = #tpu.dot_dimension_numbers<[1], [0], [0], [1], [0, 0, 1, 1], [], []>} : vector<128x1xf32>, vector<1x2xf32>, vector<128x2xf32> -> vector<128x2xf32>
    %36 = arith.addf %31, %35 : vector<128x2xf32>
    %37 = vector.extract_strided_slice %1 {offsets = [2, 0, 0], sizes = [8, 16, 1], strides = [1, 1, 1]} : vector<10x18x1xf32> to vector<8x16x1xf32>
    %38 = vector.shape_cast %37 : vector<8x16x1xf32> to vector<128x1xf32>
    %39 = vector.extract_strided_slice %2 {offsets = [6, 0], sizes = [1, 2], strides = [1, 1]} : vector<9x2xf32> to vector<1x2xf32>
    %cst_13 = arith.constant dense<0.000000e+00> : vector<128x2xf32>
    %40 = tpu.matmul %38, %39, %cst_13 {dimension_numbers = #tpu.dot_dimension_numbers<[1], [0], [0], [1], [0, 0, 1, 1], [], []>} : vector<128x1xf32>, vector<1x2xf32>, vector<128x2xf32> -> vector<128x2xf32>
    %41 = arith.addf %36, %40 : vector<128x2xf32>
    %42 = vector.extract_strided_slice %1 {offsets = [2, 1, 0], sizes = [8, 16, 1], strides = [1, 1, 1]} : vector<10x18x1xf32> to vector<8x16x1xf32>
    %43 = vector.shape_cast %42 : vector<8x16x1xf32> to vector<128x1xf32>
    %44 = vector.extract_strided_slice %2 {offsets = [7, 0], sizes = [1, 2], strides = [1, 1]} : vector<9x2xf32> to vector<1x2xf32>
    %cst_14 = arith.constant dense<0.000000e+00> : vector<128x2xf32>
    %45 = tpu.matmul %43, %44, %cst_14 {dimension_numbers = #tpu.dot_dimension_numbers<[1], [0], [0], [1], [0, 0, 1, 1], [], []>} : vector<128x1xf32>, vector<1x2xf32>, vector<128x2xf32> -> vector<128x2xf32>
    %46 = arith.addf %41, %45 : vector<128x2xf32>
    %47 = vector.extract_strided_slice %1 {offsets = [2, 2, 0], sizes = [8, 16, 1], strides = [1, 1, 1]} : vector<10x18x1xf32> to vector<8x16x1xf32>
    %48 = vector.shape_cast %47 : vector<8x16x1xf32> to vector<128x1xf32>
    %49 = vector.extract_strided_slice %2 {offsets = [8, 0], sizes = [1, 2], strides = [1, 1]} : vector<9x2xf32> to vector<1x2xf32>
    %cst_15 = arith.constant dense<0.000000e+00> : vector<128x2xf32>
    %50 = tpu.matmul %48, %49, %cst_15 {dimension_numbers = #tpu.dot_dimension_numbers<[1], [0], [0], [1], [0, 0, 1, 1], [], []>} : vector<128x1xf32>, vector<1x2xf32>, vector<128x2xf32> -> vector<128x2xf32>
    %51 = arith.addf %46, %50 : vector<128x2xf32>
    %cst_16 = arith.constant 0.000000e+00 : f32
    %52 = vector.broadcast %cst_16 : f32 to vector<128x2xf32>
    %53 = arith.maximumf %51, %52 : vector<128x2xf32>
    %54 = vector.shape_cast %53 : vector<128x2xf32> to vector<8x16x2xf32>
    %cst_17 = arith.constant 0.000000e+00 : f32
    %55 = vector.broadcast %cst_17 : f32 to vector<10x18x2xf32>
    %c0_18 = arith.constant 0 : index
    %c0_19 = arith.constant 0 : index
    %c0_20 = arith.constant 0 : index
    %56 = vector.load %arg14[%c0_18, %c0_19, %c0_20] : memref<10x18x2xf32, #tpu.memory_space<vmem>>, vector<10x18x2xf32>
    tpu.vector_store %arg14[%c0_18, %c0_19, %c0_20], %55 {strides = array<i32>} : memref<10x18x2xf32, #tpu.memory_space<vmem>>, vector<10x18x2xf32>,
    %c1 = arith.constant 1 : index
    %c1_21 = arith.constant 1 : index
    %c0_22 = arith.constant 0 : index
    %57 = vector.load %arg14[%c1, %c1_21, %c0_22] : memref<10x18x2xf32, #tpu.memory_space<vmem>>, vector<8x16x2xf32>
    tpu.vector_store %arg14[%c1, %c1_21, %c0_22], %54 {strides = array<i32>} : memref<10x18x2xf32, #tpu.memory_space<vmem>>, vector<8x16x2xf32>,
    %c0_23 = arith.constant 0 : index
    %c0_24 = arith.constant 0 : index
    %c0_25 = arith.constant 0 : index
    %58 = vector.load %arg14[%c0_23, %c0_24, %c0_25] : memref<10x18x2xf32, #tpu.memory_space<vmem>>, vector<10x18x2xf32>
    %c0_26 = arith.constant 0 : index
    %c0_27 = arith.constant 0 : index
    %59 = vector.load %arg4[%c0_26, %c0_27] : memref<18x2xf32, #tpu.memory_space<vmem>>, vector<18x2xf32>
    %cst_28 = arith.constant 0.000000e+00 : f32
    %60 = vector.broadcast %cst_28 : f32 to vector<128x2xf32>
    %c0_29 = arith.constant 0 : index
    %c0_30 = arith.constant 0 : index
    %61 = vector.load %arg5[%c0_29, %c0_30] : memref<1x2xf32, #tpu.memory_space<vmem>>, vector<1x2xf32>
    %62 = vector.broadcast %61 : vector<1x2xf32> to vector<128x2xf32>
    %63 = arith.addf %60, %62 : vector<128x2xf32>
    %64 = vector.extract_strided_slice %58 {offsets = [0, 0, 0], sizes = [8, 16, 2], strides = [1, 1, 1]} : vector<10x18x2xf32> to vector<8x16x2xf32>
    %65 = vector.shape_cast %64 : vector<8x16x2xf32> to vector<128x2xf32>
    %66 = vector.extract_strided_slice %59 {offsets = [0, 0], sizes = [2, 2], strides = [1, 1]} : vector<18x2xf32> to vector<2x2xf32>
    %cst_31 = arith.constant dense<0.000000e+00> : vector<128x2xf32>
    %67 = tpu.matmul %65, %66, %cst_31 {dimension_numbers = #tpu.dot_dimension_numbers<[1], [0], [0], [1], [0, 0, 1, 1], [], []>} : vector<128x2xf32>, vector<2x2xf32>, vector<128x2xf32> -> vector<128x2xf32>
    %68 = arith.addf %63, %67 : vector<128x2xf32>
    %69 = vector.extract_strided_slice %58 {offsets = [0, 1, 0], sizes = [8, 16, 2], strides = [1, 1, 1]} : vector<10x18x2xf32> to vector<8x16x2xf32>
    %70 = vector.shape_cast %69 : vector<8x16x2xf32> to vector<128x2xf32>
    %71 = vector.extract_strided_slice %59 {offsets = [2, 0], sizes = [2, 2], strides = [1, 1]} : vector<18x2xf32> to vector<2x2xf32>
    %cst_32 = arith.constant dense<0.000000e+00> : vector<128x2xf32>
    %72 = tpu.matmul %70, %71, %cst_32 {dimension_numbers = #tpu.dot_dimension_numbers<[1], [0], [0], [1], [0, 0, 1, 1], [], []>} : vector<128x2xf32>, vector<2x2xf32>, vector<128x2xf32> -> vector<128x2xf32>
    %73 = arith.addf %68, %72 : vector<128x2xf32>
    %74 = vector.extract_strided_slice %58 {offsets = [0, 2, 0], sizes = [8, 16, 2], strides = [1, 1, 1]} : vector<10x18x2xf32> to vector<8x16x2xf32>
    %75 = vector.shape_cast %74 : vector<8x16x2xf32> to vector<128x2xf32>
    %76 = vector.extract_strided_slice %59 {offsets = [4, 0], sizes = [2, 2], strides = [1, 1]} : vector<18x2xf32> to vector<2x2xf32>
    %cst_33 = arith.constant dense<0.000000e+00> : vector<128x2xf32>
    %77 = tpu.matmul %75, %76, %cst_33 {dimension_numbers = #tpu.dot_dimension_numbers<[1], [0], [0], [1], [0, 0, 1, 1], [], []>} : vector<128x2xf32>, vector<2x2xf32>, vector<128x2xf32> -> vector<128x2xf32>
    %78 = arith.addf %73, %77 : vector<128x2xf32>
    %79 = vector.extract_strided_slice %58 {offsets = [1, 0, 0], sizes = [8, 16, 2], strides = [1, 1, 1]} : vector<10x18x2xf32> to vector<8x16x2xf32>
    %80 = vector.shape_cast %79 : vector<8x16x2xf32> to vector<128x2xf32>
    %81 = vector.extract_strided_slice %59 {offsets = [6, 0], sizes = [2, 2], strides = [1, 1]} : vector<18x2xf32> to vector<2x2xf32>
    %cst_34 = arith.constant dense<0.000000e+00> : vector<128x2xf32>
    %82 = tpu.matmul %80, %81, %cst_34 {dimension_numbers = #tpu.dot_dimension_numbers<[1], [0], [0], [1], [0, 0, 1, 1], [], []>} : vector<128x2xf32>, vector<2x2xf32>, vector<128x2xf32> -> vector<128x2xf32>
    %83 = arith.addf %78, %82 : vector<128x2xf32>
    %84 = vector.extract_strided_slice %58 {offsets = [1, 1, 0], sizes = [8, 16, 2], strides = [1, 1, 1]} : vector<10x18x2xf32> to vector<8x16x2xf32>
    %85 = vector.shape_cast %84 : vector<8x16x2xf32> to vector<128x2xf32>
    %86 = vector.extract_strided_slice %59 {offsets = [8, 0], sizes = [2, 2], strides = [1, 1]} : vector<18x2xf32> to vector<2x2xf32>
    %cst_35 = arith.constant dense<0.000000e+00> : vector<128x2xf32>
    %87 = tpu.matmul %85, %86, %cst_35 {dimension_numbers = #tpu.dot_dimension_numbers<[1], [0], [0], [1], [0, 0, 1, 1], [], []>} : vector<128x2xf32>, vector<2x2xf32>, vector<128x2xf32> -> vector<128x2xf32>
    %88 = arith.addf %83, %87 : vector<128x2xf32>
    %89 = vector.extract_strided_slice %58 {offsets = [1, 2, 0], sizes = [8, 16, 2], strides = [1, 1, 1]} : vector<10x18x2xf32> to vector<8x16x2xf32>
    %90 = vector.shape_cast %89 : vector<8x16x2xf32> to vector<128x2xf32>
    %91 = vector.extract_strided_slice %59 {offsets = [10, 0], sizes = [2, 2], strides = [1, 1]} : vector<18x2xf32> to vector<2x2xf32>
    %cst_36 = arith.constant dense<0.000000e+00> : vector<128x2xf32>
    %92 = tpu.matmul %90, %91, %cst_36 {dimension_numbers = #tpu.dot_dimension_numbers<[1], [0], [0], [1], [0, 0, 1, 1], [], []>} : vector<128x2xf32>, vector<2x2xf32>, vector<128x2xf32> -> vector<128x2xf32>
    %93 = arith.addf %88, %92 : vector<128x2xf32>
    %94 = vector.extract_strided_slice %58 {offsets = [2, 0, 0], sizes = [8, 16, 2], strides = [1, 1, 1]} : vector<10x18x2xf32> to vector<8x16x2xf32>
    %95 = vector.shape_cast %94 : vector<8x16x2xf32> to vector<128x2xf32>
    %96 = vector.extract_strided_slice %59 {offsets = [12, 0], sizes = [2, 2], strides = [1, 1]} : vector<18x2xf32> to vector<2x2xf32>
    %cst_37 = arith.constant dense<0.000000e+00> : vector<128x2xf32>
    %97 = tpu.matmul %95, %96, %cst_37 {dimension_numbers = #tpu.dot_dimension_numbers<[1], [0], [0], [1], [0, 0, 1, 1], [], []>} : vector<128x2xf32>, vector<2x2xf32>, vector<128x2xf32> -> vector<128x2xf32>
    %98 = arith.addf %93, %97 : vector<128x2xf32>
    %99 = vector.extract_strided_slice %58 {offsets = [2, 1, 0], sizes = [8, 16, 2], strides = [1, 1, 1]} : vector<10x18x2xf32> to vector<8x16x2xf32>
    %100 = vector.shape_cast %99 : vector<8x16x2xf32> to vector<128x2xf32>
    %101 = vector.extract_strided_slice %59 {offsets = [14, 0], sizes = [2, 2], strides = [1, 1]} : vector<18x2xf32> to vector<2x2xf32>
    %cst_38 = arith.constant dense<0.000000e+00> : vector<128x2xf32>
    %102 = tpu.matmul %100, %101, %cst_38 {dimension_numbers = #tpu.dot_dimension_numbers<[1], [0], [0], [1], [0, 0, 1, 1], [], []>} : vector<128x2xf32>, vector<2x2xf32>, vector<128x2xf32> -> vector<128x2xf32>
    %103 = arith.addf %98, %102 : vector<128x2xf32>
    %104 = vector.extract_strided_slice %58 {offsets = [2, 2, 0], sizes = [8, 16, 2], strides = [1, 1, 1]} : vector<10x18x2xf32> to vector<8x16x2xf32>
    %105 = vector.shape_cast %104 : vector<8x16x2xf32> to vector<128x2xf32>
    %106 = vector.extract_strided_slice %59 {offsets = [16, 0], sizes = [2, 2], strides = [1, 1]} : vector<18x2xf32> to vector<2x2xf32>
    %cst_39 = arith.constant dense<0.000000e+00> : vector<128x2xf32>
    %107 = tpu.matmul %105, %106, %cst_39 {dimension_numbers = #tpu.dot_dimension_numbers<[1], [0], [0], [1], [0, 0, 1, 1], [], []>} : vector<128x2xf32>, vector<2x2xf32>, vector<128x2xf32> -> vector<128x2xf32>
    %108 = arith.addf %103, %107 : vector<128x2xf32>
    %cst_40 = arith.constant 0.000000e+00 : f32
    %109 = vector.broadcast %cst_40 : f32 to vector<128x2xf32>
    %110 = arith.maximumf %108, %109 : vector<128x2xf32>
    %111 = vector.shape_cast %110 : vector<128x2xf32> to vector<8x16x2xf32>
    %cst_41 = arith.constant 0.000000e+00 : f32
    %112 = vector.broadcast %cst_41 : f32 to vector<10x10x2xf32>
    %c0_42 = arith.constant 0 : index
    %c0_43 = arith.constant 0 : index
    %c0_44 = arith.constant 0 : index
    %113 = vector.load %arg15[%c0_42, %c0_43, %c0_44] : memref<10x10x2xf32, #tpu.memory_space<vmem>>, vector<10x10x2xf32>
    tpu.vector_store %arg15[%c0_42, %c0_43, %c0_44], %112 {strides = array<i32>} : memref<10x10x2xf32, #tpu.memory_space<vmem>>, vector<10x10x2xf32>,
    %114 = vector.extract_strided_slice %111 {offsets = [0, 0, 0], sizes = [8, 1, 2], strides = [1, 1, 1]} : vector<8x16x2xf32> to vector<8x1x2xf32>
    %115 = vector.extract_strided_slice %111 {offsets = [0, 1, 0], sizes = [8, 1, 2], strides = [1, 1, 1]} : vector<8x16x2xf32> to vector<8x1x2xf32>
    %116 = arith.maximumf %114, %115 : vector<8x1x2xf32>
    %c1_45 = arith.constant 1 : index
    %c1_46 = arith.constant 1 : index
    %c0_47 = arith.constant 0 : index
    %117 = vector.load %arg15[%c1_45, %c1_46, %c0_47] : memref<10x10x2xf32, #tpu.memory_space<vmem>>, vector<8x1x2xf32>
    tpu.vector_store %arg15[%c1_45, %c1_46, %c0_47], %116 {strides = array<i32>} : memref<10x10x2xf32, #tpu.memory_space<vmem>>, vector<8x1x2xf32>,
    %118 = vector.extract_strided_slice %111 {offsets = [0, 2, 0], sizes = [8, 1, 2], strides = [1, 1, 1]} : vector<8x16x2xf32> to vector<8x1x2xf32>
    %119 = vector.extract_strided_slice %111 {offsets = [0, 3, 0], sizes = [8, 1, 2], strides = [1, 1, 1]} : vector<8x16x2xf32> to vector<8x1x2xf32>
    %120 = arith.maximumf %118, %119 : vector<8x1x2xf32>
    %c1_48 = arith.constant 1 : index
    %c2 = arith.constant 2 : index
    %c0_49 = arith.constant 0 : index
    %121 = vector.load %arg15[%c1_48, %c2, %c0_49] : memref<10x10x2xf32, #tpu.memory_space<vmem>>, vector<8x1x2xf32>
    tpu.vector_store %arg15[%c1_48, %c2, %c0_49], %120 {strides = array<i32>} : memref<10x10x2xf32, #tpu.memory_space<vmem>>, vector<8x1x2xf32>,
    %122 = vector.extract_strided_slice %111 {offsets = [0, 4, 0], sizes = [8, 1, 2], strides = [1, 1, 1]} : vector<8x16x2xf32> to vector<8x1x2xf32>
    %123 = vector.extract_strided_slice %111 {offsets = [0, 5, 0], sizes = [8, 1, 2], strides = [1, 1, 1]} : vector<8x16x2xf32> to vector<8x1x2xf32>
    %124 = arith.maximumf %122, %123 : vector<8x1x2xf32>
    %c1_50 = arith.constant 1 : index
    %c3 = arith.constant 3 : index
    %c0_51 = arith.constant 0 : index
    %125 = vector.load %arg15[%c1_50, %c3, %c0_51] : memref<10x10x2xf32, #tpu.memory_space<vmem>>, vector<8x1x2xf32>
    tpu.vector_store %arg15[%c1_50, %c3, %c0_51], %124 {strides = array<i32>} : memref<10x10x2xf32, #tpu.memory_space<vmem>>, vector<8x1x2xf32>,
    %126 = vector.extract_strided_slice %111 {offsets = [0, 6, 0], sizes = [8, 1, 2], strides = [1, 1, 1]} : vector<8x16x2xf32> to vector<8x1x2xf32>
    %127 = vector.extract_strided_slice %111 {offsets = [0, 7, 0], sizes = [8, 1, 2], strides = [1, 1, 1]} : vector<8x16x2xf32> to vector<8x1x2xf32>
    %128 = arith.maximumf %126, %127 : vector<8x1x2xf32>
    %c1_52 = arith.constant 1 : index
    %c4 = arith.constant 4 : index
    %c0_53 = arith.constant 0 : index
    %129 = vector.load %arg15[%c1_52, %c4, %c0_53] : memref<10x10x2xf32, #tpu.memory_space<vmem>>, vector<8x1x2xf32>
    tpu.vector_store %arg15[%c1_52, %c4, %c0_53], %128 {strides = array<i32>} : memref<10x10x2xf32, #tpu.memory_space<vmem>>, vector<8x1x2xf32>,
    %130 = vector.extract_strided_slice %111 {offsets = [0, 8, 0], sizes = [8, 1, 2], strides = [1, 1, 1]} : vector<8x16x2xf32> to vector<8x1x2xf32>
    %131 = vector.extract_strided_slice %111 {offsets = [0, 9, 0], sizes = [8, 1, 2], strides = [1, 1, 1]} : vector<8x16x2xf32> to vector<8x1x2xf32>
    %132 = arith.maximumf %130, %131 : vector<8x1x2xf32>
    %c1_54 = arith.constant 1 : index
    %c5 = arith.constant 5 : index
    %c0_55 = arith.constant 0 : index
    %133 = vector.load %arg15[%c1_54, %c5, %c0_55] : memref<10x10x2xf32, #tpu.memory_space<vmem>>, vector<8x1x2xf32>
    tpu.vector_store %arg15[%c1_54, %c5, %c0_55], %132 {strides = array<i32>} : memref<10x10x2xf32, #tpu.memory_space<vmem>>, vector<8x1x2xf32>,
    %134 = vector.extract_strided_slice %111 {offsets = [0, 10, 0], sizes = [8, 1, 2], strides = [1, 1, 1]} : vector<8x16x2xf32> to vector<8x1x2xf32>
    %135 = vector.extract_strided_slice %111 {offsets = [0, 11, 0], sizes = [8, 1, 2], strides = [1, 1, 1]} : vector<8x16x2xf32> to vector<8x1x2xf32>
    %136 = arith.maximumf %134, %135 : vector<8x1x2xf32>
    %c1_56 = arith.constant 1 : index
    %c6 = arith.constant 6 : index
    %c0_57 = arith.constant 0 : index
    %137 = vector.load %arg15[%c1_56, %c6, %c0_57] : memref<10x10x2xf32, #tpu.memory_space<vmem>>, vector<8x1x2xf32>
    tpu.vector_store %arg15[%c1_56, %c6, %c0_57], %136 {strides = array<i32>} : memref<10x10x2xf32, #tpu.memory_space<vmem>>, vector<8x1x2xf32>,
    %138 = vector.extract_strided_slice %111 {offsets = [0, 12, 0], sizes = [8, 1, 2], strides = [1, 1, 1]} : vector<8x16x2xf32> to vector<8x1x2xf32>
    %139 = vector.extract_strided_slice %111 {offsets = [0, 13, 0], sizes = [8, 1, 2], strides = [1, 1, 1]} : vector<8x16x2xf32> to vector<8x1x2xf32>
    %140 = arith.maximumf %138, %139 : vector<8x1x2xf32>
    %c1_58 = arith.constant 1 : index
    %c7 = arith.constant 7 : index
    %c0_59 = arith.constant 0 : index
    %141 = vector.load %arg15[%c1_58, %c7, %c0_59] : memref<10x10x2xf32, #tpu.memory_space<vmem>>, vector<8x1x2xf32>
    tpu.vector_store %arg15[%c1_58, %c7, %c0_59], %140 {strides = array<i32>} : memref<10x10x2xf32, #tpu.memory_space<vmem>>, vector<8x1x2xf32>,
    %142 = vector.extract_strided_slice %111 {offsets = [0, 14, 0], sizes = [8, 1, 2], strides = [1, 1, 1]} : vector<8x16x2xf32> to vector<8x1x2xf32>
    %143 = vector.extract_strided_slice %111 {offsets = [0, 15, 0], sizes = [8, 1, 2], strides = [1, 1, 1]} : vector<8x16x2xf32> to vector<8x1x2xf32>
    %144 = arith.maximumf %142, %143 : vector<8x1x2xf32>
    %c1_60 = arith.constant 1 : index
    %c8 = arith.constant 8 : index
    %c0_61 = arith.constant 0 : index
    %145 = vector.load %arg15[%c1_60, %c8, %c0_61] : memref<10x10x2xf32, #tpu.memory_space<vmem>>, vector<8x1x2xf32>
    tpu.vector_store %arg15[%c1_60, %c8, %c0_61], %144 {strides = array<i32>} : memref<10x10x2xf32, #tpu.memory_space<vmem>>, vector<8x1x2xf32>,
    %c0_62 = arith.constant 0 : index
    %c0_63 = arith.constant 0 : index
    %c0_64 = arith.constant 0 : index
    %146 = vector.load %arg15[%c0_62, %c0_63, %c0_64] : memref<10x10x2xf32, #tpu.memory_space<vmem>>, vector<10x10x2xf32>
    %c0_65 = arith.constant 0 : index
    %c0_66 = arith.constant 0 : index
    %147 = vector.load %arg6[%c0_65, %c0_66] : memref<18x4xf32, #tpu.memory_space<vmem>>, vector<18x4xf32>
    %cst_67 = arith.constant 0.000000e+00 : f32
    %148 = vector.broadcast %cst_67 : f32 to vector<64x4xf32>
    %c0_68 = arith.constant 0 : index
    %c0_69 = arith.constant 0 : index
    %149 = vector.load %arg7[%c0_68, %c0_69] : memref<1x4xf32, #tpu.memory_space<vmem>>, vector<1x4xf32>
    %150 = vector.broadcast %149 : vector<1x4xf32> to vector<64x4xf32>
    %151 = arith.addf %148, %150 : vector<64x4xf32>
    %152 = vector.extract_strided_slice %146 {offsets = [0, 0, 0], sizes = [8, 8, 2], strides = [1, 1, 1]} : vector<10x10x2xf32> to vector<8x8x2xf32>
    %153 = vector.shape_cast %152 : vector<8x8x2xf32> to vector<64x2xf32>
    %154 = vector.extract_strided_slice %147 {offsets = [0, 0], sizes = [2, 4], strides = [1, 1]} : vector<18x4xf32> to vector<2x4xf32>
    %cst_70 = arith.constant dense<0.000000e+00> : vector<64x4xf32>
    %155 = tpu.matmul %153, %154, %cst_70 {dimension_numbers = #tpu.dot_dimension_numbers<[1], [0], [0], [1], [0, 0, 1, 1], [], []>} : vector<64x2xf32>, vector<2x4xf32>, vector<64x4xf32> -> vector<64x4xf32>
    %156 = arith.addf %151, %155 : vector<64x4xf32>
    %157 = vector.extract_strided_slice %146 {offsets = [0, 1, 0], sizes = [8, 8, 2], strides = [1, 1, 1]} : vector<10x10x2xf32> to vector<8x8x2xf32>
    %158 = vector.shape_cast %157 : vector<8x8x2xf32> to vector<64x2xf32>
    %159 = vector.extract_strided_slice %147 {offsets = [2, 0], sizes = [2, 4], strides = [1, 1]} : vector<18x4xf32> to vector<2x4xf32>
    %cst_71 = arith.constant dense<0.000000e+00> : vector<64x4xf32>
    %160 = tpu.matmul %158, %159, %cst_71 {dimension_numbers = #tpu.dot_dimension_numbers<[1], [0], [0], [1], [0, 0, 1, 1], [], []>} : vector<64x2xf32>, vector<2x4xf32>, vector<64x4xf32> -> vector<64x4xf32>
    %161 = arith.addf %156, %160 : vector<64x4xf32>
    %162 = vector.extract_strided_slice %146 {offsets = [0, 2, 0], sizes = [8, 8, 2], strides = [1, 1, 1]} : vector<10x10x2xf32> to vector<8x8x2xf32>
    %163 = vector.shape_cast %162 : vector<8x8x2xf32> to vector<64x2xf32>
    %164 = vector.extract_strided_slice %147 {offsets = [4, 0], sizes = [2, 4], strides = [1, 1]} : vector<18x4xf32> to vector<2x4xf32>
    %cst_72 = arith.constant dense<0.000000e+00> : vector<64x4xf32>
    %165 = tpu.matmul %163, %164, %cst_72 {dimension_numbers = #tpu.dot_dimension_numbers<[1], [0], [0], [1], [0, 0, 1, 1], [], []>} : vector<64x2xf32>, vector<2x4xf32>, vector<64x4xf32> -> vector<64x4xf32>
    %166 = arith.addf %161, %165 : vector<64x4xf32>
    %167 = vector.extract_strided_slice %146 {offsets = [1, 0, 0], sizes = [8, 8, 2], strides = [1, 1, 1]} : vector<10x10x2xf32> to vector<8x8x2xf32>
    %168 = vector.shape_cast %167 : vector<8x8x2xf32> to vector<64x2xf32>
    %169 = vector.extract_strided_slice %147 {offsets = [6, 0], sizes = [2, 4], strides = [1, 1]} : vector<18x4xf32> to vector<2x4xf32>
    %cst_73 = arith.constant dense<0.000000e+00> : vector<64x4xf32>
    %170 = tpu.matmul %168, %169, %cst_73 {dimension_numbers = #tpu.dot_dimension_numbers<[1], [0], [0], [1], [0, 0, 1, 1], [], []>} : vector<64x2xf32>, vector<2x4xf32>, vector<64x4xf32> -> vector<64x4xf32>
    %171 = arith.addf %166, %170 : vector<64x4xf32>
    %172 = vector.extract_strided_slice %146 {offsets = [1, 1, 0], sizes = [8, 8, 2], strides = [1, 1, 1]} : vector<10x10x2xf32> to vector<8x8x2xf32>
    %173 = vector.shape_cast %172 : vector<8x8x2xf32> to vector<64x2xf32>
    %174 = vector.extract_strided_slice %147 {offsets = [8, 0], sizes = [2, 4], strides = [1, 1]} : vector<18x4xf32> to vector<2x4xf32>
    %cst_74 = arith.constant dense<0.000000e+00> : vector<64x4xf32>
    %175 = tpu.matmul %173, %174, %cst_74 {dimension_numbers = #tpu.dot_dimension_numbers<[1], [0], [0], [1], [0, 0, 1, 1], [], []>} : vector<64x2xf32>, vector<2x4xf32>, vector<64x4xf32> -> vector<64x4xf32>
    %176 = arith.addf %171, %175 : vector<64x4xf32>
    %177 = vector.extract_strided_slice %146 {offsets = [1, 2, 0], sizes = [8, 8, 2], strides = [1, 1, 1]} : vector<10x10x2xf32> to vector<8x8x2xf32>
    %178 = vector.shape_cast %177 : vector<8x8x2xf32> to vector<64x2xf32>
    %179 = vector.extract_strided_slice %147 {offsets = [10, 0], sizes = [2, 4], strides = [1, 1]} : vector<18x4xf32> to vector<2x4xf32>
    %cst_75 = arith.constant dense<0.000000e+00> : vector<64x4xf32>
    %180 = tpu.matmul %178, %179, %cst_75 {dimension_numbers = #tpu.dot_dimension_numbers<[1], [0], [0], [1], [0, 0, 1, 1], [], []>} : vector<64x2xf32>, vector<2x4xf32>, vector<64x4xf32> -> vector<64x4xf32>
    %181 = arith.addf %176, %180 : vector<64x4xf32>
    %182 = vector.extract_strided_slice %146 {offsets = [2, 0, 0], sizes = [8, 8, 2], strides = [1, 1, 1]} : vector<10x10x2xf32> to vector<8x8x2xf32>
    %183 = vector.shape_cast %182 : vector<8x8x2xf32> to vector<64x2xf32>
    %184 = vector.extract_strided_slice %147 {offsets = [12, 0], sizes = [2, 4], strides = [1, 1]} : vector<18x4xf32> to vector<2x4xf32>
    %cst_76 = arith.constant dense<0.000000e+00> : vector<64x4xf32>
    %185 = tpu.matmul %183, %184, %cst_76 {dimension_numbers = #tpu.dot_dimension_numbers<[1], [0], [0], [1], [0, 0, 1, 1], [], []>} : vector<64x2xf32>, vector<2x4xf32>, vector<64x4xf32> -> vector<64x4xf32>
    %186 = arith.addf %181, %185 : vector<64x4xf32>
    %187 = vector.extract_strided_slice %146 {offsets = [2, 1, 0], sizes = [8, 8, 2], strides = [1, 1, 1]} : vector<10x10x2xf32> to vector<8x8x2xf32>
    %188 = vector.shape_cast %187 : vector<8x8x2xf32> to vector<64x2xf32>
    %189 = vector.extract_strided_slice %147 {offsets = [14, 0], sizes = [2, 4], strides = [1, 1]} : vector<18x4xf32> to vector<2x4xf32>
    %cst_77 = arith.constant dense<0.000000e+00> : vector<64x4xf32>
    %190 = tpu.matmul %188, %189, %cst_77 {dimension_numbers = #tpu.dot_dimension_numbers<[1], [0], [0], [1], [0, 0, 1, 1], [], []>} : vector<64x2xf32>, vector<2x4xf32>, vector<64x4xf32> -> vector<64x4xf32>
    %191 = arith.addf %186, %190 : vector<64x4xf32>
    %192 = vector.extract_strided_slice %146 {offsets = [2, 2, 0], sizes = [8, 8, 2], strides = [1, 1, 1]} : vector<10x10x2xf32> to vector<8x8x2xf32>
    %193 = vector.shape_cast %192 : vector<8x8x2xf32> to vector<64x2xf32>
    %194 = vector.extract_strided_slice %147 {offsets = [16, 0], sizes = [2, 4], strides = [1, 1]} : vector<18x4xf32> to vector<2x4xf32>
    %cst_78 = arith.constant dense<0.000000e+00> : vector<64x4xf32>
    %195 = tpu.matmul %193, %194, %cst_78 {dimension_numbers = #tpu.dot_dimension_numbers<[1], [0], [0], [1], [0, 0, 1, 1], [], []>} : vector<64x2xf32>, vector<2x4xf32>, vector<64x4xf32> -> vector<64x4xf32>
    %196 = arith.addf %191, %195 : vector<64x4xf32>
    %cst_79 = arith.constant 0.000000e+00 : f32
    %197 = vector.broadcast %cst_79 : f32 to vector<64x4xf32>
    %198 = arith.maximumf %196, %197 : vector<64x4xf32>
    %199 = vector.shape_cast %198 : vector<64x4xf32> to vector<8x8x4xf32>
    %c0_80 = arith.constant 0 : index
    %c0_81 = arith.constant 0 : index
    %200 = vector.load %arg8[%c0_80, %c0_81] : memref<16x128xf32, #tpu.memory_space<vmem>>, vector<16x128xf32>
    %cst_82 = arith.constant 0.000000e+00 : f32
    %201 = vector.broadcast %cst_82 : f32 to vector<8x128xf32>
    %c0_83 = arith.constant 0 : index
    %c0_84 = arith.constant 0 : index
    %202 = vector.load %arg9[%c0_83, %c0_84] : memref<1x128xf32, #tpu.memory_space<vmem>>, vector<1x128xf32>
    %203 = vector.broadcast %202 : vector<1x128xf32> to vector<8x128xf32>
    %204 = arith.addf %201, %203 : vector<8x128xf32>
    %205 = vector.extract_strided_slice %199 {offsets = [0, 0, 0], sizes = [8, 1, 4], strides = [1, 1, 1]} : vector<8x8x4xf32> to vector<8x1x4xf32>
    %206 = vector.shape_cast %205 : vector<8x1x4xf32> to vector<8x4xf32>
    %207 = vector.extract_strided_slice %199 {offsets = [0, 1, 0], sizes = [8, 1, 4], strides = [1, 1, 1]} : vector<8x8x4xf32> to vector<8x1x4xf32>
    %208 = vector.shape_cast %207 : vector<8x1x4xf32> to vector<8x4xf32>
    %209 = arith.maximumf %206, %208 : vector<8x4xf32>
    %210 = vector.extract_strided_slice %200 {offsets = [0, 0], sizes = [4, 128], strides = [1, 1]} : vector<16x128xf32> to vector<4x128xf32>
    %cst_85 = arith.constant dense<0.000000e+00> : vector<8x128xf32>
    %211 = tpu.matmul %209, %210, %cst_85 {dimension_numbers = #tpu.dot_dimension_numbers<[1], [0], [0], [1], [0, 0, 1, 1], [], []>} : vector<8x4xf32>, vector<4x128xf32>, vector<8x128xf32> -> vector<8x128xf32>
    %212 = arith.addf %204, %211 : vector<8x128xf32>
    %213 = vector.extract_strided_slice %199 {offsets = [0, 2, 0], sizes = [8, 1, 4], strides = [1, 1, 1]} : vector<8x8x4xf32> to vector<8x1x4xf32>
    %214 = vector.shape_cast %213 : vector<8x1x4xf32> to vector<8x4xf32>
    %215 = vector.extract_strided_slice %199 {offsets = [0, 3, 0], sizes = [8, 1, 4], strides = [1, 1, 1]} : vector<8x8x4xf32> to vector<8x1x4xf32>
    %216 = vector.shape_cast %215 : vector<8x1x4xf32> to vector<8x4xf32>
    %217 = arith.maximumf %214, %216 : vector<8x4xf32>
    %218 = vector.extract_strided_slice %200 {offsets = [4, 0], sizes = [4, 128], strides = [1, 1]} : vector<16x128xf32> to vector<4x128xf32>
    %cst_86 = arith.constant dense<0.000000e+00> : vector<8x128xf32>
    %219 = tpu.matmul %217, %218, %cst_86 {dimension_numbers = #tpu.dot_dimension_numbers<[1], [0], [0], [1], [0, 0, 1, 1], [], []>} : vector<8x4xf32>, vector<4x128xf32>, vector<8x128xf32> -> vector<8x128xf32>
    %220 = arith.addf %212, %219 : vector<8x128xf32>
    %221 = vector.extract_strided_slice %199 {offsets = [0, 4, 0], sizes = [8, 1, 4], strides = [1, 1, 1]} : vector<8x8x4xf32> to vector<8x1x4xf32>
    %222 = vector.shape_cast %221 : vector<8x1x4xf32> to vector<8x4xf32>
    %223 = vector.extract_strided_slice %199 {offsets = [0, 5, 0], sizes = [8, 1, 4], strides = [1, 1, 1]} : vector<8x8x4xf32> to vector<8x1x4xf32>
    %224 = vector.shape_cast %223 : vector<8x1x4xf32> to vector<8x4xf32>
    %225 = arith.maximumf %222, %224 : vector<8x4xf32>
    %226 = vector.extract_strided_slice %200 {offsets = [8, 0], sizes = [4, 128], strides = [1, 1]} : vector<16x128xf32> to vector<4x128xf32>
    %cst_87 = arith.constant dense<0.000000e+00> : vector<8x128xf32>
    %227 = tpu.matmul %225, %226, %cst_87 {dimension_numbers = #tpu.dot_dimension_numbers<[1], [0], [0], [1], [0, 0, 1, 1], [], []>} : vector<8x4xf32>, vector<4x128xf32>, vector<8x128xf32> -> vector<8x128xf32>
    %228 = arith.addf %220, %227 : vector<8x128xf32>
    %229 = vector.extract_strided_slice %199 {offsets = [0, 6, 0], sizes = [8, 1, 4], strides = [1, 1, 1]} : vector<8x8x4xf32> to vector<8x1x4xf32>
    %230 = vector.shape_cast %229 : vector<8x1x4xf32> to vector<8x4xf32>
    %231 = vector.extract_strided_slice %199 {offsets = [0, 7, 0], sizes = [8, 1, 4], strides = [1, 1, 1]} : vector<8x8x4xf32> to vector<8x1x4xf32>
    %232 = vector.shape_cast %231 : vector<8x1x4xf32> to vector<8x4xf32>
    %233 = arith.maximumf %230, %232 : vector<8x4xf32>
    %234 = vector.extract_strided_slice %200 {offsets = [12, 0], sizes = [4, 128], strides = [1, 1]} : vector<16x128xf32> to vector<4x128xf32>
    %cst_88 = arith.constant dense<0.000000e+00> : vector<8x128xf32>
    %235 = tpu.matmul %233, %234, %cst_88 {dimension_numbers = #tpu.dot_dimension_numbers<[1], [0], [0], [1], [0, 0, 1, 1], [], []>} : vector<8x4xf32>, vector<4x128xf32>, vector<8x128xf32> -> vector<8x128xf32>
    %236 = arith.addf %228, %235 : vector<8x128xf32>
    %c0_89 = arith.constant 0 : index
    %c0_90 = arith.constant 0 : index
    %237 = vector.load %arg16[%c0_89, %c0_90] : memref<8x128xf32, #tpu.memory_space<vmem>>, vector<8x128xf32>
    tpu.vector_store %arg16[%c0_89, %c0_90], %236 {strides = array<i32>} : memref<8x128xf32, #tpu.memory_space<vmem>>, vector<8x128xf32>,
    %c0_91 = arith.constant 0 : index
    %c0_92 = arith.constant 0 : index
    %238 = vector.load %arg10[%c0_91, %c0_92] : memref<32x128xf32, #tpu.memory_space<vmem>>, vector<32x128xf32>
    %cst_93 = arith.constant 0.000000e+00 : f32
    %239 = vector.broadcast %cst_93 : f32 to vector<1x32xf32>
    %cst_94 = arith.constant 0.000000e+00 : f32
    %240 = vector.broadcast %cst_94 : f32 to vector<1x32xf32>
    %c0_i32 = arith.constant 0 : i32
    %241 = arith.index_cast %c0_i32 : i32 to index
    %c0_95 = arith.constant 0 : index
    %242 = vector.load %arg16[%241, %c0_95] : memref<8x128xf32, #tpu.memory_space<vmem>>, vector<1x128xf32>
    %cst_96 = arith.constant dense<0.000000e+00> : vector<1x128xf32>
    %243 = tpu.matmul %239, %238, %cst_96 {dimension_numbers = #tpu.dot_dimension_numbers<[1], [0], [0], [1], [0, 0, 1, 1], [], []>} : vector<1x32xf32>, vector<32x128xf32>, vector<1x128xf32> -> vector<1x128xf32>
    %244 = arith.addf %242, %243 : vector<1x128xf32>
    %245 = vector.extract_strided_slice %244 {offsets = [0, 0], sizes = [1, 32], strides = [1, 1]} : vector<1x128xf32> to vector<1x32xf32>
    %246 = arith.negf %245 : vector<1x32xf32>
    %247 = math.exp %246 : vector<1x32xf32>
    %cst_97 = arith.constant 1.000000e+00 : f32
    %248 = vector.broadcast %cst_97 : f32 to vector<1x32xf32>
    %249 = arith.addf %248, %247 : vector<1x32xf32>
    %250 = arith.divf %248, %249 : vector<1x32xf32>
    %251 = vector.extract_strided_slice %244 {offsets = [0, 32], sizes = [1, 32], strides = [1, 1]} : vector<1x128xf32> to vector<1x32xf32>
    %252 = arith.negf %251 : vector<1x32xf32>
    %253 = math.exp %252 : vector<1x32xf32>
    %cst_98 = arith.constant 1.000000e+00 : f32
    %254 = vector.broadcast %cst_98 : f32 to vector<1x32xf32>
    %255 = arith.addf %254, %253 : vector<1x32xf32>
    %256 = arith.divf %254, %255 : vector<1x32xf32>
    %257 = vector.extract_strided_slice %244 {offsets = [0, 64], sizes = [1, 32], strides = [1, 1]} : vector<1x128xf32> to vector<1x32xf32>
    %258 = math.tanh %257 : vector<1x32xf32>
    %259 = vector.extract_strided_slice %244 {offsets = [0, 96], sizes = [1, 32], strides = [1, 1]} : vector<1x128xf32> to vector<1x32xf32>
    %260 = arith.negf %259 : vector<1x32xf32>
    %261 = math.exp %260 : vector<1x32xf32>
    %cst_99 = arith.constant 1.000000e+00 : f32
    %262 = vector.broadcast %cst_99 : f32 to vector<1x32xf32>
    %263 = arith.addf %262, %261 : vector<1x32xf32>
    %264 = arith.divf %262, %263 : vector<1x32xf32>
    %265 = arith.mulf %256, %240 : vector<1x32xf32>
    %266 = arith.mulf %250, %258 : vector<1x32xf32>
    %267 = arith.addf %265, %266 : vector<1x32xf32>
    %268 = math.tanh %267 : vector<1x32xf32>
    %269 = arith.mulf %264, %268 : vector<1x32xf32>
    %270 = arith.index_cast %c0_i32 : i32 to index
    %c0_100 = arith.constant 0 : index
    %271 = vector.load %arg17[%270, %c0_100] : memref<8x32xf32, #tpu.memory_space<vmem>>, vector<1x32xf32>
    tpu.vector_store %arg17[%270, %c0_100], %269 {strides = array<i32>} : memref<8x32xf32, #tpu.memory_space<vmem>>, vector<1x32xf32>,
    %c1_i32 = arith.constant 1 : i32
    %272 = arith.index_cast %c1_i32 : i32 to index
    %c0_101 = arith.constant 0 : index
    %273 = vector.load %arg16[%272, %c0_101] : memref<8x128xf32, #tpu.memory_space<vmem>>, vector<1x128xf32>
    %cst_102 = arith.constant dense<0.000000e+00> : vector<1x128xf32>
    %274 = tpu.matmul %269, %238, %cst_102 {dimension_numbers = #tpu.dot_dimension_numbers<[1], [0], [0], [1], [0, 0, 1, 1], [], []>} : vector<1x32xf32>, vector<32x128xf32>, vector<1x128xf32> -> vector<1x128xf32>
    %275 = arith.addf %273, %274 : vector<1x128xf32>
    %276 = vector.extract_strided_slice %275 {offsets = [0, 0], sizes = [1, 32], strides = [1, 1]} : vector<1x128xf32> to vector<1x32xf32>
    %277 = arith.negf %276 : vector<1x32xf32>
    %278 = math.exp %277 : vector<1x32xf32>
    %cst_103 = arith.constant 1.000000e+00 : f32
    %279 = vector.broadcast %cst_103 : f32 to vector<1x32xf32>
    %280 = arith.addf %279, %278 : vector<1x32xf32>
    %281 = arith.divf %279, %280 : vector<1x32xf32>
    %282 = vector.extract_strided_slice %275 {offsets = [0, 32], sizes = [1, 32], strides = [1, 1]} : vector<1x128xf32> to vector<1x32xf32>
    %283 = arith.negf %282 : vector<1x32xf32>
    %284 = math.exp %283 : vector<1x32xf32>
    %cst_104 = arith.constant 1.000000e+00 : f32
    %285 = vector.broadcast %cst_104 : f32 to vector<1x32xf32>
    %286 = arith.addf %285, %284 : vector<1x32xf32>
    %287 = arith.divf %285, %286 : vector<1x32xf32>
    %288 = vector.extract_strided_slice %275 {offsets = [0, 64], sizes = [1, 32], strides = [1, 1]} : vector<1x128xf32> to vector<1x32xf32>
    %289 = math.tanh %288 : vector<1x32xf32>
    %290 = vector.extract_strided_slice %275 {offsets = [0, 96], sizes = [1, 32], strides = [1, 1]} : vector<1x128xf32> to vector<1x32xf32>
    %291 = arith.negf %290 : vector<1x32xf32>
    %292 = math.exp %291 : vector<1x32xf32>
    %cst_105 = arith.constant 1.000000e+00 : f32
    %293 = vector.broadcast %cst_105 : f32 to vector<1x32xf32>
    %294 = arith.addf %293, %292 : vector<1x32xf32>
    %295 = arith.divf %293, %294 : vector<1x32xf32>
    %296 = arith.mulf %287, %267 : vector<1x32xf32>
    %297 = arith.mulf %281, %289 : vector<1x32xf32>
    %298 = arith.addf %296, %297 : vector<1x32xf32>
    %299 = math.tanh %298 : vector<1x32xf32>
    %300 = arith.mulf %295, %299 : vector<1x32xf32>
    %301 = arith.index_cast %c1_i32 : i32 to index
    %c0_106 = arith.constant 0 : index
    %302 = vector.load %arg17[%301, %c0_106] : memref<8x32xf32, #tpu.memory_space<vmem>>, vector<1x32xf32>
    tpu.vector_store %arg17[%301, %c0_106], %300 {strides = array<i32>} : memref<8x32xf32, #tpu.memory_space<vmem>>, vector<1x32xf32>,
    %c2_i32 = arith.constant 2 : i32
    %303 = arith.index_cast %c2_i32 : i32 to index
    %c0_107 = arith.constant 0 : index
    %304 = vector.load %arg16[%303, %c0_107] : memref<8x128xf32, #tpu.memory_space<vmem>>, vector<1x128xf32>
    %cst_108 = arith.constant dense<0.000000e+00> : vector<1x128xf32>
    %305 = tpu.matmul %300, %238, %cst_108 {dimension_numbers = #tpu.dot_dimension_numbers<[1], [0], [0], [1], [0, 0, 1, 1], [], []>} : vector<1x32xf32>, vector<32x128xf32>, vector<1x128xf32> -> vector<1x128xf32>
    %306 = arith.addf %304, %305 : vector<1x128xf32>
    %307 = vector.extract_strided_slice %306 {offsets = [0, 0], sizes = [1, 32], strides = [1, 1]} : vector<1x128xf32> to vector<1x32xf32>
    %308 = arith.negf %307 : vector<1x32xf32>
    %309 = math.exp %308 : vector<1x32xf32>
    %cst_109 = arith.constant 1.000000e+00 : f32
    %310 = vector.broadcast %cst_109 : f32 to vector<1x32xf32>
    %311 = arith.addf %310, %309 : vector<1x32xf32>
    %312 = arith.divf %310, %311 : vector<1x32xf32>
    %313 = vector.extract_strided_slice %306 {offsets = [0, 32], sizes = [1, 32], strides = [1, 1]} : vector<1x128xf32> to vector<1x32xf32>
    %314 = arith.negf %313 : vector<1x32xf32>
    %315 = math.exp %314 : vector<1x32xf32>
    %cst_110 = arith.constant 1.000000e+00 : f32
    %316 = vector.broadcast %cst_110 : f32 to vector<1x32xf32>
    %317 = arith.addf %316, %315 : vector<1x32xf32>
    %318 = arith.divf %316, %317 : vector<1x32xf32>
    %319 = vector.extract_strided_slice %306 {offsets = [0, 64], sizes = [1, 32], strides = [1, 1]} : vector<1x128xf32> to vector<1x32xf32>
    %320 = math.tanh %319 : vector<1x32xf32>
    %321 = vector.extract_strided_slice %306 {offsets = [0, 96], sizes = [1, 32], strides = [1, 1]} : vector<1x128xf32> to vector<1x32xf32>
    %322 = arith.negf %321 : vector<1x32xf32>
    %323 = math.exp %322 : vector<1x32xf32>
    %cst_111 = arith.constant 1.000000e+00 : f32
    %324 = vector.broadcast %cst_111 : f32 to vector<1x32xf32>
    %325 = arith.addf %324, %323 : vector<1x32xf32>
    %326 = arith.divf %324, %325 : vector<1x32xf32>
    %327 = arith.mulf %318, %298 : vector<1x32xf32>
    %328 = arith.mulf %312, %320 : vector<1x32xf32>
    %329 = arith.addf %327, %328 : vector<1x32xf32>
    %330 = math.tanh %329 : vector<1x32xf32>
    %331 = arith.mulf %326, %330 : vector<1x32xf32>
    %332 = arith.index_cast %c2_i32 : i32 to index
    %c0_112 = arith.constant 0 : index
    %333 = vector.load %arg17[%332, %c0_112] : memref<8x32xf32, #tpu.memory_space<vmem>>, vector<1x32xf32>
    tpu.vector_store %arg17[%332, %c0_112], %331 {strides = array<i32>} : memref<8x32xf32, #tpu.memory_space<vmem>>, vector<1x32xf32>,
    %c3_i32 = arith.constant 3 : i32
    %334 = arith.index_cast %c3_i32 : i32 to index
    %c0_113 = arith.constant 0 : index
    %335 = vector.load %arg16[%334, %c0_113] : memref<8x128xf32, #tpu.memory_space<vmem>>, vector<1x128xf32>
    %cst_114 = arith.constant dense<0.000000e+00> : vector<1x128xf32>
    %336 = tpu.matmul %331, %238, %cst_114 {dimension_numbers = #tpu.dot_dimension_numbers<[1], [0], [0], [1], [0, 0, 1, 1], [], []>} : vector<1x32xf32>, vector<32x128xf32>, vector<1x128xf32> -> vector<1x128xf32>
    %337 = arith.addf %335, %336 : vector<1x128xf32>
    %338 = vector.extract_strided_slice %337 {offsets = [0, 0], sizes = [1, 32], strides = [1, 1]} : vector<1x128xf32> to vector<1x32xf32>
    %339 = arith.negf %338 : vector<1x32xf32>
    %340 = math.exp %339 : vector<1x32xf32>
    %cst_115 = arith.constant 1.000000e+00 : f32
    %341 = vector.broadcast %cst_115 : f32 to vector<1x32xf32>
    %342 = arith.addf %341, %340 : vector<1x32xf32>
    %343 = arith.divf %341, %342 : vector<1x32xf32>
    %344 = vector.extract_strided_slice %337 {offsets = [0, 32], sizes = [1, 32], strides = [1, 1]} : vector<1x128xf32> to vector<1x32xf32>
    %345 = arith.negf %344 : vector<1x32xf32>
    %346 = math.exp %345 : vector<1x32xf32>
    %cst_116 = arith.constant 1.000000e+00 : f32
    %347 = vector.broadcast %cst_116 : f32 to vector<1x32xf32>
    %348 = arith.addf %347, %346 : vector<1x32xf32>
    %349 = arith.divf %347, %348 : vector<1x32xf32>
    %350 = vector.extract_strided_slice %337 {offsets = [0, 64], sizes = [1, 32], strides = [1, 1]} : vector<1x128xf32> to vector<1x32xf32>
    %351 = math.tanh %350 : vector<1x32xf32>
    %352 = vector.extract_strided_slice %337 {offsets = [0, 96], sizes = [1, 32], strides = [1, 1]} : vector<1x128xf32> to vector<1x32xf32>
    %353 = arith.negf %352 : vector<1x32xf32>
    %354 = math.exp %353 : vector<1x32xf32>
    %cst_117 = arith.constant 1.000000e+00 : f32
    %355 = vector.broadcast %cst_117 : f32 to vector<1x32xf32>
    %356 = arith.addf %355, %354 : vector<1x32xf32>
    %357 = arith.divf %355, %356 : vector<1x32xf32>
    %358 = arith.mulf %349, %329 : vector<1x32xf32>
    %359 = arith.mulf %343, %351 : vector<1x32xf32>
    %360 = arith.addf %358, %359 : vector<1x32xf32>
    %361 = math.tanh %360 : vector<1x32xf32>
    %362 = arith.mulf %357, %361 : vector<1x32xf32>
    %363 = arith.index_cast %c3_i32 : i32 to index
    %c0_118 = arith.constant 0 : index
    %364 = vector.load %arg17[%363, %c0_118] : memref<8x32xf32, #tpu.memory_space<vmem>>, vector<1x32xf32>
    tpu.vector_store %arg17[%363, %c0_118], %362 {strides = array<i32>} : memref<8x32xf32, #tpu.memory_space<vmem>>, vector<1x32xf32>,
    %c4_i32 = arith.constant 4 : i32
    %365 = arith.index_cast %c4_i32 : i32 to index
    %c0_119 = arith.constant 0 : index
    %366 = vector.load %arg16[%365, %c0_119] : memref<8x128xf32, #tpu.memory_space<vmem>>, vector<1x128xf32>
    %cst_120 = arith.constant dense<0.000000e+00> : vector<1x128xf32>
    %367 = tpu.matmul %362, %238, %cst_120 {dimension_numbers = #tpu.dot_dimension_numbers<[1], [0], [0], [1], [0, 0, 1, 1], [], []>} : vector<1x32xf32>, vector<32x128xf32>, vector<1x128xf32> -> vector<1x128xf32>
    %368 = arith.addf %366, %367 : vector<1x128xf32>
    %369 = vector.extract_strided_slice %368 {offsets = [0, 0], sizes = [1, 32], strides = [1, 1]} : vector<1x128xf32> to vector<1x32xf32>
    %370 = arith.negf %369 : vector<1x32xf32>
    %371 = math.exp %370 : vector<1x32xf32>
    %cst_121 = arith.constant 1.000000e+00 : f32
    %372 = vector.broadcast %cst_121 : f32 to vector<1x32xf32>
    %373 = arith.addf %372, %371 : vector<1x32xf32>
    %374 = arith.divf %372, %373 : vector<1x32xf32>
    %375 = vector.extract_strided_slice %368 {offsets = [0, 32], sizes = [1, 32], strides = [1, 1]} : vector<1x128xf32> to vector<1x32xf32>
    %376 = arith.negf %375 : vector<1x32xf32>
    %377 = math.exp %376 : vector<1x32xf32>
    %cst_122 = arith.constant 1.000000e+00 : f32
    %378 = vector.broadcast %cst_122 : f32 to vector<1x32xf32>
    %379 = arith.addf %378, %377 : vector<1x32xf32>
    %380 = arith.divf %378, %379 : vector<1x32xf32>
    %381 = vector.extract_strided_slice %368 {offsets = [0, 64], sizes = [1, 32], strides = [1, 1]} : vector<1x128xf32> to vector<1x32xf32>
    %382 = math.tanh %381 : vector<1x32xf32>
    %383 = vector.extract_strided_slice %368 {offsets = [0, 96], sizes = [1, 32], strides = [1, 1]} : vector<1x128xf32> to vector<1x32xf32>
    %384 = arith.negf %383 : vector<1x32xf32>
    %385 = math.exp %384 : vector<1x32xf32>
    %cst_123 = arith.constant 1.000000e+00 : f32
    %386 = vector.broadcast %cst_123 : f32 to vector<1x32xf32>
    %387 = arith.addf %386, %385 : vector<1x32xf32>
    %388 = arith.divf %386, %387 : vector<1x32xf32>
    %389 = arith.mulf %380, %360 : vector<1x32xf32>
    %390 = arith.mulf %374, %382 : vector<1x32xf32>
    %391 = arith.addf %389, %390 : vector<1x32xf32>
    %392 = math.tanh %391 : vector<1x32xf32>
    %393 = arith.mulf %388, %392 : vector<1x32xf32>
    %394 = arith.index_cast %c4_i32 : i32 to index
    %c0_124 = arith.constant 0 : index
    %395 = vector.load %arg17[%394, %c0_124] : memref<8x32xf32, #tpu.memory_space<vmem>>, vector<1x32xf32>
    tpu.vector_store %arg17[%394, %c0_124], %393 {strides = array<i32>} : memref<8x32xf32, #tpu.memory_space<vmem>>, vector<1x32xf32>,
    %c5_i32 = arith.constant 5 : i32
    %396 = arith.index_cast %c5_i32 : i32 to index
    %c0_125 = arith.constant 0 : index
    %397 = vector.load %arg16[%396, %c0_125] : memref<8x128xf32, #tpu.memory_space<vmem>>, vector<1x128xf32>
    %cst_126 = arith.constant dense<0.000000e+00> : vector<1x128xf32>
    %398 = tpu.matmul %393, %238, %cst_126 {dimension_numbers = #tpu.dot_dimension_numbers<[1], [0], [0], [1], [0, 0, 1, 1], [], []>} : vector<1x32xf32>, vector<32x128xf32>, vector<1x128xf32> -> vector<1x128xf32>
    %399 = arith.addf %397, %398 : vector<1x128xf32>
    %400 = vector.extract_strided_slice %399 {offsets = [0, 0], sizes = [1, 32], strides = [1, 1]} : vector<1x128xf32> to vector<1x32xf32>
    %401 = arith.negf %400 : vector<1x32xf32>
    %402 = math.exp %401 : vector<1x32xf32>
    %cst_127 = arith.constant 1.000000e+00 : f32
    %403 = vector.broadcast %cst_127 : f32 to vector<1x32xf32>
    %404 = arith.addf %403, %402 : vector<1x32xf32>
    %405 = arith.divf %403, %404 : vector<1x32xf32>
    %406 = vector.extract_strided_slice %399 {offsets = [0, 32], sizes = [1, 32], strides = [1, 1]} : vector<1x128xf32> to vector<1x32xf32>
    %407 = arith.negf %406 : vector<1x32xf32>
    %408 = math.exp %407 : vector<1x32xf32>
    %cst_128 = arith.constant 1.000000e+00 : f32
    %409 = vector.broadcast %cst_128 : f32 to vector<1x32xf32>
    %410 = arith.addf %409, %408 : vector<1x32xf32>
    %411 = arith.divf %409, %410 : vector<1x32xf32>
    %412 = vector.extract_strided_slice %399 {offsets = [0, 64], sizes = [1, 32], strides = [1, 1]} : vector<1x128xf32> to vector<1x32xf32>
    %413 = math.tanh %412 : vector<1x32xf32>
    %414 = vector.extract_strided_slice %399 {offsets = [0, 96], sizes = [1, 32], strides = [1, 1]} : vector<1x128xf32> to vector<1x32xf32>
    %415 = arith.negf %414 : vector<1x32xf32>
    %416 = math.exp %415 : vector<1x32xf32>
    %cst_129 = arith.constant 1.000000e+00 : f32
    %417 = vector.broadcast %cst_129 : f32 to vector<1x32xf32>
    %418 = arith.addf %417, %416 : vector<1x32xf32>
    %419 = arith.divf %417, %418 : vector<1x32xf32>
    %420 = arith.mulf %411, %391 : vector<1x32xf32>
    %421 = arith.mulf %405, %413 : vector<1x32xf32>
    %422 = arith.addf %420, %421 : vector<1x32xf32>
    %423 = math.tanh %422 : vector<1x32xf32>
    %424 = arith.mulf %419, %423 : vector<1x32xf32>
    %425 = arith.index_cast %c5_i32 : i32 to index
    %c0_130 = arith.constant 0 : index
    %426 = vector.load %arg17[%425, %c0_130] : memref<8x32xf32, #tpu.memory_space<vmem>>, vector<1x32xf32>
    tpu.vector_store %arg17[%425, %c0_130], %424 {strides = array<i32>} : memref<8x32xf32, #tpu.memory_space<vmem>>, vector<1x32xf32>,
    %c6_i32 = arith.constant 6 : i32
    %427 = arith.index_cast %c6_i32 : i32 to index
    %c0_131 = arith.constant 0 : index
    %428 = vector.load %arg16[%427, %c0_131] : memref<8x128xf32, #tpu.memory_space<vmem>>, vector<1x128xf32>
    %cst_132 = arith.constant dense<0.000000e+00> : vector<1x128xf32>
    %429 = tpu.matmul %424, %238, %cst_132 {dimension_numbers = #tpu.dot_dimension_numbers<[1], [0], [0], [1], [0, 0, 1, 1], [], []>} : vector<1x32xf32>, vector<32x128xf32>, vector<1x128xf32> -> vector<1x128xf32>
    %430 = arith.addf %428, %429 : vector<1x128xf32>
    %431 = vector.extract_strided_slice %430 {offsets = [0, 0], sizes = [1, 32], strides = [1, 1]} : vector<1x128xf32> to vector<1x32xf32>
    %432 = arith.negf %431 : vector<1x32xf32>
    %433 = math.exp %432 : vector<1x32xf32>
    %cst_133 = arith.constant 1.000000e+00 : f32
    %434 = vector.broadcast %cst_133 : f32 to vector<1x32xf32>
    %435 = arith.addf %434, %433 : vector<1x32xf32>
    %436 = arith.divf %434, %435 : vector<1x32xf32>
    %437 = vector.extract_strided_slice %430 {offsets = [0, 32], sizes = [1, 32], strides = [1, 1]} : vector<1x128xf32> to vector<1x32xf32>
    %438 = arith.negf %437 : vector<1x32xf32>
    %439 = math.exp %438 : vector<1x32xf32>
    %cst_134 = arith.constant 1.000000e+00 : f32
    %440 = vector.broadcast %cst_134 : f32 to vector<1x32xf32>
    %441 = arith.addf %440, %439 : vector<1x32xf32>
    %442 = arith.divf %440, %441 : vector<1x32xf32>
    %443 = vector.extract_strided_slice %430 {offsets = [0, 64], sizes = [1, 32], strides = [1, 1]} : vector<1x128xf32> to vector<1x32xf32>
    %444 = math.tanh %443 : vector<1x32xf32>
    %445 = vector.extract_strided_slice %430 {offsets = [0, 96], sizes = [1, 32], strides = [1, 1]} : vector<1x128xf32> to vector<1x32xf32>
    %446 = arith.negf %445 : vector<1x32xf32>
    %447 = math.exp %446 : vector<1x32xf32>
    %cst_135 = arith.constant 1.000000e+00 : f32
    %448 = vector.broadcast %cst_135 : f32 to vector<1x32xf32>
    %449 = arith.addf %448, %447 : vector<1x32xf32>
    %450 = arith.divf %448, %449 : vector<1x32xf32>
    %451 = arith.mulf %442, %422 : vector<1x32xf32>
    %452 = arith.mulf %436, %444 : vector<1x32xf32>
    %453 = arith.addf %451, %452 : vector<1x32xf32>
    %454 = math.tanh %453 : vector<1x32xf32>
    %455 = arith.mulf %450, %454 : vector<1x32xf32>
    %456 = arith.index_cast %c6_i32 : i32 to index
    %c0_136 = arith.constant 0 : index
    %457 = vector.load %arg17[%456, %c0_136] : memref<8x32xf32, #tpu.memory_space<vmem>>, vector<1x32xf32>
    tpu.vector_store %arg17[%456, %c0_136], %455 {strides = array<i32>} : memref<8x32xf32, #tpu.memory_space<vmem>>, vector<1x32xf32>,
    %c7_i32 = arith.constant 7 : i32
    %458 = arith.index_cast %c7_i32 : i32 to index
    %c0_137 = arith.constant 0 : index
    %459 = vector.load %arg16[%458, %c0_137] : memref<8x128xf32, #tpu.memory_space<vmem>>, vector<1x128xf32>
    %cst_138 = arith.constant dense<0.000000e+00> : vector<1x128xf32>
    %460 = tpu.matmul %455, %238, %cst_138 {dimension_numbers = #tpu.dot_dimension_numbers<[1], [0], [0], [1], [0, 0, 1, 1], [], []>} : vector<1x32xf32>, vector<32x128xf32>, vector<1x128xf32> -> vector<1x128xf32>
    %461 = arith.addf %459, %460 : vector<1x128xf32>
    %462 = vector.extract_strided_slice %461 {offsets = [0, 0], sizes = [1, 32], strides = [1, 1]} : vector<1x128xf32> to vector<1x32xf32>
    %463 = arith.negf %462 : vector<1x32xf32>
    %464 = math.exp %463 : vector<1x32xf32>
    %cst_139 = arith.constant 1.000000e+00 : f32
    %465 = vector.broadcast %cst_139 : f32 to vector<1x32xf32>
    %466 = arith.addf %465, %464 : vector<1x32xf32>
    %467 = arith.divf %465, %466 : vector<1x32xf32>
    %468 = vector.extract_strided_slice %461 {offsets = [0, 32], sizes = [1, 32], strides = [1, 1]} : vector<1x128xf32> to vector<1x32xf32>
    %469 = arith.negf %468 : vector<1x32xf32>
    %470 = math.exp %469 : vector<1x32xf32>
    %cst_140 = arith.constant 1.000000e+00 : f32
    %471 = vector.broadcast %cst_140 : f32 to vector<1x32xf32>
    %472 = arith.addf %471, %470 : vector<1x32xf32>
    %473 = arith.divf %471, %472 : vector<1x32xf32>
    %474 = vector.extract_strided_slice %461 {offsets = [0, 64], sizes = [1, 32], strides = [1, 1]} : vector<1x128xf32> to vector<1x32xf32>
    %475 = math.tanh %474 : vector<1x32xf32>
    %476 = vector.extract_strided_slice %461 {offsets = [0, 96], sizes = [1, 32], strides = [1, 1]} : vector<1x128xf32> to vector<1x32xf32>
    %477 = arith.negf %476 : vector<1x32xf32>
    %478 = math.exp %477 : vector<1x32xf32>
    %cst_141 = arith.constant 1.000000e+00 : f32
    %479 = vector.broadcast %cst_141 : f32 to vector<1x32xf32>
    %480 = arith.addf %479, %478 : vector<1x32xf32>
    %481 = arith.divf %479, %480 : vector<1x32xf32>
    %482 = arith.mulf %473, %453 : vector<1x32xf32>
    %483 = arith.mulf %467, %475 : vector<1x32xf32>
    %484 = arith.addf %482, %483 : vector<1x32xf32>
    %485 = math.tanh %484 : vector<1x32xf32>
    %486 = arith.mulf %481, %485 : vector<1x32xf32>
    %487 = arith.index_cast %c7_i32 : i32 to index
    %c0_142 = arith.constant 0 : index
    %488 = vector.load %arg17[%487, %c0_142] : memref<8x32xf32, #tpu.memory_space<vmem>>, vector<1x32xf32>
    tpu.vector_store %arg17[%487, %c0_142], %486 {strides = array<i32>} : memref<8x32xf32, #tpu.memory_space<vmem>>, vector<1x32xf32>,
    %c8_i32 = arith.constant 8 : i32
    %c0_143 = arith.constant 0 : index
    %c0_144 = arith.constant 0 : index
    %489 = vector.load %arg17[%c0_143, %c0_144] : memref<8x32xf32, #tpu.memory_space<vmem>>, vector<8x32xf32>
    %c0_145 = arith.constant 0 : index
    %c0_146 = arith.constant 0 : index
    %490 = vector.load %arg11[%c0_145, %c0_146] : memref<32x8xf32, #tpu.memory_space<vmem>>, vector<32x8xf32>
    %cst_147 = arith.constant dense<0.000000e+00> : vector<8x8xf32>
    %491 = tpu.matmul %489, %490, %cst_147 {dimension_numbers = #tpu.dot_dimension_numbers<[1], [0], [0], [1], [0, 0, 1, 1], [], []>} : vector<8x32xf32>, vector<32x8xf32>, vector<8x8xf32> -> vector<8x8xf32>
    %c0_148 = arith.constant 0 : index
    %c0_149 = arith.constant 0 : index
    %492 = vector.load %arg12[%c0_148, %c0_149] : memref<1x8xf32, #tpu.memory_space<vmem>>, vector<1x8xf32>
    %493 = vector.broadcast %492 : vector<1x8xf32> to vector<8x8xf32>
    %494 = arith.addf %491, %493 : vector<8x8xf32>
    %c0_150 = arith.constant 0 : index
    %c0_151 = arith.constant 0 : index
    %c0_152 = arith.constant 0 : index
    %495 = vector.load %arg13[%c0_150, %c0_151, %c0_152] : memref<1x8x8xf32, #tpu.memory_space<vmem>>, vector<1x8x8xf32>
    %496 = vector.shape_cast %495 : vector<1x8x8xf32> to vector<8x8xf32>
    %497 = vector.shape_cast %494 : vector<8x8xf32> to vector<1x8x8xf32>
    tpu.vector_store %arg13[%c0_150, %c0_151, %c0_152], %497 {strides = array<i32>} : memref<1x8x8xf32, #tpu.memory_space<vmem>>, vector<1x8x8xf32>,
    return
  }
  func.func @transform_0(%arg0: i32) -> (i32, i32, i32, i32) {
    %c0_i32 = arith.constant 0 : i32
    %c0_i32_0 = arith.constant 0 : i32
    %c0_i32_1 = arith.constant 0 : i32
    %c0_i32_2 = arith.constant 0 : i32
    return %arg0, %c0_i32, %c0_i32_0, %c0_i32_1 : i32, i32, i32, i32
  }
  func.func @transform_1(%arg0: i32) -> (i32, i32) {
    %c0_i32 = arith.constant 0 : i32
    %c0_i32_0 = arith.constant 0 : i32
    %c0_i32_1 = arith.constant 0 : i32
    return %c0_i32, %c0_i32_0 : i32, i32
  }
  func.func @transform_2(%arg0: i32) -> (i32, i32) {
    %c0_i32 = arith.constant 0 : i32
    %c0_i32_0 = arith.constant 0 : i32
    %c0_i32_1 = arith.constant 0 : i32
    return %c0_i32, %c0_i32_0 : i32, i32
  }
  func.func @transform_3(%arg0: i32) -> (i32, i32) {
    %c0_i32 = arith.constant 0 : i32
    %c0_i32_0 = arith.constant 0 : i32
    %c0_i32_1 = arith.constant 0 : i32
    return %c0_i32, %c0_i32_0 : i32, i32
  }
  func.func @transform_4(%arg0: i32) -> (i32, i32) {
    %c0_i32 = arith.constant 0 : i32
    %c0_i32_0 = arith.constant 0 : i32
    %c0_i32_1 = arith.constant 0 : i32
    return %c0_i32, %c0_i32_0 : i32, i32
  }
  func.func @transform_5(%arg0: i32) -> (i32, i32) {
    %c0_i32 = arith.constant 0 : i32
    %c0_i32_0 = arith.constant 0 : i32
    %c0_i32_1 = arith.constant 0 : i32
    return %c0_i32, %c0_i32_0 : i32, i32
  }
  func.func @transform_6(%arg0: i32) -> (i32, i32) {
    %c0_i32 = arith.constant 0 : i32
    %c0_i32_0 = arith.constant 0 : i32
    %c0_i32_1 = arith.constant 0 : i32
    return %c0_i32, %c0_i32_0 : i32, i32
  }
  func.func @transform_7(%arg0: i32) -> (i32, i32) {
    %c0_i32 = arith.constant 0 : i32
    %c0_i32_0 = arith.constant 0 : i32
    %c0_i32_1 = arith.constant 0 : i32
    return %c0_i32, %c0_i32_0 : i32, i32
  }
  func.func @transform_8(%arg0: i32) -> (i32, i32) {
    %c0_i32 = arith.constant 0 : i32
    %c0_i32_0 = arith.constant 0 : i32
    %c0_i32_1 = arith.constant 0 : i32
    return %c0_i32, %c0_i32_0 : i32, i32
  }
  func.func @transform_9(%arg0: i32) -> (i32, i32) {
    %c0_i32 = arith.constant 0 : i32
    %c0_i32_0 = arith.constant 0 : i32
    %c0_i32_1 = arith.constant 0 : i32
    return %c0_i32, %c0_i32_0 : i32, i32
  }
  func.func @transform_10(%arg0: i32) -> (i32, i32) {
    %c0_i32 = arith.constant 0 : i32
    %c0_i32_0 = arith.constant 0 : i32
    %c0_i32_1 = arith.constant 0 : i32
    return %c0_i32, %c0_i32_0 : i32, i32
  }
  func.func @transform_11(%arg0: i32) -> (i32, i32) {
    %c0_i32 = arith.constant 0 : i32
    %c0_i32_0 = arith.constant 0 : i32
    %c0_i32_1 = arith.constant 0 : i32
    return %c0_i32, %c0_i32_0 : i32, i32
  }
  func.func @transform_12(%arg0: i32) -> (i32, i32, i32) {
    %c0_i32 = arith.constant 0 : i32
    %c0_i32_0 = arith.constant 0 : i32
    %c0_i32_1 = arith.constant 0 : i32
    return %arg0, %c0_i32, %c0_i32_0 : i32, i32, i32
  }
}

</mosaic_0001>

<bundles_post_ra>
// kernel: crnn_forward.1
= control target key start
LH: loop header
LB: loop body
LE: loop exit
PB: predicated region body
PF: predicated region fallthrough
CT: control target
= control target key end

     0   :  { %s10967_s0 = inlined_call_operand.vmem [shape: f32[2,10,18,1], index: 0, kind: input, shape index: {}]   ;;  %s10968_s1 = inlined_call_operand.vmem [shape: f32[9,2], index: 1, kind: input, shape index: {}]   ;;  %s10969_s2 = inlined_call_operand.vmem [shape: f32[1,2], index: 2, kind: input, shape index: {}]   ;;  %s10970_s3 = inlined_call_operand.vmem [shape: f32[18,2], index: 3, kind: input, shape index: {}]   ;;  %s10971_s4 = inlined_call_operand.vmem [shape: f32[1,2], index: 4, kind: input, shape index: {}]   ;;  %s10972_s5 = inlined_call_operand.vmem [shape: f32[18,4], index: 5, kind: input, shape index: {}]   ;;  %s10973_s6 = inlined_call_operand.vmem [shape: f32[1,4], index: 6, kind: input, shape index: {}]   ;;  %s10974_s7 = inlined_call_operand.vmem [shape: f32[16,128], index: 7, kind: input, shape index: {}]   ;;  %s10975_s8 = inlined_call_operand.vmem [shape: f32[1,128], index: 8, kind: input, shape index: {}]   ;;  %s10976_s9 = inlined_call_operand.vmem [shape: f32[32,128], index: 9, kind: input, shape index: {}]   ;;  %s10977_s10 = inlined_call_operand.vmem [shape: f32[32,8], index: 10, kind: input, shape index: {}]   ;;  %s10978_s11 = inlined_call_operand.vmem [shape: f32[1,8], index: 11, kind: input, shape index: {}]   ;;  %s10979_s12 = inlined_call_operand.hbm [shape: f32[2,8,8], index: 12, kind: output, shape index: {}]  }
   0x1   :  { %10981 = sst [smem:[#allocation9_spill]] %s10967_s0 }
   0x2   :  { %10982 = sst [smem:[#allocation10_spill]] %s10968_s1 }
   0x3   :  { %17 = vsyncpa [#allocation7], 0 }
   0x4   :  { %19 = vsyncpa [#allocation7 + $0x1], 0  ;;  %s9064_s21 = smov 0   ;;  %s9066_s22 = smov 0  }
   0x5   :  { %s9068_s23 = smov 0   ;;  %s9070_s24 = smov 0  }
   0x6 LB: > { %s9085_s25 = sadd.s32 4294967295, %s8991_s24   ;;  %s6818_s26 = sadd.s32 4294967294, %s8991_s24   ;;  %s8991_s24 = sphi %s9070_s24, %s10991_s24   ;;  %s8987_s23 = sphi %s9068_s23, %s10990_s23   ;;  %s8983_s22 = sphi %s9066_s22, %s10989_s22   ;;  %s8979_s21 = sphi %s9064_s21, %s10988_s21  }
   0x7   : > { %s9089_s27 = sadd.s32 1, %s8991_s24   ;;  %s289_s28 = sadd.s32 1, %s8987_s23 }
   0x8   : > { %s286_s29 = ssub.s32 %s8991_s24, %s9089_s27  ;;  %p299_p0 = scmp.ne.s32.totalorder %s8987_s23, %s8983_s22 }
   0x9   : > { %p287_p1 = scmp.eq.s32.totalorder %s286_s29, 0  ;;  %p300_p2 = scmp.eq.s32.totalorder %s9085_s25, 1 }
   0xa   : > { %p305_p3 = scmp.ne.s32.totalorder %s8983_s22, %s8979_s21  ;;  %p306_p4 = scmp.eq.s32.totalorder %s6818_s26, 1 }
   0xb   : > { %s9100_s30 = scalar_select %p287_p1, %s8987_s23, %s289_s28  }
   0xc   : > { %p9102_p5 = por %p300_p2, %p299_p0  ;;  %p9106_p6 = por %p306_p4, %p305_p3 }
   0xd   : > { %p6821_p7 = scmp.ge.s32.totalorder %s8991_s24, 1  ;;  %p365_p8 = scmp.lt.s32.totalorder %s8991_s24, 3 }
   0xf   : > { %p366_p9 = pnand %p6821_p7, %p365_p8 }
  0x10   : > { %s10985_s1 = sld [smem:[#allocation10_spill]] (!%p366_p9)  ;;  %vm501_vm0 = vcmask (!%p366_p9), 1040384   ;;  %p407_p10 = scmp.lt.s32.totalorder (!%p366_p9), %s9085_s25, 1  ;;  %vm452_vm1 = vcmask (!%p366_p9), 7168   ;;  %vm674_vm2 = vcmask (!%p366_p9), 1046528   ;;  %vm911_vm3 = vcmask (!%p366_p9), 1045504  }
  0x11   : > { %369 = sbr.rel (%p366_p9) target bundleno = 7241 (0x1c49), region = 68  ;;  %s10986_s0 = sld [smem:[#allocation9_spill]] (!%p366_p9)  ;;  %vm2336_vm4 = vcmask (!%p366_p9), 1041408   ;;  %vm2198_vm5 = vcmask (!%p366_p9), 15360   ;;  %vm2201_vm6 = vcmask (!%p366_p9), 9216   ;;  %vm4084_vm7 = vcmask (!%p366_p9), 8192  }
  0x12   : > { %vm4093_vm8 = vcmask (!%p366_p9), 10242   ;;  %vm4102_vm9 = vcmask (!%p366_p9), 12292   ;;  %vm4111_vm10 = vcmask (!%p366_p9), 14342   ;;  %vm5481_vm11 = vcmask (!%p366_p9), 1043456   ;;  %s8996_s20 = smov (!%p366_p9), 64   ;;  %s404_s28 = sand.u32 (!%p366_p9), 1, %s8983_s22  }
  0x13   : > { %vm8994_vm12 = vmmov (!%p366_p9), 0   ;;  %vm5458_vm13 = vcmask (!%p366_p9), 1041409   ;;  %vm5461_vm14 = vcmask (!%p366_p9), 1042434   ;;  %vm5464_vm15 = vcmask (!%p366_p9), 1043459   ;;  %s7241_s16 = sshll.u32 (!%p366_p9), %s9085_s25, 7  ;;  %s6746_s29 = scalar_lea.sflag (!%p366_p9), [#allocation7], %s404_s28 }
  0x16   : > { %v9115_v0 = vld [vmem:[%s10985_s1] sm:$0xff] (!%p366_p9) }
  0x17   : > { %7684 = vmatprep.subr.msk.mxu0 (!%p366_p9), %vm501_vm0, %v9115_v0  ;;  %v715_v1 = vrot.slane (!%p366_p9), %v9115_v0, 1  ;;  %8451 = vmatprep.subr.msk.mxu1 (!%p366_p9), %vm501_vm0, %v9115_v0  ;;  %v952_v4 = vrot.slane (!%p366_p9), %v9115_v0, 2  ;;  %v1148_v24 = vrot.slane (!%p366_p9), %v9115_v0, 3 }
  0x18   : > { %7685 = vmatpush3.msk.msra.mxu0 %vm501_vm0, %v9115_v0  ;;  %s408_s17 = scalar_select %p407_p10, %s9085_s25, 1  ;;  %8452 = vmatpush3.msk.msra.mxu1 %vm501_vm0, %v9115_v0 }
  0x19   : > { %7710 = vmatprep.subr.msk.mxu0 %vm501_vm0, %v715_v1  ;;  %s8998_s25 = smov [#allocation6]  }
  0x1a   : > { %s8820_s18 = smul.u32 240, %s408_s17 }
  0x1c   : > { %s9132_s26 = scalar_lea.vmem %s10986_s0, %s8820_s18  ;;  %s10925_s0 = scalar_lea.hbm %s10979_s12, %s7241_s16 }
  0x1d   : > { %v9135_v2 = vld [vmem:[%s9132_s26] sm:$0xff]  ;;  %v9138_v3 = vld [vmem:[%s9132_s26 + $0x8] sm:$0xff]  ;;  %v9142_v5 = vld [vmem:[%s9132_s26 + $0x10] sm:$0x3] }
  0x1e   : > { %7686 = vmatprep.mubr.msk.f32.mxu0 %vm452_vm1, %v9135_v2  ;;  %v675_v6 = vrot.slane %v9135_v2, 1  ;;  %v676_v7 = vrot.slane %v9138_v3, 1  ;;  %v9149_v8 = vld [vmem:[%s9132_s26 + $0x18] sm:$0xff]  ;;  %v9152_v9 = vld [vmem:[%s9132_s26 + $0x20] sm:$0xff]  ;;  %v678_v11 = vrot.slane %v9142_v5, 1  ;;  %v9171_v15 = vld [vmem:[%s9132_s26 + $0x30] sm:$0xff] }
  0x1f   : > { %7687 = vmatmul.mubr.msk.f32.vlgmr.msra.gmra.mrb[0].mxu0 %vm452_vm1, %v9138_v3  ;;  %7689 = vmatprep.mubr.msk.f32.mxu1 %vm452_vm1, %v9149_v8  ;;  %v680_v12 = vrot.slane %v9149_v8, 1  ;;  %v681_v13 = vrot.slane %v9152_v9, 1  ;;  %v9168_v14 = vld [vmem:[%s9132_s26 + $0x28] sm:$0x3]  ;;  %v9174_v16 = vld [vmem:[%s9132_s26 + $0x38] sm:$0xff]  ;;  %v685_v21 = vrot.slane %v9171_v15, 1 }
  0x20   : > { %7711 = vmatpush3.msk.msra.mxu0 %vm501_vm0, %v715_v1  ;;  %v677_v10 = vsel %vm674_vm2, %v675_v6, %v676_v7  ;;  %7690 = vmatmul.mubr.msk.f32.vlgmr.msra.gmra.mrb[0].mxu1 %vm452_vm1, %v9152_v9  ;;  %v679_v17 = vsel %vm674_vm2, %v676_v7, %v678_v11  ;;  %v683_v18 = vrot.slane %v9168_v14, 1  ;;  %v9181_v19 = vld [vmem:[%s9132_s26 + $0x48] sm:$0xff]  ;;  %v686_v22 = vrot.slane %v9174_v16, 1  ;;  %v9191_v23 = vld [vmem:[%s9132_s26 + $0x40] sm:$0x3]  ;;  %v9197_v25 = vld [vmem:[%s9132_s26 + $0x50] sm:$0xff] }
  0x21   : > { %7712 = vmatprep.mubr.msk.f32.mxu0 %vm452_vm1, %v677_v10  ;;  %7736 = vmatprep.subr.msk.mxu0 %vm501_vm0, %v952_v4  ;;  %v9186_v20 = vsel %vm674_vm2, %v680_v12, %v681_v13  ;;  %v688_v27 = vrot.slane %v9191_v23, 1  ;;  %v690_v29 = vrot.slane %v9181_v19, 1  ;;  %v691_v30 = vrot.slane %v9197_v25, 1  ;;  %v9213_v31 = vld [vmem:[%s9132_s26 + $0x58] sm:$0x3]  ;;  %v9216_v32 = vld [vmem:[%s9132_s26 + $0x60] sm:$0xff] }
  0x22   : > { %7692 = vmatprep.mubr.msk.f32.mxu1 %vm452_vm1, %v9171_v15  ;;  %v9204_v26 = vsel %vm674_vm2, %v681_v13, %v683_v18  ;;  %v9208_v28 = vsel %vm674_vm2, %v685_v21, %v686_v22  ;;  %v9224_v33 = vld [vmem:[%s9132_s26 + $0x68] sm:$0xff]  ;;  %v693_v35 = vrot.slane %v9213_v31, 1  ;;  %v695_v37 = vrot.slane %v9216_v32, 1  ;;  %v9242_v39 = vld [vmem:[%s9132_s26 + $0x70] sm:$0x3]  ;;  %v9245_v40 = vld [vmem:[%s9132_s26 + $0x78] sm:$0xff] }
  0x23   : > { %v9233_v34 = vsel %vm674_vm2, %v686_v22, %v688_v27  ;;  %v9237_v36 = vsel %vm674_vm2, %v690_v29, %v691_v30  ;;  %v696_v38 = vrot.slane %v9224_v33, 1  ;;  %v9250_v41 = vld [vmem:[%s9132_s26 + $0x80] sm:$0xff]  ;;  %v698_v43 = vrot.slane %v9242_v39, 1  ;;  %v9268_v47 = vld [vmem:[%s9132_s26 + $0x88] sm:$0x3]  ;;  %v9271_v48 = vld [vmem:[%s9132_s26 + $0x90] sm:$0xff] }
  0x24   : > { %7693 = vmatmul.mubr.msk.f32.gmra.mrb[2].mxu1 %vm452_vm1, %v9174_v16  ;;  %v9259_v42 = vsel %vm674_vm2, %v691_v30, %v693_v35  ;;  %v700_v45 = vrot.slane %v9245_v40, 1  ;;  %v701_v46 = vrot.slane %v9250_v41, 1  ;;  %v9276_v49 = vld [vmem:[%s9132_s26 + $0x98] sm:$0xff]  ;;  %v703_v51 = vrot.slane %v9268_v47, 1  ;;  %v9294_v55 = vld [vmem:[%s9132_s26 + $0xa0] sm:$0x3] }
  0x25   : > { %7695 = vmatprep.mubr.msk.f32.mxu1 %vm452_vm1, %v9181_v19  ;;  %v9263_v44 = vsel %vm674_vm2, %v695_v37, %v696_v38  ;;  %v9285_v50 = vsel %vm674_vm2, %v696_v38, %v698_v43  ;;  %v705_v53 = vrot.slane %v9271_v48, 1  ;;  %v706_v54 = vrot.slane %v9276_v49, 1  ;;  %v9297_v56 = vld [vmem:[%s9132_s26 + $0xa8] sm:$0xff]  ;;  %v9302_v57 = vld [vmem:[%s9132_s26 + $0xb0] sm:$0xff]  ;;  %v9320_v63 = vld [vmem:[%s9132_s26 + $0xb8] sm:$0x3] }
  0x26   : > { %v9289_v52 = vsel %vm674_vm2, %v700_v45, %v701_v46  ;;  %v9311_v58 = vsel %vm674_vm2, %v701_v46, %v703_v51  ;;  %v708_v59 = vrot.slane %v9294_v55, 1  ;;  %v710_v61 = vrot.slane %v9297_v56, 1 }
  0x27   : > { %7713 = vmatmul.mubr.msk.f32.vlgmr.msra.gmra.mrb[0].mxu0 %vm452_vm1, %v679_v17  ;;  %v9315_v60 = vsel %vm674_vm2, %v705_v53, %v706_v54  ;;  %v711_v62 = vrot.slane %v9302_v57, 1  ;;  %v912_v6 = vrot.slane %v9135_v2, 2  ;;  %v913_v7 = vrot.slane %v9138_v3, 2 }
  0x28   : > { %7737 = vmatpush3.msk.msra.mxu0 %vm501_vm0, %v952_v4  ;;  %7715 = vmatprep.mubr.msk.f32.mxu0 %vm452_vm1, %v9186_v20  ;;  %v9329_v1 = vsel %vm674_vm2, %v706_v54, %v708_v59  ;;  %v713_v4 = vrot.slane %v9320_v63, 1  ;;  %v915_v11 = vrot.slane %v9142_v5, 2  ;;  %v917_v2 = vrot.slane %v9149_v8, 2 }
  0x29   : > { %7762 = vmatprep.subr.msk.mxu0 %vm501_vm0, %v1148_v24  ;;  %7696 = vmatmul.mubr.msk.f32.gmra.mrb[4].mxu1 %vm452_vm1, %v9197_v25  ;;  %v9335_v10 = vsel %vm674_vm2, %v710_v61, %v711_v62  ;;  %v914_v13 = vsel %vm911_vm3, %v912_v6, %v913_v7  ;;  %v918_v3 = vrot.slane %v9152_v9, 2  ;;  %v920_v5 = vrot.slane %v9168_v14, 2 }
  0x2a   : > { %7698 = vmatprep.mubr.msk.f32.mxu1 %vm452_vm1, %v9216_v32  ;;  %v9343_v12 = vsel %vm674_vm2, %v711_v62, %v713_v4  ;;  %v916_v17 = vsel %vm911_vm3, %v913_v7, %v915_v11  ;;  %v922_v21 = vrot.slane %v9171_v15, 2  ;;  %v923_v22 = vrot.slane %v9174_v16, 2 }
  0x2b   : > { %7716 = vmatmul.mubr.msk.f32.gmra.mrb[2].mxu0 %vm452_vm1, %v9204_v26  ;;  %v9354_v18 = vsel %vm911_vm3, %v917_v2, %v918_v3  ;;  %v1324_v27 = vrot.slane %v9115_v0, 4  ;;  %v9366_v14 = vsel %vm911_vm3, %v918_v3, %v920_v5  ;;  %v925_v29 = vrot.slane %v9191_v23, 2 }
  0x2c   : > { %7718 = vmatprep.mubr.msk.f32.mxu0 %vm452_vm1, %v9208_v28  ;;  %v9370_v30 = vsel %vm911_vm3, %v922_v21, %v923_v22  ;;  %v927_v35 = vrot.slane %v9181_v19, 2  ;;  %v928_v37 = vrot.slane %v9197_v25, 2  ;;  %v930_v23 = vrot.slane %v9213_v31, 2  ;;  %v438_v21 = vld [vmem:[%s9132_s26 + $0xd0] sm:$0x3] }
  0x2d   : > { %7699 = vmatmul.mubr.msk.f32.gmra.mrb[6].mxu1 %vm452_vm1, %v9224_v33  ;;  %v932_v43 = vrot.slane %v9216_v32, 2  ;;  %v933_v45 = vrot.slane %v9224_v33, 2  ;;  %v935_v51 = vrot.slane %v9242_v39, 2  ;;  %v937_v53 = vrot.slane %v9245_v40, 2 }
  0x2e   : > { %7701 = vmatprep.mubr.msk.f32.mxu1 %vm452_vm1, %v9245_v40  ;;  %v9384_v38 = vsel %vm911_vm3, %v927_v35, %v928_v37  ;;  %v9393_v46 = vsel %vm911_vm3, %v928_v37, %v930_v23  ;;  %v938_v54 = vrot.slane %v9250_v41, 2  ;;  %v940_v61 = vrot.slane %v9268_v47, 2  ;;  %v9535_v35 = vld [vmem:[%s10970_s3] sm:$0xff] }
  0x2f   : > { %7719 = vmatmul.mubr.msk.f32.gmra.mrb[4].mxu0 %vm452_vm1, %v9233_v34  ;;  %v9397_v31 = vsel %vm911_vm3, %v932_v43, %v933_v45  ;;  %v9406_v59 = vsel %vm911_vm3, %v933_v45, %v935_v51  ;;  %v942_v62 = vrot.slane %v9271_v48, 2  ;;  %v943_v4 = vrot.slane %v9276_v49, 2  ;;  %7918 = vmatprep.subr.msk.mxu1 %vm2336_vm4, %v9535_v35  ;;  %v443_v45 = vld [vmem:[%s10985_s1 + $0x8] sm:$0x1] }
  0x30   : > { %7721 = vmatprep.mubr.msk.f32.mxu0 %vm452_vm1, %v9237_v36  ;;  %v9410_v39 = vsel %vm911_vm3, %v937_v53, %v938_v54  ;;  %v9419_v6 = vsel %vm911_vm3, %v938_v54, %v940_v61  ;;  %v945_v7 = vrot.slane %v9294_v55, 2  ;;  %v947_v11 = vrot.slane %v9297_v56, 2  ;;  %7919 = vmatpush3.msk.msra.mxu1 %vm2336_vm4, %v9535_v35 }
  0x31   : > { %7702 = vmatmul.mubr.msk.f32.gmra.mrb[8].mxu1 %vm452_vm1, %v9250_v41  ;;  %v9423_v47 = vsel %vm911_vm3, %v942_v62, %v943_v4  ;;  %v950_v3 = vrot.slane %v9320_v63, 2  ;;  %v1497_v63 = vrot.slane %v9115_v0, 5  ;;  %v1665_v5 = vrot.slane %v9115_v0, 6 }
  0x32   : > { %7704 = vmatprep.mubr.msk.f32.mxu1 %vm452_vm1, %v9271_v48  ;;  %v9432_v2 = vsel %vm911_vm3, %v943_v4, %v945_v7  ;;  %v1841_v37 = vrot.slane %v9115_v0, 7  ;;  %v2785_v61 = vrot.slane %v9535_v35, 4  ;;  %v9826_v7 = vld [vmem:[%s10969_s2] ss:$0 sm:$0xff] }
  0x33   : > { %7722 = vmatmul.mubr.msk.f32.gmra.mrb[6].mxu0 %vm452_vm1, %v9259_v42 }
  0x34   : > { %7724 = vmatprep.mubr.msk.f32.mxu0 %vm452_vm1, %v9263_v44 }
  0x35   : > { %7705 = vmatmul.mubr.msk.f32.gmra.mrb[10].mxu1 %vm452_vm1, %v9276_v49 }
  0x36   : > { %7707 = vmatprep.mubr.msk.f32.mxu1 %vm452_vm1, %v9297_v56 }
  0x37   : > { %7725 = vmatmul.mubr.msk.f32.gmra.mrb[8].mxu0 %vm452_vm1, %v9285_v50 }
  0x38   : > { %7727 = vmatprep.mubr.msk.f32.mxu0 %vm452_vm1, %v9289_v52 }
  0x39   : > { %7708 = vmatmul.mubr.msk.f32.gmra.mrb[12].mxu1 %vm452_vm1, %v9302_v57 }
  0x3b   : > { %7728 = vmatmul.mubr.msk.f32.gmra.mrb[10].mxu0 %vm452_vm1, %v9311_v58 }
  0x3c   : > { %7730 = vmatprep.mubr.msk.f32.mxu0 %vm452_vm1, %v9315_v60 }
  0x3f   : > { %7731 = vmatmul.mubr.msk.f32.gmra.mrb[12].mxu0 %vm452_vm1, %v9329_v1 }
  0x40   : > { %7733 = vmatprep.mubr.msk.f32.mxu0 %vm452_vm1, %v9335_v10 }
  0x43   : > { %7734 = vmatmul.mubr.msk.f32.gmra.mrb[14].mxu0 %vm452_vm1, %v9343_v12 }
  0x44   : > { %7738 = vmatprep.mubr.msk.f32.mxu0 %vm452_vm1, %v914_v13  ;;  %v948_v13 = vrot.slane %v9302_v57, 2 }
  0x46   : > { %v9436_v55 = vsel %vm911_vm3, %v947_v11, %v948_v13 }
  0x47   : > { %7739 = vmatmul.mubr.msk.f32.vlgmr.msra.gmra.mrb[0].mxu0 %vm452_vm1, %v916_v17  ;;  %v9443_v17 = vsel %vm911_vm3, %v948_v13, %v950_v3 }
  0x48   : > { %7763 = vmatpush3.msk.msra.mxu0 %vm501_vm0, %v1148_v24  ;;  %7741 = vmatprep.mubr.msk.f32.mxu0 %vm452_vm1, %v9354_v18  ;;  %v9380_v24 = vsel %vm911_vm3, %v923_v22, %v925_v29  ;;  %v1322_v22 = vrot.slane %v438_v21, 1 }
  0x49   : > { %7788 = vmatprep.subr.msk.mxu0 %vm501_vm0, %v1324_v27 }
  0x4b   : > { %7742 = vmatmul.mubr.msk.f32.gmra.mrb[2].mxu0 %vm452_vm1, %v9366_v14 }
  0x4c   : > { %7744 = vmatprep.mubr.msk.f32.mxu0 %vm452_vm1, %v9370_v30 }
  0x4f   : > { %7745 = vmatmul.mubr.msk.f32.gmra.mrb[4].mxu0 %vm452_vm1, %v9380_v24 }
  0x50   : > { %7747 = vmatprep.mubr.msk.f32.mxu0 %vm452_vm1, %v9384_v38 }
  0x53   : > { %7748 = vmatmul.mubr.msk.f32.gmra.mrb[6].mxu0 %vm452_vm1, %v9393_v46 }
  0x54   : > { %7750 = vmatprep.mubr.msk.f32.mxu0 %vm452_vm1, %v9397_v31 }
  0x57   : > { %7751 = vmatmul.mubr.msk.f32.gmra.mrb[8].mxu0 %vm452_vm1, %v9406_v59 }
  0x58   : > { %7753 = vmatprep.mubr.msk.f32.mxu0 %vm452_vm1, %v9410_v39 }
  0x5b   : > { %7754 = vmatmul.mubr.msk.f32.gmra.mrb[10].mxu0 %vm452_vm1, %v9419_v6 }
  0x5c   : > { %7756 = vmatprep.mubr.msk.f32.mxu0 %vm452_vm1, %v9423_v47 }
  0x5f   : > { %7757 = vmatmul.mubr.msk.f32.gmra.mrb[12].mxu0 %vm452_vm1, %v9432_v2 }
  0x60   : > { %7759 = vmatprep.mubr.msk.f32.mxu0 %vm452_vm1, %v9436_v55 }
  0x63   : > { %7760 = vmatmul.mubr.msk.f32.gmra.mrb[14].mxu0 %vm452_vm1, %v9443_v17 }
  0x64   : > { %7764 = vmatprep.mubr.msk.f32.mxu0 %vm452_vm1, %v9149_v8  ;;  %v9477_v8 = vld [vmem:[%s9132_s26 + $0xc0] sm:$0xff] }
  0x65   : > { %v1492_v0 = vrot.slane %v9477_v8, 2 }
  0x67   : > { %7765 = vmatmul.mubr.msk.f32.vlgmr.msra.gmra.mrb[0].mxu0 %vm452_vm1, %v9152_v9  ;;  %v9484_v9 = vld [vmem:[%s9132_s26 + $0xc8] sm:$0xff] }
  0x68   : > { %7789 = vmatpush3.msk.msra.mxu0 %vm501_vm0, %v1324_v27  ;;  %7767 = vmatprep.mubr.msk.f32.mxu0 %vm452_vm1, %v9171_v15 }
  0x69   : > { %7814 = vmatprep.subr.msk.mxu0 %vm501_vm0, %v1497_v63 }
  0x6b   : > { %7768 = vmatmul.mubr.msk.f32.gmra.mrb[2].mxu0 %vm452_vm1, %v9174_v16 }
  0x6c   : > { %7770 = vmatprep.mubr.msk.f32.mxu0 %vm452_vm1, %v9181_v19 }
  0x6f   : > { %7771 = vmatmul.mubr.msk.f32.gmra.mrb[4].mxu0 %vm452_vm1, %v9197_v25 }
  0x70   : > { %7773 = vmatprep.mubr.msk.f32.mxu0 %vm452_vm1, %v9216_v32 }
  0x73   : > { %7774 = vmatmul.mubr.msk.f32.gmra.mrb[6].mxu0 %vm452_vm1, %v9224_v33 }
  0x74   : > { %7776 = vmatprep.mubr.msk.f32.mxu0 %vm452_vm1, %v9245_v40 }
  0x77   : > { %7777 = vmatmul.mubr.msk.f32.gmra.mrb[8].mxu0 %vm452_vm1, %v9250_v41 }
  0x78   : > { %7779 = vmatprep.mubr.msk.f32.mxu0 %vm452_vm1, %v9271_v48 }
  0x7b   : > { %7780 = vmatmul.mubr.msk.f32.gmra.mrb[10].mxu0 %vm452_vm1, %v9276_v49 }
  0x7c   : > { %7782 = vmatprep.mubr.msk.f32.mxu0 %vm452_vm1, %v9297_v56 }
  0x7f   : > { %7783 = vmatmul.mubr.msk.f32.gmra.mrb[12].mxu0 %vm452_vm1, %v9302_v57 }
  0x80   : > { %7785 = vmatprep.mubr.msk.f32.mxu0 %vm452_vm1, %v9477_v8 }
  0x83   : > { %7786 = vmatmul.mubr.msk.f32.gmra.mrb[14].mxu0 %vm452_vm1, %v9484_v9 }
  0x84   : > { %7790 = vmatprep.mubr.msk.f32.mxu0 %vm452_vm1, %v9186_v20  ;;  %v1319_v20 = vrot.slane %v9477_v8, 1 }
  0x87   : > { %7791 = vmatmul.mubr.msk.f32.vlgmr.msra.gmra.mrb[0].mxu0 %vm452_vm1, %v9204_v26  ;;  %v1320_v26 = vrot.slane %v9484_v9, 1 }
  0x88   : > { %7815 = vmatpush3.msk.msra.mxu0 %vm501_vm0, %v1497_v63  ;;  %7793 = vmatprep.mubr.msk.f32.mxu0 %vm452_vm1, %v9208_v28 }
  0x89   : > { %7840 = vmatprep.subr.msk.mxu0 %vm501_vm0, %v1665_v5  ;;  %v9521_v27 = vsel %vm674_vm2, %v1319_v20, %v1320_v26  ;;  %v9528_v29 = vsel %vm674_vm2, %v1320_v26, %v1322_v22 }
  0x8b   : > { %7794 = vmatmul.mubr.msk.f32.gmra.mrb[2].mxu0 %vm452_vm1, %v9233_v34 }
  0x8c   : > { %7796 = vmatprep.mubr.msk.f32.mxu0 %vm452_vm1, %v9237_v36 }
  0x8f   : > { %7797 = vmatmul.mubr.msk.f32.gmra.mrb[4].mxu0 %vm452_vm1, %v9259_v42 }
  0x90   : > { %7799 = vmatprep.mubr.msk.f32.mxu0 %vm452_vm1, %v9263_v44 }
  0x93   : > { %7800 = vmatmul.mubr.msk.f32.gmra.mrb[6].mxu0 %vm452_vm1, %v9285_v50 }
  0x94   : > { %7802 = vmatprep.mubr.msk.f32.mxu0 %vm452_vm1, %v9289_v52 }
  0x97   : > { %7803 = vmatmul.mubr.msk.f32.gmra.mrb[8].mxu0 %vm452_vm1, %v9311_v58 }
  0x98   : > { %7805 = vmatprep.mubr.msk.f32.mxu0 %vm452_vm1, %v9315_v60 }
  0x9b   : > { %7806 = vmatmul.mubr.msk.f32.gmra.mrb[10].mxu0 %vm452_vm1, %v9329_v1 }
  0x9c   : > { %7808 = vmatprep.mubr.msk.f32.mxu0 %vm452_vm1, %v9335_v10 }
  0x9f   : > { %7809 = vmatmul.mubr.msk.f32.gmra.mrb[12].mxu0 %vm452_vm1, %v9343_v12 }
  0xa0   : > { %7811 = vmatprep.mubr.msk.f32.mxu0 %vm452_vm1, %v9521_v27 }
  0xa3   : > { %7812 = vmatmul.mubr.msk.f32.gmra.mrb[14].mxu0 %vm452_vm1, %v9528_v29 }
  0xa4   : > { %7816 = vmatprep.mubr.msk.f32.mxu0 %vm452_vm1, %v9354_v18  ;;  %v1493_v18 = vrot.slane %v9484_v9, 2 }
  0xa6   : > { %v9573_v23 = vsel %vm911_vm3, %v1492_v0, %v1493_v18 }
  0xa7   : > { %7817 = vmatmul.mubr.msk.f32.vlgmr.msra.gmra.mrb[0].mxu0 %vm452_vm1, %v9366_v14  ;;  %v1495_v14 = vrot.slane %v438_v21, 2 }
  0xa8   : > { %7841 = vmatpush3.msk.msra.mxu0 %vm501_vm0, %v1665_v5  ;;  %7819 = vmatprep.mubr.msk.f32.mxu0 %vm452_vm1, %v9370_v30 }
  0xa9   : > { %7866 = vmatprep.subr.msk.mxu0 %vm501_vm0, %v1841_v37  ;;  %v9580_v43 = vsel %vm911_vm3, %v1493_v18, %v1495_v14 }
  0xab   : > { %7820 = vmatmul.mubr.msk.f32.gmra.mrb[2].mxu0 %vm452_vm1, %v9380_v24 }
  0xac   : > { %7822 = vmatprep.mubr.msk.f32.mxu0 %vm452_vm1, %v9384_v38 }
  0xaf   : > { %7823 = vmatmul.mubr.msk.f32.gmra.mrb[4].mxu0 %vm452_vm1, %v9393_v46 }
  0xb0   : > { %7825 = vmatprep.mubr.msk.f32.mxu0 %vm452_vm1, %v9397_v31 }
  0xb3   : > { %7826 = vmatmul.mubr.msk.f32.gmra.mrb[6].mxu0 %vm452_vm1, %v9406_v59 }
  0xb4   : > { %7828 = vmatprep.mubr.msk.f32.mxu0 %vm452_vm1, %v9410_v39 }
  0xb7   : > { %7829 = vmatmul.mubr.msk.f32.gmra.mrb[8].mxu0 %vm452_vm1, %v9419_v6 }
  0xb8   : > { %7831 = vmatprep.mubr.msk.f32.mxu0 %vm452_vm1, %v9423_v47 }
  0xbb   : > { %7832 = vmatmul.mubr.msk.f32.gmra.mrb[10].mxu0 %vm452_vm1, %v9432_v2 }
  0xbc   : > { %7834 = vmatprep.mubr.msk.f32.mxu0 %vm452_vm1, %v9436_v55 }
  0xbf   : > { %7835 = vmatmul.mubr.msk.f32.gmra.mrb[12].mxu0 %vm452_vm1, %v9443_v17 }
  0xc0   : > { %7837 = vmatprep.mubr.msk.f32.mxu0 %vm452_vm1, %v9573_v23 }
  0xc3   : > { %7838 = vmatmul.mubr.msk.f32.gmra.mrb[14].mxu0 %vm452_vm1, %v9580_v43 }
  0xc4   : > { %7842 = vmatprep.mubr.msk.f32.mxu0 %vm452_vm1, %v9171_v15  ;;  %v439_v15 = vld [vmem:[%s9132_s26 + $0xd8] sm:$0xff] }
  0xc7   : > { %7843 = vmatmul.mubr.msk.f32.vlgmr.msra.gmra.mrb[0].mxu0 %vm452_vm1, %v9174_v16  ;;  %v440_v16 = vld [vmem:[%s9132_s26 + $0xe0] sm:$0xff] }
  0xc8   : > { %7867 = vmatpush3.msk.msra.mxu0 %vm501_vm0, %v1841_v37  ;;  %7845 = vmatprep.mubr.msk.f32.mxu0 %vm452_vm1, %v9181_v19  ;;  %v1836_v19 = vrot.slane %v439_v15, 1 }
  0xc9   : > { %7892 = vmatprep.subr.msk.mxu0 %vm501_vm0, %v443_v45 }
  0xcb   : > { %7846 = vmatmul.mubr.msk.f32.gmra.mrb[2].mxu0 %vm452_vm1, %v9197_v25  ;;  %v1837_v25 = vrot.slane %v440_v16, 1 }
  0xcc   : > { %7848 = vmatprep.mubr.msk.f32.mxu0 %vm452_vm1, %v9216_v32 }
  0xcf   : > { %7849 = vmatmul.mubr.msk.f32.gmra.mrb[4].mxu0 %vm452_vm1, %v9224_v33  ;;  %v1838_v33 = vsel %vm674_vm2, %v1836_v19, %v1837_v25 }
  0xd0   : > { %7851 = vmatprep.mubr.msk.f32.mxu0 %vm452_vm1, %v9245_v40  ;;  %v2010_v40 = vrot.slane %v440_v16, 2 }
  0xd3   : > { %7852 = vmatmul.mubr.msk.f32.gmra.mrb[6].mxu0 %vm452_vm1, %v9250_v41 }
  0xd4   : > { %7854 = vmatprep.mubr.msk.f32.mxu0 %vm452_vm1, %v9271_v48 }
  0xd7   : > { %7855 = vmatmul.mubr.msk.f32.gmra.mrb[8].mxu0 %vm452_vm1, %v9276_v49  ;;  %v8993_v49 = vmov 0.0  }
  0xd8   : > { %7857 = vmatprep.mubr.msk.f32.mxu0 %vm452_vm1, %v9297_v56  ;;  %2204 = vst.msk [vmem:[#allocation2 + $0x20] sm:$0xff] %vm2198_vm5, %v8993_v49  ;;  %2199 = vst.msk [vmem:[#allocation2] sm:$0xff] %vm2198_vm5, %v8993_v49 }
  0xd9   : > { %2200 = vst.msk [vmem:[#allocation2 + $0x8] sm:$0xff] %vm2198_vm5, %v8993_v49  ;;  %2203 = vst.msk [vmem:[#allocation2 + $0x18] sm:$0xff] %vm2198_vm5, %v8993_v49 }
  0xda   : > { %2206 = vst.msk [vmem:[#allocation2 + $0x30] sm:$0xff] %vm2198_vm5, %v8993_v49  ;;  %2207 = vst.msk [vmem:[#allocation2 + $0x38] sm:$0xff] %vm2198_vm5, %v8993_v49 }
  0xdb   : > { %7858 = vmatmul.mubr.msk.f32.gmra.mrb[10].mxu0 %vm452_vm1, %v9302_v57  ;;  %2209 = vst.msk [vmem:[#allocation2 + $0x48] sm:$0xff] %vm2198_vm5, %v8993_v49  ;;  %2210 = vst.msk [vmem:[#allocation2 + $0x50] sm:$0xff] %vm2198_vm5, %v8993_v49 }
  0xdc   : > { %7860 = vmatprep.mubr.msk.f32.mxu0 %vm452_vm1, %v9477_v8  ;;  %2212 = vst.msk [vmem:[#allocation2 + $0x60] sm:$0xff] %vm2198_vm5, %v8993_v49  ;;  %2213 = vst.msk [vmem:[#allocation2 + $0x68] sm:$0xff] %vm2198_vm5, %v8993_v49 }
  0xdd   : > { %2215 = vst.msk [vmem:[#allocation2 + $0x78] sm:$0xff] %vm2198_vm5, %v8993_v49  ;;  %2216 = vst.msk [vmem:[#allocation2 + $0x80] sm:$0xff] %vm2198_vm5, %v8993_v49 }
  0xde   : > { %2218 = vst.msk [vmem:[#allocation2 + $0x90] sm:$0xff] %vm2198_vm5, %v8993_v49  ;;  %2219 = vst.msk [vmem:[#allocation2 + $0x98] sm:$0xff] %vm2198_vm5, %v8993_v49 }
  0xdf   : > { %7861 = vmatmul.mubr.msk.f32.gmra.mrb[12].mxu0 %vm452_vm1, %v9484_v9  ;;  %2221 = vst.msk [vmem:[#allocation2 + $0xa8] sm:$0xff] %vm2198_vm5, %v8993_v49  ;;  %2222 = vst.msk [vmem:[#allocation2 + $0xb0] sm:$0xff] %vm2198_vm5, %v8993_v49 }
  0xe0   : > { %7863 = vmatprep.mubr.msk.f32.mxu0 %vm452_vm1, %v439_v15  ;;  %2224 = vst.msk [vmem:[#allocation2 + $0xc0] sm:$0xff] %vm2198_vm5, %v8993_v49  ;;  %2225 = vst.msk [vmem:[#allocation2 + $0xc8] sm:$0xff] %vm2198_vm5, %v8993_v49 }
  0xe1   : > { %2227 = vst.msk [vmem:[#allocation2 + $0xd8] sm:$0xff] %vm2198_vm5, %v8993_v49  ;;  %2228 = vst.msk [vmem:[#allocation2 + $0xe0] sm:$0xff] %vm2198_vm5, %v8993_v49 }
  0xe2   : > { %4031 = vst.msk [vmem:[#allocation3] sm:$0xff] %vm2198_vm5, %v8993_v49  ;;  %4033 = vst.msk [vmem:[#allocation3 + $0x10] sm:$0xff] %vm2198_vm5, %v8993_v49 }
  0xe3   : > { %7864 = vmatmul.mubr.msk.f32.gmra.mrb[14].mxu0 %vm452_vm1, %v440_v16  ;;  %4035 = vst.msk [vmem:[#allocation3 + $0x20] sm:$0xff] %vm2198_vm5, %v8993_v49  ;;  %4037 = vst.msk [vmem:[#allocation3 + $0x30] sm:$0xff] %vm2198_vm5, %v8993_v49 }
  0xe4   : > { %7868 = vmatprep.mubr.msk.f32.mxu0 %vm452_vm1, %v9208_v28  ;;  %v441_v28 = vld [vmem:[%s9132_s26 + $0xe8] sm:$0x3]  ;;  %4039 = vst.msk [vmem:[#allocation3 + $0x40] sm:$0xff] %vm2198_vm5, %v8993_v49  ;;  %4041 = vst.msk [vmem:[#allocation3 + $0x50] sm:$0xff] %vm2198_vm5, %v8993_v49  ;;  %s10980_s26 = smov 32  }
  0xe5   : > { %v1839_v32 = vrot.slane %v441_v28, 1  ;;  %v2012_v41 = vrot.slane %v441_v28, 2  ;;  %4043 = vst.msk [vmem:[#allocation3 + $0x60] sm:$0xff] %vm2198_vm5, %v8993_v49  ;;  %4045 = vst.msk [vmem:[#allocation3 + $0x70] sm:$0xff] %vm2198_vm5, %v8993_v49 }
  0xe6   : > { %4047 = vst.msk [vmem:[#allocation3 + $0x80] sm:$0xff] %vm2198_vm5, %v8993_v49  ;;  %4049 = vst.msk [vmem:[#allocation3 + $0x90] sm:$0xff] %vm2198_vm5, %v8993_v49 }
  0xe7   : > { %7869 = vmatmul.mubr.msk.f32.vlgmr.msra.gmra.mrb[0].mxu0 %vm452_vm1, %v9233_v34  ;;  %v1840_v34 = vsel %vm674_vm2, %v1837_v25, %v1839_v32  ;;  %2205 = vst.msk [vmem:[#allocation2 + $0x28] sm:$0x3] %vm2201_vm6, %v8993_v49  ;;  %2202 = vst.msk [vmem:[#allocation2 + $0x10] sm:$0x3] %vm2201_vm6, %v8993_v49 }
  0xe8   : > { %7893 = vmatpush3.msk.msra.mxu0 %vm501_vm0, %v443_v45  ;;  %7871 = vmatprep.mubr.msk.f32.mxu0 %vm452_vm1, %v9237_v36  ;;  %v2009_v36 = vrot.slane %v439_v15, 2  ;;  %2208 = vst.msk [vmem:[#allocation2 + $0x40] sm:$0x3] %vm2201_vm6, %v8993_v49  ;;  %2211 = vst.msk [vmem:[#allocation2 + $0x58] sm:$0x3] %vm2201_vm6, %v8993_v49  ;;  %vm5467_vm0 = vcmask 1044484  }
  0xe9   : > { %2214 = vst.msk [vmem:[#allocation2 + $0x70] sm:$0x3] %vm2201_vm6, %v8993_v49  ;;  %2217 = vst.msk [vmem:[#allocation2 + $0x88] sm:$0x3] %vm2201_vm6, %v8993_v49 }
  0xea   : > { %2220 = vst.msk [vmem:[#allocation2 + $0xa0] sm:$0x3] %vm2201_vm6, %v8993_v49  ;;  %2223 = vst.msk [vmem:[#allocation2 + $0xb8] sm:$0x3] %vm2201_vm6, %v8993_v49 }
  0xeb   : > { %7872 = vmatmul.mubr.msk.f32.gmra.mrb[2].mxu0 %vm452_vm1, %v9259_v42  ;;  %v2011_v42 = vsel %vm911_vm3, %v2009_v36, %v2010_v40  ;;  %2226 = vst.msk [vmem:[#allocation2 + $0xd0] sm:$0x3] %vm2201_vm6, %v8993_v49  ;;  %2229 = vst.msk [vmem:[#allocation2 + $0xe8] sm:$0x3] %vm2201_vm6, %v8993_v49 }
  0xec   : > { %7874 = vmatprep.mubr.msk.f32.mxu0 %vm452_vm1, %v9263_v44  ;;  %v2013_v44 = vsel %vm911_vm3, %v2010_v40, %v2012_v41  ;;  %4032 = vst.msk [vmem:[#allocation3 + $0x8] sm:$0x3] %vm2201_vm6, %v8993_v49  ;;  %4034 = vst.msk [vmem:[#allocation3 + $0x18] sm:$0x3] %vm2201_vm6, %v8993_v49 }
  0xed   : > { %4036 = vst.msk [vmem:[#allocation3 + $0x28] sm:$0x3] %vm2201_vm6, %v8993_v49  ;;  %4038 = vst.msk [vmem:[#allocation3 + $0x38] sm:$0x3] %vm2201_vm6, %v8993_v49 }
  0xee   : > { %4040 = vst.msk [vmem:[#allocation3 + $0x48] sm:$0x3] %vm2201_vm6, %v8993_v49  ;;  %4042 = vst.msk [vmem:[#allocation3 + $0x58] sm:$0x3] %vm2201_vm6, %v8993_v49 }
  0xef   : > { %7875 = vmatmul.mubr.msk.f32.gmra.mrb[4].mxu0 %vm452_vm1, %v9285_v50  ;;  %4044 = vst.msk [vmem:[#allocation3 + $0x68] sm:$0x3] %vm2201_vm6, %v8993_v49  ;;  %4046 = vst.msk [vmem:[#allocation3 + $0x78] sm:$0x3] %vm2201_vm6, %v8993_v49 }
  0xf0   : > { %7877 = vmatprep.mubr.msk.f32.mxu0 %vm452_vm1, %v9289_v52  ;;  %4048 = vst.msk [vmem:[#allocation3 + $0x88] sm:$0x3] %vm2201_vm6, %v8993_v49  ;;  %4050 = vst.msk [vmem:[#allocation3 + $0x98] sm:$0x3] %vm2201_vm6, %v8993_v49  ;;  %vm5832_vm6 = vcmask 261120  }
  0xf3   : > { %7878 = vmatmul.mubr.msk.f32.gmra.mrb[6].mxu0 %vm452_vm1, %v9311_v58  ;;  %v9687_v48 = vpop.f32.mrb[0].mxu1  ;;  %v2247_v58 = vld [vmem:[#allocation2] sm:$0xff] }
  0xf4   : > { %7880 = vmatprep.mubr.msk.f32.mxu0 %vm452_vm1, %v9315_v60  ;;  %v581_v50 = vpop.f32.mrb[1].mxu1  ;;  %7920 = vmatprep.mubr.msk.f32.mxu1 %vm2198_vm5, %v2247_v58  ;;  %v2509_v54 = vrot.slane %v2247_v58, 1  ;;  %v2745_v62 = vrot.slane %v2247_v58, 2  ;;  %v653_v13 = vadd.f32 %v9687_v48, %v9826_v7 }
  0xf7   : > { %7881 = vmatmul.mubr.msk.f32.gmra.mrb[8].mxu0 %vm452_vm1, %v9329_v1  ;;  %v7694_v52 = vpop.f32.mrb[2].mxu1  ;;  %v9790_v1 = vld [vmem:[#allocation2 + $0x8] sm:$0xff] }
  0xf8   : > { %7883 = vmatprep.mubr.msk.f32.mxu0 %vm452_vm1, %v9335_v10  ;;  %v591_v56 = vpop.f32.mrb[3].mxu1  ;;  %7921 = vmatmul.mubr.msk.f32.vlgmr.msra.gmra.mrb[14].mxu1 %vm2198_vm5, %v9790_v1  ;;  %v2746_v4 = vrot.slane %v9790_v1, 2  ;;  %v655_v5 = vadd.f32 %v7694_v52, %v9826_v7 }
  0xf9   : > { %v654_v21 = vadd.f32 %v9826_v7, %v591_v56 }
  0xfb   : > { %7884 = vmatmul.mubr.msk.f32.gmra.mrb[10].mxu0 %vm452_vm1, %v9343_v12  ;;  %v2549_v12 = vrot.slane %v9535_v35, 2 }
  0xfc   : > { %7886 = vmatprep.mubr.msk.f32.mxu0 %vm452_vm1, %v9521_v27  ;;  %v7697_v57 = vpop.f32.mrb[4].mxu1 }
  0xfd   : > { %v601_v60 = vpop.f32.mrb[5].mxu1  ;;  %7944 = vmatprep.subr.msk.mxu1 %vm2336_vm4, %v2549_v12  ;;  %v657_v0 = vadd.f32 %v7697_v57, %v9826_v7 }
  0xfe   : > { %7945 = vmatpush3.msk.msra.mxu1 %vm2336_vm4, %v2549_v12 }
  0xff   : > { %7887 = vmatmul.mubr.msk.f32.gmra.mrb[12].mxu0 %vm452_vm1, %v9528_v29  ;;  %7970 = vmatprep.subr.msk.mxu1 %vm2336_vm4, %v2785_v61 }
 0x100   : > { %7889 = vmatprep.mubr.msk.f32.mxu0 %vm452_vm1, %v1838_v33  ;;  %v7700_v10 = vpop.f32.mrb[6].mxu1 }
 0x101   : > { %v659_v19 = vadd.f32 %v7700_v10, %v9826_v7 }
 0x103   : > { %7890 = vmatmul.mubr.msk.f32.gmra.mrb[14].mxu0 %vm452_vm1, %v1840_v34 }
 0x104   : > { %7894 = vmatprep.mubr.msk.f32.mxu0 %vm452_vm1, %v9370_v30  ;;  %v611_v30 = vpop.f32.mrb[7].mxu1 }
 0x105   : > { %v658_v34 = vadd.f32 %v9826_v7, %v611_v30 }
 0x107   : > { %7895 = vmatmul.mubr.msk.f32.vlgmr.msra.gmra.mrb[0].mxu0 %vm452_vm1, %v9380_v24  ;;  %v7703_v24 = vpop.f32.mrb[8].mxu1 }
 0x108   : > { %7897 = vmatprep.mubr.msk.f32.mxu0 %vm452_vm1, %v9384_v38  ;;  %v9797_v38 = vpop.f32.mrb[9].mxu1 }
 0x109   : > { %v660_v57 = vadd.f32 %v9826_v7, %v9797_v38 }
 0x10b   : > { %7898 = vmatmul.mubr.msk.f32.gmra.mrb[2].mxu0 %vm452_vm1, %v9393_v46  ;;  %v9799_v46 = vpop.f32.mrb[10].mxu1 }
 0x10c   : > { %7900 = vmatprep.mubr.msk.f32.mxu0 %vm452_vm1, %v9397_v31  ;;  %v9801_v51 = vpop.f32.mrb[11].mxu1  ;;  %v663_v30 = vadd.f32 %v9799_v46, %v9826_v7 }
 0x10d   : > { %v9803_v31 = vpop.f32.mrb[12].mxu1 }
 0x10e   : > { %v9805_v53 = vpop.f32.mrb[13].mxu1 }
 0x10f   : > { %7901 = vmatmul.mubr.msk.f32.gmra.mrb[4].mxu0 %vm452_vm1, %v9406_v59  ;;  %v2510_v59 = vrot.slane %v9790_v1, 1 }
 0x110   : > { %7903 = vmatprep.mubr.msk.f32.mxu0 %vm452_vm1, %v9410_v39 }
 0x111   : > { %v9812_v39 = vsel %vm674_vm2, %v2509_v54, %v2510_v59 }
 0x113   : > { %7904 = vmatmul.mubr.msk.f32.gmra.mrb[6].mxu0 %vm452_vm1, %v9419_v6  ;;  %v9821_v6 = vsel %vm911_vm3, %v2745_v62, %v2746_v4 }
 0x114   : > { %7906 = vmatprep.mubr.msk.f32.mxu0 %vm452_vm1, %v9423_v47 }
 0x117   : > { %7907 = vmatmul.mubr.msk.f32.gmra.mrb[8].mxu0 %vm452_vm1, %v9432_v2 }
 0x118   : > { %7909 = vmatprep.mubr.msk.f32.mxu0 %vm452_vm1, %v9436_v55  ;;  %v652_v55 = vadd.f32 %v9826_v7, %v581_v50 }
 0x11b   : > { %7910 = vmatmul.mubr.msk.f32.gmra.mrb[10].mxu0 %vm452_vm1, %v9443_v17 }
 0x11c   : > { %7912 = vmatprep.mubr.msk.f32.mxu0 %vm452_vm1, %v9573_v23  ;;  %v656_v23 = vadd.f32 %v9826_v7, %v601_v60 }
 0x11f   : > { %7913 = vmatmul.mubr.msk.f32.gmra.mrb[12].mxu0 %vm452_vm1, %v9580_v43 }
 0x120   : > { %7915 = vmatprep.mubr.msk.f32.mxu0 %vm452_vm1, %v2011_v42 }
 0x123   : > { %7916 = vmatmul.mubr.msk.f32.gmra.mrb[14].mxu0 %vm452_vm1, %v2013_v44  ;;  %v661_v44 = vadd.f32 %v7703_v24, %v9826_v7  ;;  %vm5470_vm1 = vcmask 1045509  }
 0x1da   : > { %v7896_v47 = vpop.f32.mrb[0].mxu0 }
 0x1db   : > { %v8453_v11 = vadd.f32 %v7896_v47, %v9826_v7  ;;  %v2087_v2 = vpop.f32.mrb[1].mxu0  ;;  %v662_v47 = vadd.f32 %v9826_v7, %v9801_v51 }
 0x1dc   : > { %v8454_v3 = vadd.f32 %v9826_v7, %v2087_v2 }
 0x1dd   : > { %v2183_v17 = vmax.f32 %v8453_v11, 0.0 }
 0x1de   : > { %v2182_v63 = vmax.f32 %v8454_v3, 0.0  ;;  %v7899_v8 = vpop.f32.mrb[2].mxu0 }
 0x1df   : > { %2232 = vst.msk [vmem:[#allocation2 + $0x21] sm:$0xff] %vm2198_vm5, %v2183_v17  ;;  %v8456_v9 = vadd.f32 %v7899_v8, %v653_v13  ;;  %v2097_v20 = vpop.f32.mrb[3].mxu0  ;;  %v664_v8 = vadd.f32 %v9826_v7, %v9805_v53 }
 0x1e0   : > { %2231 = vst.msk [vmem:[#allocation2 + $0x19] sm:$0xff] %vm2198_vm5, %v2182_v63  ;;  %v8458_v26 = vadd.f32 %v2097_v20, %v652_v55  ;;  %v665_v55 = vadd.f32 %v9803_v31, %v9826_v7 }
 0x1e1   : > { %v2185_v22 = vmax.f32 %v8456_v9, 0.0 }
 0x1e2   : > { %v2184_v27 = vmax.f32 %v8458_v26, 0.0  ;;  %v7902_v29 = vpop.f32.mrb[4].mxu0 }
 0x1e3   : > { %2234 = vst.msk [vmem:[#allocation2 + $0x39] sm:$0xff] %vm2198_vm5, %v2185_v22  ;;  %v8460_v37 = vadd.f32 %v7902_v29, %v655_v5  ;;  %v2107_v18 = vpop.f32.mrb[5].mxu0 }
 0x1e4   : > { %2233 = vst.msk [vmem:[#allocation2 + $0x31] sm:$0xff] %vm2198_vm5, %v2184_v27  ;;  %v8462_v14 = vadd.f32 %v2107_v18, %v654_v21 }
 0x1e5   : > { %v2187_v43 = vmax.f32 %v8460_v37, 0.0 }
 0x1e6   : > { %v2186_v45 = vmax.f32 %v8462_v14, 0.0  ;;  %v7905_v15 = vpop.f32.mrb[6].mxu0 }
 0x1e7   : > { %2236 = vst.msk [vmem:[#allocation2 + $0x51] sm:$0xff] %vm2198_vm5, %v2187_v43  ;;  %v8464_v16 = vadd.f32 %v7905_v15, %v657_v0  ;;  %v2117_v25 = vpop.f32.mrb[7].mxu0  ;;  %v9843_v28 = vld [vmem:[#allocation2 + $0x18] sm:$0xff]  ;;  %v9845_v32 = vld [vmem:[#allocation2 + $0x20] sm:$0xff]  ;;  %v9909_v0 = vld [vmem:[#allocation2 + $0x10] sm:$0x3] }
 0x1e8   : > { %2235 = vst.msk [vmem:[#allocation2 + $0x49] sm:$0xff] %vm2198_vm5, %v2186_v45  ;;  %v8466_v33 = vadd.f32 %v2117_v25, %v656_v23  ;;  %7923 = vmatprep.mubr.msk.f32.mxu1 %vm2198_vm5, %v9843_v28  ;;  %v2512_v18 = vrot.slane %v9909_v0, 1  ;;  %v2514_v43 = vrot.slane %v9843_v28, 1  ;;  %v2515_v45 = vrot.slane %v9845_v32, 1  ;;  %v9927_v15 = vld [vmem:[#allocation2 + $0x28] sm:$0x3] }
 0x1e9   : > { %v2189_v36 = vmax.f32 %v8464_v16, 0.0  ;;  %7924 = vmatmul.mubr.msk.f32.gmra.mrb[16].mxu1 %vm2198_vm5, %v9845_v32  ;;  %v2517_v25 = vrot.slane %v9927_v15, 1 }
 0x1ea   : > { %v2188_v40 = vmax.f32 %v8466_v33, 0.0  ;;  %v7908_v41 = vpop.f32.mrb[8].mxu0  ;;  %v2513_v16 = vsel %vm674_vm2, %v2510_v59, %v2512_v18  ;;  %v9938_v33 = vsel %vm674_vm2, %v2514_v43, %v2515_v45  ;;  %v2748_v18 = vrot.slane %v9909_v0, 2  ;;  %v10055_v0 = vld [vmem:[%s10970_s3 + $0x8] sm:$0xff] }
 0x1eb   : > { %2238 = vst.msk [vmem:[#allocation2 + $0x69] sm:$0xff] %vm2198_vm5, %v2189_v36  ;;  %v8468_v42 = vadd.f32 %v7908_v41, %v659_v19  ;;  %v2127_v48 = vpop.f32.mrb[9].mxu0  ;;  %v9855_v50 = vld [vmem:[#allocation2 + $0x30] sm:$0xff]  ;;  %v9857_v52 = vld [vmem:[#allocation2 + $0x38] sm:$0xff]  ;;  %v2981_v19 = vrot.slane %v9535_v35, 6  ;;  %v9953_v59 = vsel %vm674_vm2, %v2515_v45, %v2517_v25  ;;  %v2750_v45 = vrot.slane %v9843_v28, 2 }
 0x1ec   : > { %2237 = vst.msk [vmem:[#allocation2 + $0x61] sm:$0xff] %vm2198_vm5, %v2188_v40  ;;  %v8470_v56 = vadd.f32 %v2127_v48, %v658_v34  ;;  %7926 = vmatprep.mubr.msk.f32.mxu1 %vm2198_vm5, %v9855_v50  ;;  %v2519_v34 = vrot.slane %v9855_v50, 1  ;;  %v2520_v36 = vrot.slane %v9857_v52, 1  ;;  %v9942_v40 = vld [vmem:[#allocation2 + $0x40] sm:$0x3]  ;;  %v2749_v25 = vsel %vm911_vm3, %v2746_v4, %v2748_v18 }
 0x1ed   : > { %v2191_v58 = vmax.f32 %v8468_v42, 0.0  ;;  %7927 = vmatmul.mubr.msk.f32.gmra.mrb[18].mxu1 %vm2198_vm5, %v9857_v52  ;;  %v2758_v4 = vrot.slane %v9942_v40, 2 }
 0x1ee   : > { %v2190_v60 = vmax.f32 %v8470_v56, 0.0  ;;  %v7911_v10 = vpop.f32.mrb[10].mxu0  ;;  %v9959_v41 = vsel %vm674_vm2, %v2519_v34, %v2520_v36  ;;  %v2753_v34 = vrot.slane %v9927_v15, 2 }
 0x1ef   : > { %2240 = vst.msk [vmem:[#allocation2 + $0x81] sm:$0xff] %vm2198_vm5, %v2191_v58  ;;  %v8472_v12 = vadd.f32 %v7911_v10, %v661_v44  ;;  %v2137_v24 = vpop.f32.mrb[11].mxu0  ;;  %v9869_v54 = vld [vmem:[#allocation2 + $0x48] sm:$0xff]  ;;  %v9871_v62 = vld [vmem:[#allocation2 + $0x50] sm:$0xff]  ;;  %v9963_v44 = vld [vmem:[#allocation2 + $0x58] sm:$0x3] }
 0x1f0   : > { %2239 = vst.msk [vmem:[#allocation2 + $0x79] sm:$0xff] %vm2198_vm5, %v2190_v60  ;;  %v8474_v38 = vadd.f32 %v2137_v24, %v660_v57  ;;  %7929 = vmatprep.mubr.msk.f32.mxu1 %vm2198_vm5, %v9869_v54  ;;  %v2525_v42 = vrot.slane %v9871_v62, 1  ;;  %v2527_v56 = vrot.slane %v9963_v44, 1  ;;  %v2760_v35 = vrot.slane %v9869_v54, 2 }
 0x1f1   : > { %v2193_v11 = vmax.f32 %v8472_v12, 0.0  ;;  %7930 = vmatmul.mubr.msk.f32.gmra.mrb[20].mxu1 %vm2198_vm5, %v9871_v62 }
 0x1f2   : > { %v2192_v13 = vmax.f32 %v8474_v38, 0.0  ;;  %v7914_v46 = vpop.f32.mrb[12].mxu0  ;;  %v9978_v10 = vld [vmem:[#allocation2 + $0x70] sm:$0x3]  ;;  %v9983_v12 = vsel %vm674_vm2, %v2525_v42, %v2527_v56 }
 0x1f3   : > { %2242 = vst.msk [vmem:[#allocation2 + $0x99] sm:$0xff] %vm2198_vm5, %v2193_v11  ;;  %v8476_v2 = vadd.f32 %v7914_v46, %v663_v30  ;;  %v2147_v3 = vpop.f32.mrb[13].mxu0  ;;  %v9883_v17 = vld [vmem:[#allocation2 + $0x60] sm:$0xff]  ;;  %v9885_v63 = vld [vmem:[#allocation2 + $0x68] sm:$0xff]  ;;  %v2532_v30 = vrot.slane %v9978_v10, 1 }
 0x1f4   : > { %2241 = vst.msk [vmem:[#allocation2 + $0x91] sm:$0xff] %vm2198_vm5, %v2192_v13  ;;  %v8478_v51 = vadd.f32 %v2147_v3, %v662_v47  ;;  %7932 = vmatprep.mubr.msk.f32.mxu1 %vm2198_vm5, %v9883_v17  ;;  %v2529_v58 = vrot.slane %v9883_v17, 1  ;;  %v2530_v60 = vrot.slane %v9885_v63, 1  ;;  %v2765_v56 = vrot.slane %v9883_v17, 2 }
 0x1f5   : > { %v2195_v9 = vmax.f32 %v8476_v2, 0.0  ;;  %7933 = vmatmul.mubr.msk.f32.gmra.mrb[22].mxu1 %vm2198_vm5, %v9885_v63 }
 0x1f6   : > { %v2194_v5 = vmax.f32 %v8478_v51, 0.0  ;;  %v7917_v20 = vpop.f32.mrb[14].mxu0  ;;  %v9989_v24 = vsel %vm674_vm2, %v2529_v58, %v2530_v60  ;;  %v9993_v11 = vld [vmem:[#allocation2 + $0x88] sm:$0x3]  ;;  %v9998_v13 = vsel %vm674_vm2, %v2530_v60, %v2532_v30  ;;  %v2766_v58 = vrot.slane %v9885_v63, 2 }
 0x1f7   : > { %2244 = vst.msk [vmem:[#allocation2 + $0xb1] sm:$0xff] %vm2198_vm5, %v2195_v9  ;;  %v8480_v31 = vadd.f32 %v7917_v20, %v665_v55  ;;  %v2157_v26 = vpop.f32.mrb[15].mxu0  ;;  %v9895_v21 = vld [vmem:[#allocation2 + $0x78] sm:$0xff]  ;;  %v9897_v22 = vld [vmem:[#allocation2 + $0x80] sm:$0xff]  ;;  %v2537_v46 = vrot.slane %v9993_v11, 1  ;;  %v2768_v30 = vrot.slane %v9978_v10, 2 }
 0x1f8   : > { %2243 = vst.msk [vmem:[#allocation2 + $0xa9] sm:$0xff] %vm2198_vm5, %v2194_v5  ;;  %v8482_v27 = vadd.f32 %v2157_v26, %v664_v8  ;;  %7935 = vmatprep.mubr.msk.f32.mxu1 %vm2198_vm5, %v9895_v21  ;;  %v2534_v38 = vrot.slane %v9895_v21, 1  ;;  %v2535_v47 = vrot.slane %v9897_v22, 1 }
 0x1f9   : > { %v2197_v53 = vmax.f32 %v8480_v31, 0.0  ;;  %7936 = vmatmul.mubr.msk.f32.gmra.mrb[24].mxu1 %vm2198_vm5, %v9897_v22 }
 0x1fa   : > { %v2196_v7 = vmax.f32 %v8482_v27, 0.0  ;;  %v10004_v2 = vsel %vm674_vm2, %v2534_v38, %v2535_v47  ;;  %v10008_v51 = vld [vmem:[#allocation2 + $0xa0] sm:$0x3]  ;;  %v10013_v8 = vsel %vm674_vm2, %v2535_v47, %v2537_v46  ;;  %v2770_v38 = vrot.slane %v9895_v21, 2 }
 0x1fb   : > { %2246 = vst.msk [vmem:[#allocation2 + $0xc9] sm:$0xff] %vm2198_vm5, %v2197_v53  ;;  %v9905_v29 = vld [vmem:[#allocation2 + $0x90] sm:$0xff]  ;;  %v9907_v37 = vld [vmem:[#allocation2 + $0x98] sm:$0xff]  ;;  %v2542_v9 = vrot.slane %v10008_v51, 1  ;;  %v2771_v47 = vrot.slane %v9897_v22, 2  ;;  %v10110_v46 = vsel %vm911_vm3, %v2766_v58, %v2768_v30 }
 0x1fc   : > { %2245 = vst.msk [vmem:[#allocation2 + $0xc1] sm:$0xff] %vm2198_vm5, %v2196_v7  ;;  %7938 = vmatprep.mubr.msk.f32.mxu1 %vm2198_vm5, %v9905_v29  ;;  %v2539_v3 = vrot.slane %v9905_v29, 1  ;;  %v2540_v55 = vrot.slane %v9907_v37, 1  ;;  %v2279_v30 = vld [vmem:[%s10970_s3 + $0x10] sm:$0x3] }
 0x1fd   : > { %7939 = vmatmul.mubr.msk.f32.gmra.mrb[26].mxu1 %vm2198_vm5, %v9907_v37  ;;  %v10116_v10 = vsel %vm911_vm3, %v2770_v38, %v2771_v47 }
 0x1fe   : > { %v10019_v5 = vsel %vm674_vm2, %v2539_v3, %v2540_v55  ;;  %v10023_v26 = vld [vmem:[#allocation2 + $0xb8] sm:$0x3]  ;;  %v10028_v27 = vsel %vm674_vm2, %v2540_v55, %v2542_v9  ;;  %v2773_v3 = vrot.slane %v9993_v11, 2  ;;  %v2775_v55 = vrot.slane %v9905_v29, 2 }
 0x1ff   : > { %v9917_v14 = vld [vmem:[#allocation2 + $0xa8] sm:$0xff]  ;;  %v9919_v23 = vld [vmem:[#allocation2 + $0xb0] sm:$0xff]  ;;  %v2547_v53 = vrot.slane %v10023_v26, 1  ;;  %v2776_v9 = vrot.slane %v9907_v37, 2 }
 0x200   : > { %7941 = vmatprep.mubr.msk.f32.mxu1 %vm2198_vm5, %v9917_v14  ;;  %v2544_v20 = vrot.slane %v9917_v14, 1  ;;  %v2545_v31 = vrot.slane %v9919_v23, 1  ;;  %v2781_v18 = vrot.slane %v9919_v23, 2 }
 0x201   : > { %7942 = vmatmul.mubr.msk.f32.gmra.mrb[28].mxu1 %vm2198_vm5, %v9919_v23  ;;  %v10129_v11 = vsel %vm911_vm3, %v2775_v55, %v2776_v9 }
 0x202   : > { %7946 = vmatprep.mubr.msk.f32.mxu1 %vm2198_vm5, %v9812_v39  ;;  %v2522_v39 = vrot.slane %v9942_v40, 1  ;;  %v10034_v7 = vsel %vm674_vm2, %v2544_v20, %v2545_v31  ;;  %v10040_v43 = vsel %vm674_vm2, %v2545_v31, %v2547_v53  ;;  %v10123_v20 = vsel %vm911_vm3, %v2771_v47, %v2773_v3 }
 0x203   : > { %v2778_v31 = vrot.slane %v10008_v51, 2  ;;  %v2780_v53 = vrot.slane %v9917_v14, 2 }
 0x204   : > { %v9968_v48 = vsel %vm674_vm2, %v2520_v36, %v2522_v39  ;;  %v2755_v39 = vrot.slane %v9855_v50, 2 }
 0x205   : > { %7947 = vmatmul.mubr.msk.f32.vlgmr.msra.gmra.mrb[14].mxu1 %vm2198_vm5, %v2513_v16  ;;  %v2751_v16 = vrot.slane %v9845_v32, 2  ;;  %v10142_v51 = vsel %vm911_vm3, %v2780_v53, %v2781_v18 }
 0x206   : > { %7971 = vmatpush3.msk.msra.mxu1 %vm2336_vm4, %v2785_v61  ;;  %7949 = vmatprep.mubr.msk.f32.mxu1 %vm2198_vm5, %v9938_v33  ;;  %v2524_v61 = vrot.slane %v9869_v54, 1 }
 0x207   : > { %7996 = vmatprep.subr.msk.mxu1 %vm2336_vm4, %v2981_v19  ;;  %v10059_v36 = vsel %vm911_vm3, %v2750_v45, %v2751_v16  ;;  %v10071_v1 = vsel %vm911_vm3, %v2751_v16, %v2753_v34  ;;  %v10136_v45 = vsel %vm911_vm3, %v2776_v9, %v2778_v31  ;;  %v2783_v16 = vrot.slane %v10023_v26, 2 }
 0x208   : > { %v9974_v57 = vsel %vm674_vm2, %v2524_v61, %v2525_v42  ;;  %v2763_v42 = vrot.slane %v9963_v44, 2  ;;  %v10103_v44 = vsel %vm911_vm3, %v2765_v56, %v2766_v58  ;;  %v3330_v26 = vrot.slane %v10055_v0, 2 }
 0x209   : > { %7950 = vmatmul.mubr.msk.f32.gmra.mrb[16].mxu1 %vm2198_vm5, %v9953_v59  ;;  %v3498_v34 = vrot.slane %v10055_v0, 4 }
 0x20a   : > { %7952 = vmatprep.mubr.msk.f32.mxu1 %vm2198_vm5, %v9959_v41 }
 0x20d   : > { %7953 = vmatmul.mubr.msk.f32.gmra.mrb[18].mxu1 %vm2198_vm5, %v9968_v48 }
 0x20e   : > { %7955 = vmatprep.mubr.msk.f32.mxu1 %vm2198_vm5, %v9974_v57 }
 0x211   : > { %7956 = vmatmul.mubr.msk.f32.gmra.mrb[20].mxu1 %vm2198_vm5, %v9983_v12 }
 0x212   : > { %7958 = vmatprep.mubr.msk.f32.mxu1 %vm2198_vm5, %v9989_v24 }
 0x215   : > { %7959 = vmatmul.mubr.msk.f32.gmra.mrb[22].mxu1 %vm2198_vm5, %v9998_v13 }
 0x216   : > { %7961 = vmatprep.mubr.msk.f32.mxu1 %vm2198_vm5, %v10004_v2 }
 0x219   : > { %7962 = vmatmul.mubr.msk.f32.gmra.mrb[24].mxu1 %vm2198_vm5, %v10013_v8 }
 0x21a   : > { %7964 = vmatprep.mubr.msk.f32.mxu1 %vm2198_vm5, %v10019_v5 }
 0x21d   : > { %7965 = vmatmul.mubr.msk.f32.gmra.mrb[26].mxu1 %vm2198_vm5, %v10028_v27 }
 0x21e   : > { %7967 = vmatprep.mubr.msk.f32.mxu1 %vm2198_vm5, %v10034_v7 }
 0x221   : > { %7968 = vmatmul.mubr.msk.f32.gmra.mrb[28].mxu1 %vm2198_vm5, %v10040_v43 }
 0x222   : > { %7972 = vmatprep.mubr.msk.f32.mxu1 %vm2198_vm5, %v9821_v6  ;;  %v2756_v6 = vrot.slane %v9857_v52, 2 }
 0x224   : > { %v10077_v15 = vsel %vm911_vm3, %v2755_v39, %v2756_v6  ;;  %v10084_v61 = vsel %vm911_vm3, %v2756_v6, %v2758_v4  ;;  %v2273_v39 = vld [vmem:[#allocation2 + $0xd0] sm:$0x3] }
 0x225   : > { %7973 = vmatmul.mubr.msk.f32.vlgmr.msra.gmra.mrb[14].mxu1 %vm2198_vm5, %v2749_v25  ;;  %v10147_v25 = vsel %vm911_vm3, %v2781_v18, %v2783_v16  ;;  %v3155_v6 = vrot.slane %v2273_v39, 1 }
 0x226   : > { %7997 = vmatpush3.msk.msra.mxu1 %vm2336_vm4, %v2981_v19  ;;  %7975 = vmatprep.mubr.msk.f32.mxu1 %vm2198_vm5, %v10059_v36  ;;  %v2761_v19 = vrot.slane %v9871_v62, 2 }
 0x227   : > { %8022 = vmatprep.subr.msk.mxu1 %vm2336_vm4, %v10055_v0 }
 0x228   : > { %v10090_v40 = vsel %vm911_vm3, %v2760_v35, %v2761_v19  ;;  %v10097_v60 = vsel %vm911_vm3, %v2761_v19, %v2763_v42  ;;  %v10237_v19 = vld [vmem:[%s10972_s5] sm:$0xff]  ;;  %v3674_v42 = vrot.slane %v10055_v0, 6 }
 0x229   : > { %7976 = vmatmul.mubr.msk.f32.gmra.mrb[16].mxu1 %vm2198_vm5, %v10071_v1  ;;  %8152 = vmatprep.subr.msk.mxu0 %vm2336_vm4, %v10237_v19 }
 0x22a   : > { %7978 = vmatprep.mubr.msk.f32.mxu1 %vm2198_vm5, %v10077_v15  ;;  %8153 = vmatpush3.msk.msra.mxu0 %vm2336_vm4, %v10237_v19 }
 0x22d   : > { %7979 = vmatmul.mubr.msk.f32.gmra.mrb[18].mxu1 %vm2198_vm5, %v10084_v61 }
 0x22e   : > { %7981 = vmatprep.mubr.msk.f32.mxu1 %vm2198_vm5, %v10090_v40 }
 0x231   : > { %7982 = vmatmul.mubr.msk.f32.gmra.mrb[20].mxu1 %vm2198_vm5, %v10097_v60 }
 0x232   : > { %7984 = vmatprep.mubr.msk.f32.mxu1 %vm2198_vm5, %v10103_v44 }
 0x235   : > { %7985 = vmatmul.mubr.msk.f32.gmra.mrb[22].mxu1 %vm2198_vm5, %v10110_v46 }
 0x236   : > { %7987 = vmatprep.mubr.msk.f32.mxu1 %vm2198_vm5, %v10116_v10 }
 0x239   : > { %7988 = vmatmul.mubr.msk.f32.gmra.mrb[24].mxu1 %vm2198_vm5, %v10123_v20 }
 0x23a   : > { %7990 = vmatprep.mubr.msk.f32.mxu1 %vm2198_vm5, %v10129_v11 }
 0x23d   : > { %7991 = vmatmul.mubr.msk.f32.gmra.mrb[26].mxu1 %vm2198_vm5, %v10136_v45 }
 0x23e   : > { %7993 = vmatprep.mubr.msk.f32.mxu1 %vm2198_vm5, %v10142_v51 }
 0x241   : > { %7994 = vmatmul.mubr.msk.f32.gmra.mrb[28].mxu1 %vm2198_vm5, %v10147_v25 }
 0x242   : > { %7998 = vmatprep.mubr.msk.f32.mxu1 %vm2198_vm5, %v9843_v28  ;;  %v10183_v28 = vld [vmem:[#allocation2 + $0xc0] sm:$0xff] }
 0x245   : > { %7999 = vmatmul.mubr.msk.f32.vlgmr.msra.gmra.mrb[14].mxu1 %vm2198_vm5, %v9845_v32  ;;  %v10187_v32 = vld [vmem:[#allocation2 + $0xc8] sm:$0xff] }
 0x246   : > { %8023 = vmatpush3.msk.msra.mxu1 %vm2336_vm4, %v10055_v0  ;;  %8001 = vmatprep.mubr.msk.f32.mxu1 %vm2198_vm5, %v9855_v50  ;;  %v3325_v0 = vrot.slane %v10183_v28, 2 }
 0x247   : > { %8048 = vmatprep.subr.msk.mxu1 %vm2336_vm4, %v3330_v26 }
 0x249   : > { %8002 = vmatmul.mubr.msk.f32.gmra.mrb[16].mxu1 %vm2198_vm5, %v9857_v52 }
 0x24a   : > { %8004 = vmatprep.mubr.msk.f32.mxu1 %vm2198_vm5, %v9869_v54 }
 0x24d   : > { %8005 = vmatmul.mubr.msk.f32.gmra.mrb[18].mxu1 %vm2198_vm5, %v9871_v62 }
 0x24e   : > { %8007 = vmatprep.mubr.msk.f32.mxu1 %vm2198_vm5, %v9883_v17 }
 0x251   : > { %8008 = vmatmul.mubr.msk.f32.gmra.mrb[20].mxu1 %vm2198_vm5, %v9885_v63 }
 0x252   : > { %8010 = vmatprep.mubr.msk.f32.mxu1 %vm2198_vm5, %v9895_v21 }
 0x255   : > { %8011 = vmatmul.mubr.msk.f32.gmra.mrb[22].mxu1 %vm2198_vm5, %v9897_v22 }
 0x256   : > { %8013 = vmatprep.mubr.msk.f32.mxu1 %vm2198_vm5, %v9905_v29 }
 0x259   : > { %8014 = vmatmul.mubr.msk.f32.gmra.mrb[24].mxu1 %vm2198_vm5, %v9907_v37 }
 0x25a   : > { %8016 = vmatprep.mubr.msk.f32.mxu1 %vm2198_vm5, %v9917_v14 }
 0x25d   : > { %8017 = vmatmul.mubr.msk.f32.gmra.mrb[26].mxu1 %vm2198_vm5, %v9919_v23 }
 0x25e   : > { %8019 = vmatprep.mubr.msk.f32.mxu1 %vm2198_vm5, %v10183_v28 }
 0x261   : > { %8020 = vmatmul.mubr.msk.f32.gmra.mrb[28].mxu1 %vm2198_vm5, %v10187_v32 }
 0x262   : > { %8024 = vmatprep.mubr.msk.f32.mxu1 %vm2198_vm5, %v9938_v33  ;;  %v3152_v33 = vrot.slane %v10183_v28, 1 }
 0x265   : > { %8025 = vmatmul.mubr.msk.f32.vlgmr.msra.gmra.mrb[14].mxu1 %vm2198_vm5, %v9953_v59  ;;  %v3153_v59 = vrot.slane %v10187_v32, 1 }
 0x266   : > { %8049 = vmatpush3.msk.msra.mxu1 %vm2336_vm4, %v3330_v26  ;;  %8027 = vmatprep.mubr.msk.f32.mxu1 %vm2198_vm5, %v9959_v41 }
 0x267   : > { %8074 = vmatprep.subr.msk.mxu1 %vm2336_vm4, %v3498_v34  ;;  %v10225_v4 = vsel %vm674_vm2, %v3152_v33, %v3153_v59  ;;  %v10230_v35 = vsel %vm674_vm2, %v3153_v59, %v3155_v6 }
 0x269   : > { %8028 = vmatmul.mubr.msk.f32.gmra.mrb[16].mxu1 %vm2198_vm5, %v9968_v48 }
 0x26a   : > { %8030 = vmatprep.mubr.msk.f32.mxu1 %vm2198_vm5, %v9974_v57 }
 0x26d   : > { %8031 = vmatmul.mubr.msk.f32.gmra.mrb[18].mxu1 %vm2198_vm5, %v9983_v12 }
 0x26e   : > { %8033 = vmatprep.mubr.msk.f32.mxu1 %vm2198_vm5, %v9989_v24 }
 0x271   : > { %8034 = vmatmul.mubr.msk.f32.gmra.mrb[20].mxu1 %vm2198_vm5, %v9998_v13 }
 0x272   : > { %8036 = vmatprep.mubr.msk.f32.mxu1 %vm2198_vm5, %v10004_v2 }
 0x275   : > { %8037 = vmatmul.mubr.msk.f32.gmra.mrb[22].mxu1 %vm2198_vm5, %v10013_v8 }
 0x276   : > { %8039 = vmatprep.mubr.msk.f32.mxu1 %vm2198_vm5, %v10019_v5 }
 0x279   : > { %8040 = vmatmul.mubr.msk.f32.gmra.mrb[24].mxu1 %vm2198_vm5, %v10028_v27 }
 0x27a   : > { %8042 = vmatprep.mubr.msk.f32.mxu1 %vm2198_vm5, %v10034_v7 }
 0x27d   : > { %8043 = vmatmul.mubr.msk.f32.gmra.mrb[26].mxu1 %vm2198_vm5, %v10040_v43 }
 0x27e   : > { %8045 = vmatprep.mubr.msk.f32.mxu1 %vm2198_vm5, %v10225_v4 }
 0x281   : > { %8046 = vmatmul.mubr.msk.f32.gmra.mrb[28].mxu1 %vm2198_vm5, %v10230_v35 }
 0x282   : > { %8050 = vmatprep.mubr.msk.f32.mxu1 %vm2198_vm5, %v10059_v36  ;;  %v3326_v36 = vrot.slane %v10187_v32, 2 }
 0x284   : > { %v10277_v56 = vsel %vm911_vm3, %v3325_v0, %v3326_v36 }
 0x285   : > { %8051 = vmatmul.mubr.msk.f32.vlgmr.msra.gmra.mrb[14].mxu1 %vm2198_vm5, %v10071_v1  ;;  %v3328_v1 = vrot.slane %v2273_v39, 2 }
 0x286   : > { %8075 = vmatpush3.msk.msra.mxu1 %vm2336_vm4, %v3498_v34  ;;  %8053 = vmatprep.mubr.msk.f32.mxu1 %vm2198_vm5, %v10077_v15 }
 0x287   : > { %8100 = vmatprep.subr.msk.mxu1 %vm2336_vm4, %v3674_v42  ;;  %v10282_v58 = vsel %vm911_vm3, %v3326_v36, %v3328_v1 }
 0x289   : > { %8054 = vmatmul.mubr.msk.f32.gmra.mrb[16].mxu1 %vm2198_vm5, %v10084_v61 }
 0x28a   : > { %8056 = vmatprep.mubr.msk.f32.mxu1 %vm2198_vm5, %v10090_v40 }
 0x28d   : > { %8057 = vmatmul.mubr.msk.f32.gmra.mrb[18].mxu1 %vm2198_vm5, %v10097_v60 }
 0x28e   : > { %8059 = vmatprep.mubr.msk.f32.mxu1 %vm2198_vm5, %v10103_v44 }
 0x291   : > { %8060 = vmatmul.mubr.msk.f32.gmra.mrb[20].mxu1 %vm2198_vm5, %v10110_v46 }
 0x292   : > { %8062 = vmatprep.mubr.msk.f32.mxu1 %vm2198_vm5, %v10116_v10 }
 0x295   : > { %8063 = vmatmul.mubr.msk.f32.gmra.mrb[22].mxu1 %vm2198_vm5, %v10123_v20 }
 0x296   : > { %8065 = vmatprep.mubr.msk.f32.mxu1 %vm2198_vm5, %v10129_v11 }
 0x299   : > { %8066 = vmatmul.mubr.msk.f32.gmra.mrb[24].mxu1 %vm2198_vm5, %v10136_v45 }
 0x29a   : > { %8068 = vmatprep.mubr.msk.f32.mxu1 %vm2198_vm5, %v10142_v51 }
 0x29d   : > { %8069 = vmatmul.mubr.msk.f32.gmra.mrb[26].mxu1 %vm2198_vm5, %v10147_v25 }
 0x29e   : > { %8071 = vmatprep.mubr.msk.f32.mxu1 %vm2198_vm5, %v10277_v56 }
 0x2a1   : > { %8072 = vmatmul.mubr.msk.f32.gmra.mrb[28].mxu1 %vm2198_vm5, %v10282_v58 }
 0x2a2   : > { %8076 = vmatprep.mubr.msk.f32.mxu1 %vm2198_vm5, %v9855_v50  ;;  %v2274_v50 = vld [vmem:[#allocation2 + $0xd8] sm:$0xff] }
 0x2a5   : > { %8077 = vmatmul.mubr.msk.f32.vlgmr.msra.gmra.mrb[14].mxu1 %vm2198_vm5, %v9857_v52  ;;  %v2275_v52 = vld [vmem:[#allocation2 + $0xe0] sm:$0xff] }
 0x2a6   : > { %8101 = vmatpush3.msk.msra.mxu1 %vm2336_vm4, %v3674_v42  ;;  %8079 = vmatprep.mubr.msk.f32.mxu1 %vm2198_vm5, %v9869_v54  ;;  %v3669_v54 = vrot.slane %v2274_v50, 1 }
 0x2a7   : > { %8126 = vmatprep.subr.msk.mxu1 %vm2336_vm4, %v2279_v30 }
 0x2a9   : > { %8080 = vmatmul.mubr.msk.f32.gmra.mrb[16].mxu1 %vm2198_vm5, %v9871_v62  ;;  %v3670_v62 = vrot.slane %v2275_v52, 1 }
 0x2aa   : > { %8082 = vmatprep.mubr.msk.f32.mxu1 %vm2198_vm5, %v9883_v17  ;;  %v2276_v17 = vld [vmem:[#allocation2 + $0xe8] sm:$0x3] }
 0x2ad   : > { %8083 = vmatmul.mubr.msk.f32.gmra.mrb[18].mxu1 %vm2198_vm5, %v9885_v63  ;;  %v3672_v63 = vrot.slane %v2276_v17, 1 }
 0x2ae   : > { %8085 = vmatprep.mubr.msk.f32.mxu1 %vm2198_vm5, %v9895_v21  ;;  %v3671_v21 = vsel %vm674_vm2, %v3669_v54, %v3670_v62 }
 0x2b1   : > { %8086 = vmatmul.mubr.msk.f32.gmra.mrb[20].mxu1 %vm2198_vm5, %v9897_v22  ;;  %v3673_v22 = vsel %vm674_vm2, %v3670_v62, %v3672_v63 }
 0x2b2   : > { %8088 = vmatprep.mubr.msk.f32.mxu1 %vm2198_vm5, %v9905_v29  ;;  %v3842_v29 = vrot.slane %v2274_v50, 2 }
 0x2b5   : > { %8089 = vmatmul.mubr.msk.f32.gmra.mrb[22].mxu1 %vm2198_vm5, %v9907_v37  ;;  %v3843_v37 = vrot.slane %v2275_v52, 2 }
 0x2b6   : > { %8091 = vmatprep.mubr.msk.f32.mxu1 %vm2198_vm5, %v9917_v14  ;;  %v3845_v14 = vrot.slane %v2276_v17, 2 }
 0x2b9   : > { %8092 = vmatmul.mubr.msk.f32.gmra.mrb[24].mxu1 %vm2198_vm5, %v9919_v23  ;;  %v3844_v23 = vsel %vm911_vm3, %v3842_v29, %v3843_v37 }
 0x2ba   : > { %8094 = vmatprep.mubr.msk.f32.mxu1 %vm2198_vm5, %v10183_v28 }
 0x2bd   : > { %8095 = vmatmul.mubr.msk.f32.gmra.mrb[26].mxu1 %vm2198_vm5, %v10187_v32 }
 0x2be   : > { %8097 = vmatprep.mubr.msk.f32.mxu1 %vm2198_vm5, %v2274_v50 }
 0x2c1   : > { %8098 = vmatmul.mubr.msk.f32.gmra.mrb[28].mxu1 %vm2198_vm5, %v2275_v52 }
 0x2c2   : > { %8102 = vmatprep.mubr.msk.f32.mxu1 %vm2198_vm5, %v9959_v41  ;;  %v3846_v41 = vsel %vm911_vm3, %v3843_v37, %v3845_v14 }
 0x2c5   : > { %8103 = vmatmul.mubr.msk.f32.vlgmr.msra.gmra.mrb[14].mxu1 %vm2198_vm5, %v9968_v48  ;;  %v10387_v48 = vld [vmem:[#allocation3] sm:$0xff] }
 0x2c6   : > { %8127 = vmatpush3.msk.msra.mxu1 %vm2336_vm4, %v2279_v30  ;;  %8105 = vmatprep.mubr.msk.f32.mxu1 %vm2198_vm5, %v9974_v57  ;;  %v4387_v57 = vrot.slane %v10237_v19, 2 }
 0x2c7   : > { %8278 = vmatprep.subr.mxu1 %v8993_v49  ;;  %8154 = vmatprep.mubr.msk.f32.mxu0 %vm2198_vm5, %v10387_v48 }
 0x2c8   : > { %8166 = vmatprep.subr.msk.mxu0 %vm2336_vm4, %v4387_v57 }
 0x2c9   : > { %8106 = vmatmul.mubr.msk.f32.gmra.mrb[16].mxu1 %vm2198_vm5, %v9983_v12  ;;  %v10398_v12 = vld [vmem:[%s10971_s4] ss:$0 sm:$0xff] }
 0x2ca   : > { %8108 = vmatprep.mubr.msk.f32.mxu1 %vm2198_vm5, %v9989_v24 }
 0x2cd   : > { %8109 = vmatmul.mubr.msk.f32.gmra.mrb[18].mxu1 %vm2198_vm5, %v9998_v13 }
 0x2ce   : > { %8111 = vmatprep.mubr.msk.f32.mxu1 %vm2198_vm5, %v10004_v2 }
 0x2d1   : > { %8112 = vmatmul.mubr.msk.f32.gmra.mrb[20].mxu1 %vm2198_vm5, %v10013_v8 }
 0x2d2   : > { %8114 = vmatprep.mubr.msk.f32.mxu1 %vm2198_vm5, %v10019_v5 }
 0x2d5   : > { %8115 = vmatmul.mubr.msk.f32.gmra.mrb[22].mxu1 %vm2198_vm5, %v10028_v27 }
 0x2d6   : > { %8117 = vmatprep.mubr.msk.f32.mxu1 %vm2198_vm5, %v10034_v7 }
 0x2d9   : > { %8118 = vmatmul.mubr.msk.f32.gmra.mrb[24].mxu1 %vm2198_vm5, %v10040_v43 }
 0x2da   : > { %8120 = vmatprep.mubr.msk.f32.mxu1 %vm2198_vm5, %v10225_v4  ;;  %v4543_v4 = vrot.slane %v10237_v19, 4 }
 0x2dd   : > { %8121 = vmatmul.mubr.msk.f32.gmra.mrb[26].mxu1 %vm2198_vm5, %v10230_v35 }
 0x2de   : > { %8123 = vmatprep.mubr.msk.f32.mxu1 %vm2198_vm5, %v3671_v21 }
 0x2e1   : > { %8124 = vmatmul.mubr.msk.f32.gmra.mrb[28].mxu1 %vm2198_vm5, %v3673_v22 }
 0x2e2   : > { %8128 = vmatprep.mubr.msk.f32.mxu1 %vm2198_vm5, %v10077_v15 }
 0x2e5   : > { %8129 = vmatmul.mubr.msk.f32.vlgmr.msra.gmra.mrb[14].mxu1 %vm2198_vm5, %v10084_v61 }
 0x2e6   : > { %8131 = vmatprep.mubr.msk.f32.mxu1 %vm2198_vm5, %v10090_v40 }
 0x2e9   : > { %8132 = vmatmul.mubr.msk.f32.gmra.mrb[16].mxu1 %vm2198_vm5, %v10097_v60 }
 0x2ea   : > { %8134 = vmatprep.mubr.msk.f32.mxu1 %vm2198_vm5, %v10103_v44 }
 0x2ed   : > { %8135 = vmatmul.mubr.msk.f32.gmra.mrb[18].mxu1 %vm2198_vm5, %v10110_v46 }
 0x2ee   : > { %8137 = vmatprep.mubr.msk.f32.mxu1 %vm2198_vm5, %v10116_v10 }
 0x2f1   : > { %8138 = vmatmul.mubr.msk.f32.gmra.mrb[20].mxu1 %vm2198_vm5, %v10123_v20 }
 0x2f2   : > { %8140 = vmatprep.mubr.msk.f32.mxu1 %vm2198_vm5, %v10129_v11 }
 0x2f5   : > { %8141 = vmatmul.mubr.msk.f32.gmra.mrb[22].mxu1 %vm2198_vm5, %v10136_v45 }
 0x2f6   : > { %8143 = vmatprep.mubr.msk.f32.mxu1 %vm2198_vm5, %v10142_v51 }
 0x2f9   : > { %8144 = vmatmul.mubr.msk.f32.gmra.mrb[24].mxu1 %vm2198_vm5, %v10147_v25 }
 0x2fa   : > { %8146 = vmatprep.mubr.msk.f32.mxu1 %vm2198_vm5, %v10277_v56 }
 0x2fd   : > { %8147 = vmatmul.mubr.msk.f32.gmra.mrb[26].mxu1 %vm2198_vm5, %v10282_v58 }
 0x2fe   : > { %8149 = vmatprep.mubr.msk.f32.mxu1 %vm2198_vm5, %v3844_v23 }
 0x301   : > { %8150 = vmatmul.mubr.msk.f32.gmra.mrb[28].mxu1 %vm2198_vm5, %v3846_v41 }
 0x302   : > { %8280 = vmatprep.mubr.msk.f32.mxu1 %vm8994_vm12, %v8993_v49 }
 0x3b8   : > { %v8130_v24 = vpop.f32.mrb[14].mxu1 }
 0x3b9   : > { %v8483_v13 = vadd.f32 %v8130_v24, %v10398_v12  ;;  %v3920_v2 = vpop.f32.mrb[15].mxu1 }
 0x3ba   : > { %v8484_v8 = vadd.f32 %v10398_v12, %v3920_v2 }
 0x3bb   : > { %v4016_v5 = vmax.f32 %v8483_v13, 0.0 }
 0x3bc   : > { %v4015_v27 = vmax.f32 %v8484_v8, 0.0  ;;  %v8133_v7 = vpop.f32.mrb[16].mxu1 }
 0x3bd   : > { %v4128_v43 = vrot.slane %v4016_v5, 1  ;;  %v8485_v15 = vadd.f32 %v8133_v7, %v10398_v12  ;;  %v3930_v61 = vpop.f32.mrb[17].mxu1 }
 0x3be   : > { %v4059_v40 = vrot.slane %v4015_v27, 1  ;;  %v8486_v60 = vadd.f32 %v10398_v12, %v3930_v61 }
 0x3bf   : > { %v4144_v44 = vmax.f32 %v4016_v5, %v4128_v43  ;;  %v4018_v38 = vmax.f32 %v8485_v15, 0.0 }
 0x3c0   : > { %v4075_v47 = vmax.f32 %v4015_v27, %v4059_v40  ;;  %v4017_v46 = vmax.f32 %v8486_v60, 0.0  ;;  %v8136_v3 = vpop.f32.mrb[18].mxu1 }
 0x3c1   : > { %4152 = vst.msk [vmem:[#allocation3 + $0x15] sm:$0x1] %vm4084_vm7, %v4144_v44  ;;  %v4129_v10 = vrot.slane %v4018_v38, 1  ;;  %v8487_v55 = vadd.f32 %v8136_v3, %v10398_v12  ;;  %v3940_v9 = vpop.f32.mrb[19].mxu1 }
 0x3c2   : > { %4160 = vst.msk [vmem:[#allocation3 + $0x14] sm:$0x4] %vm4093_vm8, %v4144_v44  ;;  %4094 = vst.msk [vmem:[#allocation3 + $0x10] sm:$0x4] %vm4093_vm8, %v4075_v47  ;;  %v4060_v20 = vrot.slane %v4017_v46, 1  ;;  %v8488_v31 = vadd.f32 %v10398_v12, %v3940_v9 }
 0x3c3   : > { %4168 = vst.msk [vmem:[#allocation3 + $0x13] sm:$0x10] %vm4102_vm9, %v4144_v44  ;;  %4103 = vst.msk [vmem:[#allocation3 + $0xf] sm:$0x10] %vm4102_vm9, %v4075_v47  ;;  %v4145_v11 = vmax.f32 %v4018_v38, %v4129_v10  ;;  %v4020_v53 = vmax.f32 %v8487_v55, 0.0 }
 0x3c4   : > { %4176 = vst.msk [vmem:[#allocation3 + $0x12] sm:$0x40] %vm4111_vm10, %v4144_v44  ;;  %4112 = vst.msk [vmem:[#allocation3 + $0xe] sm:$0x40] %vm4111_vm10, %v4075_v47  ;;  %v4076_v18 = vmax.f32 %v4017_v46, %v4060_v20  ;;  %v4019_v45 = vmax.f32 %v8488_v31, 0.0  ;;  %v8139_v16 = vpop.f32.mrb[20].mxu1 }
 0x3c5   : > { %4085 = vst.msk [vmem:[#allocation3 + $0x11] sm:$0x1] %vm4084_vm7, %v4075_v47  ;;  %4153 = vst.msk [vmem:[#allocation3 + $0x25] sm:$0x1] %vm4084_vm7, %v4145_v11  ;;  %v4130_v51 = vrot.slane %v4020_v53, 1  ;;  %v8489_v25 = vadd.f32 %v8139_v16, %v10398_v12  ;;  %v3950_v26 = vpop.f32.mrb[21].mxu1 }
 0x3c6   : > { %4161 = vst.msk [vmem:[#allocation3 + $0x24] sm:$0x4] %vm4093_vm8, %v4145_v11  ;;  %4095 = vst.msk [vmem:[#allocation3 + $0x20] sm:$0x4] %vm4093_vm8, %v4076_v18  ;;  %v4061_v28 = vrot.slane %v4019_v45, 1  ;;  %v8490_v32 = vadd.f32 %v10398_v12, %v3950_v26 }
 0x3c7   : > { %4169 = vst.msk [vmem:[#allocation3 + $0x23] sm:$0x10] %vm4102_vm9, %v4145_v11  ;;  %4104 = vst.msk [vmem:[#allocation3 + $0x1f] sm:$0x10] %vm4102_vm9, %v4076_v18  ;;  %v4146_v34 = vmax.f32 %v4020_v53, %v4130_v51  ;;  %v4022_v33 = vmax.f32 %v8489_v25, 0.0 }
 0x3c8   : > { %4177 = vst.msk [vmem:[#allocation3 + $0x22] sm:$0x40] %vm4111_vm10, %v4145_v11  ;;  %4113 = vst.msk [vmem:[#allocation3 + $0x1e] sm:$0x40] %vm4111_vm10, %v4076_v18  ;;  %v4077_v59 = vmax.f32 %v4019_v45, %v4061_v28  ;;  %v4021_v39 = vmax.f32 %v8490_v32, 0.0  ;;  %v8142_v6 = vpop.f32.mrb[22].mxu1 }
 0x3c9   : > { %4086 = vst.msk [vmem:[#allocation3 + $0x21] sm:$0x1] %vm4084_vm7, %v4076_v18  ;;  %4154 = vst.msk [vmem:[#allocation3 + $0x35] sm:$0x1] %vm4084_vm7, %v4146_v34  ;;  %v4131_v35 = vrot.slane %v4022_v33, 1  ;;  %v8491_v42 = vadd.f32 %v8142_v6, %v10398_v12  ;;  %v3960_v0 = vpop.f32.mrb[23].mxu1 }
 0x3ca   : > { %4162 = vst.msk [vmem:[#allocation3 + $0x34] sm:$0x4] %vm4093_vm8, %v4146_v34  ;;  %4096 = vst.msk [vmem:[#allocation3 + $0x30] sm:$0x4] %vm4093_vm8, %v4077_v59  ;;  %v4062_v1 = vrot.slane %v4021_v39, 1  ;;  %v8492_v56 = vadd.f32 %v10398_v12, %v3960_v0  ;;  %v4363_v45 = vrot.slane %v10387_v48, 1 }
 0x3cb   : > { %4170 = vst.msk [vmem:[#allocation3 + $0x33] sm:$0x10] %vm4102_vm9, %v4146_v34  ;;  %4105 = vst.msk [vmem:[#allocation3 + $0x2f] sm:$0x10] %vm4102_vm9, %v4077_v59  ;;  %v4147_v58 = vmax.f32 %v4022_v33, %v4131_v35  ;;  %v4024_v30 = vmax.f32 %v8491_v42, 0.0  ;;  %v10525_v42 = vld [vmem:[%s10974_s7] sm:$0xff] }
 0x3cc   : > { %4178 = vst.msk [vmem:[#allocation3 + $0x32] sm:$0x40] %vm4111_vm10, %v4146_v34  ;;  %v10430_v36 = vld [vmem:[#allocation3 + $0x10] sm:$0xff]  ;;  %4114 = vst.msk [vmem:[#allocation3 + $0x2e] sm:$0x40] %vm4111_vm10, %v4077_v59  ;;  %v4078_v50 = vmax.f32 %v4021_v39, %v4062_v1  ;;  %v4023_v52 = vmax.f32 %v8492_v56, 0.0  ;;  %8279 = vmatpush3.msk.msra.mxu1 %vm5481_vm11, %v10525_v42 }
 0x3cd   : > { %4087 = vst.msk [vmem:[#allocation3 + $0x31] sm:$0x1] %vm4084_vm7, %v4077_v59  ;;  %8155 = vmatmul.mubr.msk.f32.vlgmr.msra.gmra.mrb[16].mxu0 %vm2198_vm5, %v10430_v36  ;;  %v8145_v54 = vpop.f32.mrb[24].mxu1  ;;  %4155 = vst.msk [vmem:[#allocation3 + $0x45] sm:$0x1] %vm4084_vm7, %v4147_v58  ;;  %v4132_v62 = vrot.slane %v4024_v30, 1  ;;  %8283 = vmatprep.subr.mxu1 %v8993_v49 }
 0x3ce   : > { %8167 = vmatpush3.msk.msra.mxu0 %vm2336_vm4, %v4387_v57  ;;  %4163 = vst.msk [vmem:[#allocation3 + $0x44] sm:$0x4] %vm4093_vm8, %v4147_v58  ;;  %v8493_v17 = vadd.f32 %v8145_v54, %v10398_v12  ;;  %v3970_v63 = vpop.f32.mrb[25].mxu1  ;;  %4097 = vst.msk [vmem:[#allocation3 + $0x40] sm:$0x4] %vm4093_vm8, %v4078_v50  ;;  %v4063_v22 = vrot.slane %v4023_v52, 1 }
 0x3cf   : > { %8180 = vmatprep.subr.msk.mxu0 %vm2336_vm4, %v4543_v4  ;;  %4171 = vst.msk [vmem:[#allocation3 + $0x43] sm:$0x10] %vm4102_vm9, %v4147_v58  ;;  %4106 = vst.msk [vmem:[#allocation3 + $0x3f] sm:$0x10] %vm4102_vm9, %v4078_v50  ;;  %v8494_v29 = vadd.f32 %v10398_v12, %v3970_v63  ;;  %v4148_v37 = vmax.f32 %v4024_v30, %v4132_v62  ;;  %v10493_v53 = vld [vmem:[#allocation3 + $0x8] sm:$0x3] }
 0x3d0   : > { %4179 = vst.msk [vmem:[#allocation3 + $0x42] sm:$0x40] %vm4111_vm10, %v4147_v58  ;;  %v10450_v21 = vld [vmem:[#allocation3 + $0x20] sm:$0xff]  ;;  %4115 = vst.msk [vmem:[#allocation3 + $0x3e] sm:$0x40] %vm4111_vm10, %v4078_v50  ;;  %v4026_v14 = vmax.f32 %v8493_v17, 0.0  ;;  %v4079_v23 = vmax.f32 %v4023_v52, %v4063_v22 }
 0x3d1   : > { %4088 = vst.msk [vmem:[#allocation3 + $0x41] sm:$0x1] %vm4084_vm7, %v4078_v50  ;;  %8157 = vmatprep.mubr.msk.f32.mxu0 %vm2198_vm5, %v10450_v21  ;;  %v4025_v41 = vmax.f32 %v8494_v29, 0.0  ;;  %v8148_v57 = vpop.f32.mrb[26].mxu1  ;;  %4156 = vst.msk [vmem:[#allocation3 + $0x55] sm:$0x1] %vm4084_vm7, %v4148_v37 }
 0x3d2   : > { %4164 = vst.msk [vmem:[#allocation3 + $0x54] sm:$0x4] %vm4093_vm8, %v4148_v37  ;;  %v4133_v24 = vrot.slane %v4026_v14, 1  ;;  %v8495_v13 = vadd.f32 %v8148_v57, %v10398_v12  ;;  %v3980_v2 = vpop.f32.mrb[27].mxu1  ;;  %4098 = vst.msk [vmem:[#allocation3 + $0x50] sm:$0x4] %vm4093_vm8, %v4079_v23 }
 0x3d3   : > { %4172 = vst.msk [vmem:[#allocation3 + $0x53] sm:$0x10] %vm4102_vm9, %v4148_v37  ;;  %4107 = vst.msk [vmem:[#allocation3 + $0x4f] sm:$0x10] %vm4102_vm9, %v4079_v23  ;;  %v4064_v5 = vrot.slane %v4025_v41, 1  ;;  %v8496_v27 = vadd.f32 %v10398_v12, %v3980_v2  ;;  %v4364_v51 = vrot.slane %v10493_v53, 1 }
 0x3d4   : > { %4180 = vst.msk [vmem:[#allocation3 + $0x52] sm:$0x40] %vm4111_vm10, %v4148_v37  ;;  %v10464_v8 = vld [vmem:[#allocation3 + $0x30] sm:$0xff]  ;;  %4116 = vst.msk [vmem:[#allocation3 + $0x4e] sm:$0x40] %vm4111_vm10, %v4079_v23  ;;  %v4149_v7 = vmax.f32 %v4026_v14, %v4133_v24  ;;  %v4028_v43 = vmax.f32 %v8495_v13, 0.0 }
 0x3d5   : > { %4089 = vst.msk [vmem:[#allocation3 + $0x51] sm:$0x1] %vm4084_vm7, %v4079_v23  ;;  %8158 = vmatmul.mubr.msk.f32.gmra.mrb[18].mxu0 %vm2198_vm5, %v10464_v8  ;;  %v4080_v15 = vmax.f32 %v4025_v41, %v4064_v5  ;;  %v4027_v61 = vmax.f32 %v8496_v27, 0.0  ;;  %v8151_v40 = vpop.f32.mrb[28].mxu1  ;;  %v4187_v26 = vld [vmem:[#allocation3 + $0x18] sm:$0x3]  ;;  %v4365_v32 = vsel %vm674_vm2, %v4363_v45, %v4364_v51 }
 0x3d6   : > { %4157 = vst.msk [vmem:[#allocation3 + $0x65] sm:$0x1] %vm4084_vm7, %v4149_v7  ;;  %v4134_v60 = vrot.slane %v4028_v43, 1  ;;  %v8497_v44 = vadd.f32 %v8151_v40, %v10398_v12  ;;  %v3990_v38 = vpop.f32.mrb[29].mxu1  ;;  %v4189_v28 = vld [vmem:[#allocation3 + $0x28] sm:$0x3] }
 0x3d7   : > { %4165 = vst.msk [vmem:[#allocation3 + $0x64] sm:$0x4] %vm4093_vm8, %v4149_v7  ;;  %4099 = vst.msk [vmem:[#allocation3 + $0x60] sm:$0x4] %vm4093_vm8, %v4080_v15  ;;  %v4065_v46 = vrot.slane %v4027_v61, 1  ;;  %v8498_v3 = vadd.f32 %v10398_v12, %v3990_v38  ;;  %v4366_v34 = vrot.slane %v10430_v36, 1 }
 0x3d8   : > { %4173 = vst.msk [vmem:[#allocation3 + $0x63] sm:$0x10] %vm4102_vm9, %v4149_v7  ;;  %v10478_v47 = vld [vmem:[#allocation3 + $0x40] sm:$0xff]  ;;  %4108 = vst.msk [vmem:[#allocation3 + $0x5f] sm:$0x10] %vm4102_vm9, %v4080_v15  ;;  %v4150_v10 = vmax.f32 %v4028_v43, %v4134_v60  ;;  %v4030_v55 = vmax.f32 %v8497_v44, 0.0 }
 0x3d9   : > { %4181 = vst.msk [vmem:[#allocation3 + $0x62] sm:$0x40] %vm4111_vm10, %v4149_v7  ;;  %4117 = vst.msk [vmem:[#allocation3 + $0x5e] sm:$0x40] %vm4111_vm10, %v4080_v15  ;;  %8160 = vmatprep.mubr.msk.f32.mxu0 %vm2198_vm5, %v10478_v47  ;;  %v4081_v9 = vmax.f32 %v4027_v61, %v4065_v46  ;;  %v4029_v20 = vmax.f32 %v8498_v3, 0.0  ;;  %v4367_v59 = vrot.slane %v4187_v26, 1 }
 0x3da   : > { %4090 = vst.msk [vmem:[#allocation3 + $0x61] sm:$0x1] %vm4084_vm7, %v4080_v15  ;;  %4158 = vst.msk [vmem:[#allocation3 + $0x75] sm:$0x1] %vm4084_vm7, %v4150_v10  ;;  %v4135_v31 = vrot.slane %v4030_v55, 1  ;;  %v4369_v39 = vrot.slane %v10450_v21, 1 }
 0x3db   : > { %4166 = vst.msk [vmem:[#allocation3 + $0x74] sm:$0x4] %vm4093_vm8, %v4150_v10  ;;  %4100 = vst.msk [vmem:[#allocation3 + $0x70] sm:$0x4] %vm4093_vm8, %v4081_v9  ;;  %v4066_v12 = vrot.slane %v4029_v20, 1  ;;  %v4370_v6 = vrot.slane %v4189_v28, 1  ;;  %v10533_v56 = vsel %vm674_vm2, %v4366_v34, %v4367_v59 }
 0x3dc   : > { %4174 = vst.msk [vmem:[#allocation3 + $0x73] sm:$0x10] %vm4102_vm9, %v4150_v10  ;;  %v10491_v11 = vld [vmem:[#allocation3 + $0x50] sm:$0xff]  ;;  %4109 = vst.msk [vmem:[#allocation3 + $0x6f] sm:$0x10] %vm4102_vm9, %v4081_v9  ;;  %v4151_v18 = vmax.f32 %v4030_v55, %v4135_v31  ;;  %v4675_v1 = vrot.slane %v10237_v19, 6 }
 0x3dd   : > { %4182 = vst.msk [vmem:[#allocation3 + $0x72] sm:$0x40] %vm4111_vm10, %v4150_v10  ;;  %4118 = vst.msk [vmem:[#allocation3 + $0x6e] sm:$0x40] %vm4111_vm10, %v4081_v9  ;;  %8161 = vmatmul.mubr.msk.f32.gmra.mrb[20].mxu0 %vm2198_vm5, %v10491_v11  ;;  %v4082_v16 = vmax.f32 %v4029_v20, %v4066_v12  ;;  %v4191_v35 = vld [vmem:[#allocation3 + $0x38] sm:$0x3]  ;;  %v10539_v50 = vsel %vm674_vm2, %v4369_v39, %v4370_v6 }
 0x3de   : > { %4091 = vst.msk [vmem:[#allocation3 + $0x71] sm:$0x1] %vm4084_vm7, %v4081_v9  ;;  %4159 = vst.msk [vmem:[#allocation3 + $0x85] sm:$0x1] %vm4084_vm7, %v4151_v18  ;;  %v4193_v0 = vld [vmem:[#allocation3 + $0x48] sm:$0x3] }
 0x3df   : > { %4167 = vst.msk [vmem:[#allocation3 + $0x84] sm:$0x4] %vm4093_vm8, %v4151_v18  ;;  %4101 = vst.msk [vmem:[#allocation3 + $0x80] sm:$0x4] %vm4093_vm8, %v4082_v16  ;;  %v4372_v58 = vrot.slane %v10464_v8, 1  ;;  %v4373_v30 = vrot.slane %v4191_v35, 1 }
 0x3e0   : > { %4175 = vst.msk [vmem:[#allocation3 + $0x83] sm:$0x10] %vm4102_vm9, %v4151_v18  ;;  %4110 = vst.msk [vmem:[#allocation3 + $0x7f] sm:$0x10] %vm4102_vm9, %v4082_v16  ;;  %v4375_v52 = vrot.slane %v10478_v47, 1  ;;  %v4376_v54 = vrot.slane %v4193_v0, 1 }
 0x3e1   : > { %4183 = vst.msk [vmem:[#allocation3 + $0x82] sm:$0x40] %vm4111_vm10, %v4151_v18  ;;  %v10507_v25 = vld [vmem:[#allocation3 + $0x60] sm:$0xff]  ;;  %4119 = vst.msk [vmem:[#allocation3 + $0x7e] sm:$0x40] %vm4111_vm10, %v4082_v16  ;;  %v10549_v63 = vsel %vm674_vm2, %v4372_v58, %v4373_v30  ;;  %v4378_v22 = vrot.slane %v10491_v11, 1 }
 0x3e2   : > { %4092 = vst.msk [vmem:[#allocation3 + $0x81] sm:$0x1] %vm4084_vm7, %v4082_v16  ;;  %8163 = vmatprep.mubr.msk.f32.mxu0 %vm2198_vm5, %v10507_v25  ;;  %v4195_v62 = vld [vmem:[#allocation3 + $0x58] sm:$0x3]  ;;  %v4197_v17 = vld [vmem:[#allocation3 + $0x68] sm:$0x3]  ;;  %v10555_v37 = vsel %vm674_vm2, %v4375_v52, %v4376_v54 }
 0x3e3   : > { %v4379_v29 = vrot.slane %v4195_v62, 1  ;;  %v4381_v19 = vrot.slane %v10507_v25, 1  ;;  %v4519_v23 = vrot.slane %v10387_v48, 2  ;;  %v4520_v41 = vrot.slane %v10493_v53, 2  ;;  %v10587_v44 = vld [vmem:[%s10972_s5 + $0x8] sm:$0xff] }
 0x3e4   : > { %v4199_v14 = vld [vmem:[#allocation3 + $0x78] sm:$0x3]  ;;  %v4522_v48 = vrot.slane %v10430_v36, 2  ;;  %v4523_v7 = vrot.slane %v4187_v26, 2  ;;  %v4525_v43 = vrot.slane %v10450_v21, 2  ;;  %v4526_v15 = vrot.slane %v4189_v28, 2 }
 0x3e5   : > { %v10517_v33 = vld [vmem:[#allocation3 + $0x70] sm:$0xff]  ;;  %v10563_v57 = vsel %vm674_vm2, %v4378_v22, %v4379_v29  ;;  %v4385_v13 = vrot.slane %v4199_v14, 1  ;;  %v4521_v5 = vsel %vm911_vm3, %v4519_v23, %v4520_v41  ;;  %v4528_v40 = vrot.slane %v10464_v8, 2 }
 0x3e6   : > { %8164 = vmatmul.mubr.msk.f32.gmra.mrb[22].mxu0 %vm2198_vm5, %v10517_v33  ;;  %v4384_v24 = vrot.slane %v10517_v33, 1  ;;  %v4524_v61 = vsel %vm911_vm3, %v4522_v48, %v4523_v7  ;;  %v4529_v60 = vrot.slane %v4191_v35, 2  ;;  %v10591_v38 = vsel %vm911_vm3, %v4525_v43, %v4526_v15 }
 0x3e7   : > { %8168 = vmatprep.mubr.msk.f32.mxu0 %vm2198_vm5, %v4365_v32  ;;  %v4531_v46 = vrot.slane %v10478_v47, 2  ;;  %v4532_v3 = vrot.slane %v4193_v0, 2  ;;  %v4534_v55 = vrot.slane %v10491_v11, 2  ;;  %v4535_v9 = vrot.slane %v4195_v62, 2 }
 0x3e8   : > { %v10576_v27 = vsel %vm674_vm2, %v4384_v24, %v4385_v13  ;;  %v10600_v10 = vsel %vm911_vm3, %v4528_v40, %v4529_v60  ;;  %v4537_v31 = vrot.slane %v10507_v25, 2  ;;  %v4538_v53 = vrot.slane %v4197_v17, 2  ;;  %v4201_v32 = vld [vmem:[#allocation3 + $0x88] sm:$0x3] }
 0x3e9   : > { %v10606_v20 = vsel %vm911_vm3, %v4531_v46, %v4532_v3  ;;  %v10612_v12 = vsel %vm911_vm3, %v4534_v55, %v4535_v9  ;;  %v4540_v18 = vrot.slane %v10517_v33, 2  ;;  %v4541_v45 = vrot.slane %v4199_v14, 2 }
 0x3ea   : > { %8169 = vmatmul.mubr.msk.f32.vlgmr.msra.gmra.mrb[16].mxu0 %vm2198_vm5, %v10533_v56  ;;  %v10618_v16 = vsel %vm911_vm3, %v4537_v31, %v4538_v53  ;;  %v4919_v26 = vrot.slane %v10587_v44, 2  ;;  %v5037_v28 = vrot.slane %v10587_v44, 4  ;;  %v4796_v59 = vrot.slane %v4201_v32, 1 }
 0x3eb   : > { %8181 = vmatpush3.msk.msra.mxu0 %vm2336_vm4, %v4543_v4  ;;  %8171 = vmatprep.mubr.msk.f32.mxu0 %vm2198_vm5, %v10539_v50  ;;  %v4382_v4 = vrot.slane %v4197_v17, 1  ;;  %v10623_v51 = vsel %vm911_vm3, %v4540_v18, %v4541_v45  ;;  %v5160_v6 = vrot.slane %v10587_v44, 6  ;;  %v4917_v0 = vrot.slane %v4201_v32, 2 }
 0x3ec   : > { %8194 = vmatprep.subr.msk.mxu0 %vm2336_vm4, %v4675_v1  ;;  %vm6743_vm7 = vcmask 64512  }
 0x3ed   : > { %v10569_v2 = vsel %vm674_vm2, %v4381_v19, %v4382_v4 }
 0x3ee   : > { %8172 = vmatmul.mubr.msk.f32.gmra.mrb[18].mxu0 %vm2198_vm5, %v10549_v63 }
 0x3ef   : > { %8174 = vmatprep.mubr.msk.f32.mxu0 %vm2198_vm5, %v10555_v37 }
 0x3f2   : > { %8175 = vmatmul.mubr.msk.f32.gmra.mrb[20].mxu0 %vm2198_vm5, %v10563_v57 }
 0x3f3   : > { %8177 = vmatprep.mubr.msk.f32.mxu0 %vm2198_vm5, %v10569_v2 }
 0x3f6   : > { %8178 = vmatmul.mubr.msk.f32.gmra.mrb[22].mxu0 %vm2198_vm5, %v10576_v27 }
 0x3f7   : > { %8182 = vmatprep.mubr.msk.f32.mxu0 %vm2198_vm5, %v4521_v5 }
 0x3fa   : > { %8183 = vmatmul.mubr.msk.f32.vlgmr.msra.gmra.mrb[16].mxu0 %vm2198_vm5, %v4524_v61 }
 0x3fb   : > { %8195 = vmatpush3.msk.msra.mxu0 %vm2336_vm4, %v4675_v1  ;;  %8185 = vmatprep.mubr.msk.f32.mxu0 %vm2198_vm5, %v10591_v38 }
 0x3fc   : > { %8208 = vmatprep.subr.msk.mxu0 %vm2336_vm4, %v10587_v44 }
 0x3fe   : > { %8186 = vmatmul.mubr.msk.f32.gmra.mrb[18].mxu0 %vm2198_vm5, %v10600_v10 }
 0x3ff   : > { %8188 = vmatprep.mubr.msk.f32.mxu0 %vm2198_vm5, %v10606_v20 }
 0x402   : > { %8189 = vmatmul.mubr.msk.f32.gmra.mrb[20].mxu0 %vm2198_vm5, %v10612_v12 }
 0x403   : > { %8191 = vmatprep.mubr.msk.f32.mxu0 %vm2198_vm5, %v10618_v16 }
 0x406   : > { %8192 = vmatmul.mubr.msk.f32.gmra.mrb[22].mxu0 %vm2198_vm5, %v10623_v51 }
 0x407   : > { %8196 = vmatprep.mubr.msk.f32.mxu0 %vm2198_vm5, %v10430_v36  ;;  %v4200_v36 = vld [vmem:[#allocation3 + $0x80] sm:$0xff] }
 0x408   : > { %v4795_v34 = vrot.slane %v4200_v36, 1  ;;  %v4916_v35 = vrot.slane %v4200_v36, 2 }
 0x40a   : > { %8197 = vmatmul.mubr.msk.f32.vlgmr.msra.gmra.mrb[16].mxu0 %vm2198_vm5, %v10450_v21  ;;  %v4797_v39 = vsel %vm674_vm2, %v4795_v34, %v4796_v59  ;;  %v4918_v1 = vsel %vm911_vm3, %v4916_v35, %v4917_v0 }
 0x40b   : > { %8209 = vmatpush3.msk.msra.mxu0 %vm2336_vm4, %v10587_v44  ;;  %8199 = vmatprep.mubr.msk.f32.mxu0 %vm2198_vm5, %v10464_v8 }
 0x40c   : > { %8222 = vmatprep.subr.msk.mxu0 %vm2336_vm4, %v4919_v26 }
 0x40e   : > { %8200 = vmatmul.mubr.msk.f32.gmra.mrb[18].mxu0 %vm2198_vm5, %v10478_v47 }
 0x40f   : > { %8202 = vmatprep.mubr.msk.f32.mxu0 %vm2198_vm5, %v10491_v11 }
 0x412   : > { %8203 = vmatmul.mubr.msk.f32.gmra.mrb[20].mxu0 %vm2198_vm5, %v10507_v25 }
 0x413   : > { %8205 = vmatprep.mubr.msk.f32.mxu0 %vm2198_vm5, %v10517_v33 }
 0x416   : > { %8206 = vmatmul.mubr.msk.f32.gmra.mrb[22].mxu0 %vm2198_vm5, %v4200_v36 }
 0x417   : > { %8210 = vmatprep.mubr.msk.f32.mxu0 %vm2198_vm5, %v10533_v56  ;;  %v4206_v56 = vld [vmem:[%s10972_s5 + $0x10] sm:$0x3] }
 0x41a   : > { %8211 = vmatmul.mubr.msk.f32.vlgmr.msra.gmra.mrb[16].mxu0 %vm2198_vm5, %v10539_v50 }
 0x41b   : > { %8223 = vmatpush3.msk.msra.mxu0 %vm2336_vm4, %v4919_v26  ;;  %8213 = vmatprep.mubr.msk.f32.mxu0 %vm2198_vm5, %v10549_v63 }
 0x41c   : > { %8236 = vmatprep.subr.msk.mxu0 %vm2336_vm4, %v5037_v28 }
 0x41e   : > { %8214 = vmatmul.mubr.msk.f32.gmra.mrb[18].mxu0 %vm2198_vm5, %v10555_v37 }
 0x41f   : > { %8216 = vmatprep.mubr.msk.f32.mxu0 %vm2198_vm5, %v10563_v57 }
 0x422   : > { %8217 = vmatmul.mubr.msk.f32.gmra.mrb[20].mxu0 %vm2198_vm5, %v10569_v2 }
 0x423   : > { %8219 = vmatprep.mubr.msk.f32.mxu0 %vm2198_vm5, %v10576_v27 }
 0x426   : > { %8220 = vmatmul.mubr.msk.f32.gmra.mrb[22].mxu0 %vm2198_vm5, %v4797_v39 }
 0x427   : > { %8224 = vmatprep.mubr.msk.f32.mxu0 %vm2198_vm5, %v4524_v61 }
 0x42a   : > { %8225 = vmatmul.mubr.msk.f32.vlgmr.msra.gmra.mrb[16].mxu0 %vm2198_vm5, %v10591_v38 }
 0x42b   : > { %8237 = vmatpush3.msk.msra.mxu0 %vm2336_vm4, %v5037_v28  ;;  %8227 = vmatprep.mubr.msk.f32.mxu0 %vm2198_vm5, %v10600_v10 }
 0x42c   : > { %8250 = vmatprep.subr.msk.mxu0 %vm2336_vm4, %v5160_v6 }
 0x42e   : > { %8228 = vmatmul.mubr.msk.f32.gmra.mrb[18].mxu0 %vm2198_vm5, %v10606_v20 }
 0x42f   : > { %8230 = vmatprep.mubr.msk.f32.mxu0 %vm2198_vm5, %v10612_v12 }
 0x432   : > { %8231 = vmatmul.mubr.msk.f32.gmra.mrb[20].mxu0 %vm2198_vm5, %v10618_v16 }
 0x433   : > { %8233 = vmatprep.mubr.msk.f32.mxu0 %vm2198_vm5, %v10623_v51 }
 0x436   : > { %8234 = vmatmul.mubr.msk.f32.gmra.mrb[22].mxu0 %vm2198_vm5, %v4918_v1 }
 0x437   : > { %8238 = vmatprep.mubr.msk.f32.mxu0 %vm2198_vm5, %v10450_v21  ;;  %v4202_v21 = vld [vmem:[#allocation3 + $0x90] sm:$0xff] }
 0x43a   : > { %8239 = vmatmul.mubr.msk.f32.vlgmr.msra.gmra.mrb[16].mxu0 %vm2198_vm5, %v10464_v8  ;;  %v4203_v8 = vld [vmem:[#allocation3 + $0x98] sm:$0x3] }
 0x43b   : > { %8251 = vmatpush3.msk.msra.mxu0 %vm2336_vm4, %v5160_v6  ;;  %8241 = vmatprep.mubr.msk.f32.mxu0 %vm2198_vm5, %v10478_v47  ;;  %v5157_v47 = vrot.slane %v4202_v21, 1  ;;  %v5279_v58 = vrot.slane %v4203_v8, 2 }
 0x43c   : > { %8264 = vmatprep.subr.msk.mxu0 %vm2336_vm4, %v4206_v56 }
 0x43e   : > { %8242 = vmatmul.mubr.msk.f32.gmra.mrb[18].mxu0 %vm2198_vm5, %v10491_v11  ;;  %v5158_v11 = vrot.slane %v4203_v8, 1 }
 0x43f   : > { %8244 = vmatprep.mubr.msk.f32.mxu0 %vm2198_vm5, %v10507_v25 }
 0x440   : > { %v5159_v25 = vsel %vm674_vm2, %v5157_v47, %v5158_v11  ;;  %vm5473_vm2 = vcmask 1046534  }
 0x442   : > { %8245 = vmatmul.mubr.msk.f32.gmra.mrb[20].mxu0 %vm2198_vm5, %v10517_v33  ;;  %v5278_v33 = vrot.slane %v4202_v21, 2 }
 0x443   : > { %8247 = vmatprep.mubr.msk.f32.mxu0 %vm2198_vm5, %v4200_v36 }
 0x444   : > { %v5280_v30 = vsel %vm911_vm3, %v5278_v33, %v5279_v58  ;;  %vm5476_vm3 = vcmask 1047559  }
 0x446   : > { %8248 = vmatmul.mubr.msk.f32.gmra.mrb[22].mxu0 %vm2198_vm5, %v4202_v21 }
 0x447   : > { %8252 = vmatprep.mubr.msk.f32.mxu0 %vm2198_vm5, %v10539_v50  ;;  %v7132_v50 = vld [vmem:[%s10973_s6] ss:$0 sm:$0xff] }
 0x44a   : > { %8253 = vmatmul.mubr.msk.f32.vlgmr.msra.gmra.mrb[16].mxu0 %vm2198_vm5, %v10549_v63 }
 0x44b   : > { %8265 = vmatpush3.msk.msra.mxu0 %vm2336_vm4, %v4206_v56  ;;  %8255 = vmatprep.mubr.msk.f32.mxu0 %vm2198_vm5, %v10555_v37  ;;  %vm5478_vm4 = vcmask 31744  }
 0x44e   : > { %8256 = vmatmul.mubr.msk.f32.gmra.mrb[18].mxu0 %vm2198_vm5, %v10563_v57 }
 0x44f   : > { %8258 = vmatprep.mubr.msk.f32.mxu0 %vm2198_vm5, %v10569_v2 }
 0x452   : > { %8259 = vmatmul.mubr.msk.f32.gmra.mrb[20].mxu0 %vm2198_vm5, %v10576_v27 }
 0x453   : > { %8261 = vmatprep.mubr.msk.f32.mxu0 %vm2198_vm5, %v4797_v39 }
 0x456   : > { %8262 = vmatmul.mubr.msk.f32.gmra.mrb[22].mxu0 %vm2198_vm5, %v5159_v25 }
 0x457   : > { %8266 = vmatprep.mubr.msk.f32.mxu0 %vm2198_vm5, %v10591_v38 }
 0x45a   : > { %8267 = vmatmul.mubr.msk.f32.vlgmr.msra.gmra.mrb[16].mxu0 %vm2198_vm5, %v10600_v10 }
 0x45b   : > { %8269 = vmatprep.mubr.msk.f32.mxu0 %vm2198_vm5, %v10606_v20 }
 0x45e   : > { %8270 = vmatmul.mubr.msk.f32.gmra.mrb[18].mxu0 %vm2198_vm5, %v10612_v12 }
 0x45f   : > { %8272 = vmatprep.mubr.msk.f32.mxu0 %vm2198_vm5, %v10618_v16 }
 0x462   : > { %8273 = vmatmul.mubr.msk.f32.gmra.mrb[20].mxu0 %vm2198_vm5, %v10623_v51 }
 0x463   : > { %8275 = vmatprep.mubr.msk.f32.mxu0 %vm2198_vm5, %v4918_v1 }
 0x466   : > { %8276 = vmatmul.mubr.msk.f32.gmra.mrb[22].mxu0 %vm2198_vm5, %v5280_v30  ;;  %vm5935_vm5 = vcmask 253952  }
 0x52d   : > { %v8268_v52 = vpop.f32.mrb[16].mxu0 }
 0x52e   : > { %v8499_v54 = vadd.f32 %v8268_v52, %v7132_v50  ;;  %v5352_v62 = vpop.f32.mrb[17].mxu0 }
 0x52f   : > { %v8500_v17 = vadd.f32 %v7132_v50, %v5352_v62 }
 0x530   : > { %v5400_v63 = vmax.f32 %v8499_v54, 0.0 }
 0x531   : > { %v5399_v22 = vmax.f32 %v8500_v17, 0.0  ;;  %v8271_v29 = vpop.f32.mrb[18].mxu0 }
 0x532   : > { %v5426_v37 = vrot.slane %v5400_v63, 1  ;;  %v8501_v19 = vadd.f32 %v8271_v29, %v7132_v50  ;;  %v5362_v4 = vpop.f32.mrb[19].mxu0 }
 0x533   : > { %v5425_v14 = vrot.slane %v5399_v22, 1  ;;  %v8502_v23 = vadd.f32 %v7132_v50, %v5362_v4 }
 0x534   : > { %v5442_v41 = vmax.f32 %v5400_v63, %v5426_v37  ;;  %v5402_v57 = vmax.f32 %v8501_v19, 0.0 }
 0x535   : > { %v5441_v24 = vmax.f32 %v5399_v22, %v5425_v14  ;;  %v5401_v13 = vmax.f32 %v8502_v23, 0.0  ;;  %v8274_v2 = vpop.f32.mrb[20].mxu0 }
 0x536   : > { %v5457_v5 = vrot.slane %v5442_v41, 7  ;;  %v5557_v48 = vrot.slane %v5442_v41, 1  ;;  %v5647_v27 = vrot.slane %v5442_v41, 3  ;;  %v5737_v7 = vrot.slane %v5442_v41, 5  ;;  %v5372_v43 = vpop.f32.mrb[21].mxu0 }
 0x537   : > { %v5556_v15 = vrot.slane %v5441_v24, 2  ;;  %v5646_v61 = vrot.slane %v5441_v24, 4  ;;  %v5736_v40 = vrot.slane %v5441_v24, 6  ;;  %v5428_v60 = vrot.slane %v5402_v57, 1 }
 0x538   : > { %v5459_v44 = vsel %vm5458_vm13, %v5457_v5, %v5441_v24  ;;  %v5427_v38 = vrot.slane %v5401_v13, 1  ;;  %v8503_v46 = vadd.f32 %v8274_v2, %v7132_v50  ;;  %v8504_v3 = vadd.f32 %v7132_v50, %v5372_v43 }
 0x539   : > { %v5648_v10 = vsel %vm5458_vm13, %v5647_v27, %v5646_v61  ;;  %v5738_v55 = vsel %vm5458_vm13, %v5737_v7, %v5736_v40  ;;  %v5444_v9 = vmax.f32 %v5402_v57, %v5428_v60  ;;  %v5558_v20 = vsel %vm5458_vm13, %v5557_v48, %v5556_v15  ;;  %v8277_v31 = vpop.f32.mrb[22].mxu0 }
 0x53a   : > { %v5443_v53 = vmax.f32 %v5401_v13, %v5427_v38  ;;  %v5404_v12 = vmax.f32 %v8503_v46, 0.0  ;;  %v5403_v18 = vmax.f32 %v8504_v3, 0.0  ;;  %v8505_v45 = vadd.f32 %v8277_v31, %v7132_v50  ;;  %v5382_v16 = vpop.f32.mrb[23].mxu0  ;;  %v5408_v31 = vld [vmem:[%s10974_s7 + $0x8] sm:$0xff] }
 0x53b   : > { %v5463_v51 = vrot.slane %v5444_v9, 5  ;;  %v5560_v26 = vrot.slane %v5444_v9, 7  ;;  %v5651_v36 = vrot.slane %v5444_v9, 1  ;;  %v5741_v28 = vrot.slane %v5444_v9, 3 }
 0x53c   : > { %v5460_v32 = vrot.slane %v5443_v53, 6  ;;  %v5559_v34 = vsel %vm5461_vm14, %v5443_v53, %v5558_v20  ;;  %v5649_v59 = vrot.slane %v5443_v53, 2  ;;  %v5739_v39 = vrot.slane %v5443_v53, 4 }
 0x53d   : > { %v5561_v6 = vsel %vm5464_vm15, %v5560_v26, %v5559_v34  ;;  %v5430_v35 = vrot.slane %v5404_v12, 1  ;;  %v5429_v0 = vrot.slane %v5403_v18, 1  ;;  %v5406_v1 = vmax.f32 %v8505_v45, 0.0  ;;  %v5828_v45 = vld [vmem:[%s10976_s9 + $0x8] sm:$0xff]  ;;  %v5830_v26 = vld [vmem:[%s10976_s9 + $0x18] sm:$0xff] }
 0x53e   : > { %v5462_v56 = vsel %vm5461_vm14, %v5460_v32, %v5459_v44  ;;  %v5740_v21 = vsel %vm5461_vm14, %v5739_v39, %v5738_v55  ;;  %v5650_v8 = vsel %vm5461_vm14, %v5649_v59, %v5648_v10  ;;  %v8506_v47 = vadd.f32 %v7132_v50, %v5382_v16 }
 0x53f   : > { %v5446_v11 = vmax.f32 %v5404_v12, %v5430_v35  ;;  %v5445_v25 = vmax.f32 %v5403_v18, %v5429_v0  ;;  %v5652_v33 = vsel %vm5464_vm15, %v5651_v36, %v5650_v8  ;;  %v5432_v58 = vrot.slane %v5406_v1, 1  ;;  %v5827_v18 = vld [vmem:[%s10976_s9] sm:$0xff] }
 0x540   : > { %v5405_v30 = vmax.f32 %v8506_v47, 0.0  ;;  %v5465_v52 = vsel %vm5464_vm15, %v5463_v51, %v5462_v56  ;;  %v5742_v54 = vsel %vm5464_vm15, %v5741_v28, %v5740_v21  ;;  %v5570_v48 = vrot.slane %v10525_v42, 4  ;;  %v5829_v51 = vld [vmem:[%s10976_s9 + $0x10] sm:$0xff]  ;;  %v7214_v28 = vld [vmem:[%s10975_s8] ss:$0 sm:$0xff] }
 0x541   : > { %v5469_v62 = vrot.slane %v5446_v11, 3  ;;  %v5654_v17 = vrot.slane %v5446_v11, 7  ;;  %v5466_v63 = vrot.slane %v5445_v25, 4  ;;  %v5562_v22 = vrot.slane %v5445_v25, 6 }
 0x542   : > { %v5653_v29 = vsel %vm5467_vm0, %v5445_v25, %v5652_v33  ;;  %v5743_v37 = vrot.slane %v5445_v25, 2  ;;  %v5564_v50 = vrot.slane %v5446_v11, 5  ;;  %v5448_v19 = vmax.f32 %v5406_v1, %v5432_v58 }
 0x543   : > { %v5431_v4 = vrot.slane %v5405_v30, 1  ;;  %v5655_v14 = vsel %vm5470_vm1, %v5654_v17, %v5653_v29  ;;  %v5745_v23 = vrot.slane %v5446_v11, 1  ;;  %v5468_v41 = vsel %vm5467_vm0, %v5466_v63, %v5465_v52 }
 0x544   : > { %v5563_v57 = vsel %vm5467_vm0, %v5562_v22, %v5561_v6  ;;  %v5744_v24 = vsel %vm5467_vm0, %v5743_v37, %v5742_v54  ;;  %v5471_v2 = vsel %vm5470_vm1, %v5469_v62, %v5468_v41  ;;  %v5748_v7 = vrot.slane %v5448_v19, 7 }
 0x545   : > { %v5447_v13 = vmax.f32 %v5405_v30, %v5431_v4  ;;  %v5565_v5 = vsel %vm5470_vm1, %v5564_v50, %v5563_v57  ;;  %v5746_v27 = vsel %vm5470_vm1, %v5745_v23, %v5744_v24  ;;  %v5475_v60 = vrot.slane %v5448_v19, 1 }
 0x546   : > { %v5568_v44 = vrot.slane %v5448_v19, 3  ;;  %v5658_v38 = vrot.slane %v5448_v19, 5  ;;  %v5750_v53 = vrot.slane %v5408_v31, 4  ;;  %v8995_v12 = vmov 0.0|0.0  }
 0x547   : > { %v5472_v43 = vrot.slane %v5447_v13, 2  ;;  %v5566_v15 = vrot.slane %v5447_v13, 4  ;;  %v5656_v61 = vrot.slane %v5447_v13, 6  ;;  %v5747_v40 = vsel %vm5473_vm2, %v5447_v13, %v5746_v27 }
 0x548   : > { %v5749_v46 = vsel %vm5476_vm3, %v5748_v7, %v5747_v40  ;;  %v10791_v16 = vpack.c.bf16 %v5828_v45, %v5827_v18  ;;  %v10801_v36 = vpack.c.bf16 %v5830_v26, %v5829_v51 }
 0x549   : > { %v5474_v3 = vsel %vm5473_vm2, %v5472_v43, %v5471_v2  ;;  %v5567_v10 = vsel %vm5473_vm2, %v5566_v15, %v5565_v5  ;;  %v5657_v42 = vsel %vm5473_vm2, %v5656_v61, %v5655_v14 }
 0x54a   : > { %v5477_v55 = vsel %vm5476_vm3, %v5475_v60, %v5474_v3  ;;  %v5569_v9 = vsel %vm5476_vm3, %v5568_v44, %v5567_v10  ;;  %v5659_v20 = vsel %vm5476_vm3, %v5658_v38, %v5657_v42 }
 0x54b   : > { %8281 = vmatmul.mubr.msk.f32.vlgmr.msra.gmra.mrb[30].mxu1 %vm5478_vm4, %v5477_v55 }
 0x54c   : > { %8284 = vmatpush3.msk.msra.mxu1 %vm5481_vm11, %v5570_v48  ;;  %8285 = vmatprep.mubr.msk.f32.mxu1 %vm8994_vm12, %v8993_v49 }
 0x54d   : > { %8288 = vmatprep.subr.mxu1 %v8993_v49 }
 0x553   : > { %8286 = vmatmul.mubr.msk.f32.vlgmr.msra.gmra.mrb[30].mxu1 %vm5478_vm4, %v5569_v9 }
 0x554   : > { %8289 = vmatpush3.msk.msra.mxu1 %vm5481_vm11, %v5408_v31  ;;  %8290 = vmatprep.mubr.msk.f32.mxu1 %vm8994_vm12, %v8993_v49 }
 0x555   : > { %8293 = vmatprep.subr.mxu1 %v8993_v49 }
 0x55b   : > { %8291 = vmatmul.mubr.msk.f32.vlgmr.msra.gmra.mrb[30].mxu1 %vm5478_vm4, %v5659_v20 }
 0x55c   : > { %8294 = vmatpush3.msk.msra.mxu1 %vm5481_vm11, %v5750_v53  ;;  %8295 = vmatprep.mubr.msk.f32.mxu1 %vm8994_vm12, %v8993_v49 }
 0x55d   : > { %8397 = vmatprep.subr.bf16.mxu1 %v8995_v12 }
 0x563   : > { %8296 = vmatmul.mubr.msk.f32.vlgmr.msra.gmra.mrb[30].mxu1 %vm5478_vm4, %v5749_v46 }
 0x564   : > { %8399 = vmatpush3.bf16.msra.mxu1 %v10791_v16  ;;  %8306 = vmatprep.mubr.msk.f32.mxu1 %vm8994_vm12, %v8993_v49 }
 0x565   : > { %8400 = vmatprep.subr.bf16.mxu1 %v8995_v12 }
 0x568   : > { %8402 = vmatpush3.bf16.msra.mxu1 %v10801_v36 }
 0x569   : > { %8403 = vmatprep.subr.bf16.mxu1 %v8995_v12 }
 0x56b   : > { %8307 = vmatmul.mubr.f32.vlgmr.msra.gmra.mrb[32].mxu1 %v8993_v49 }
 0x56c   : > { %8405 = vmatpush3.bf16.msra.mxu1 %v10791_v16  ;;  %8317 = vmatprep.mubr.msk.f32.mxu1 %vm8994_vm12, %v8993_v49 }
 0x56d   : > { %8406 = vmatprep.subr.bf16.mxu1 %v8995_v12 }
 0x570   : > { %8408 = vmatpush3.bf16.msra.mxu1 %v10801_v36 }
 0x571   : > { %8409 = vmatprep.subr.bf16.mxu1 %v8995_v12 }
 0x636   : > { %v5821_v32 = vpop.f32.mrb[30].mxu1 }
 0x637   : > { %v8507_v34 = vadd.f32 %v7214_v28, %v5821_v32  ;;  %v8297_v59 = vpop.f32.mrb[31].mxu1 }
 0x639   : > { %5826 = vst [vmem:[#allocation4] sm:$0xff] %v8507_v34 }
 0x63e   : > { %v5902_v39 = vpop.f32.mrb[32].mxu1 }
 0x63f   : > { %v8308_v6 = vpop.f32.mrb[33].mxu1 }
 0x640   : > { %v5831_v35 = vld [vmem:[#allocation4] sm:$0x1]  ;;  %v5937_v63 = vld [vmem:[#allocation4 + $0x1] sm:$0x1]  ;;  %v6040_v43 = vld [vmem:[#allocation4 + $0x2] sm:$0x1] }
 0x641   : > { %v5906_v0 = vadd.f32 %v5902_v39, %v5831_v35  ;;  %v6143_v51 = vld [vmem:[#allocation4 + $0x3] sm:$0x1] }
 0x643   : > { %8865 = vtanh.f32 %v5906_v0  ;;  %v7223_v56 = vmul.f32 -1.442695, %v5906_v0 }
 0x645   : > { %8867 = vpow2.f32 %v7223_v56 }
 0x64d   : > { %v8866_v1 = vpop.eup %8865 }
 0x64e   : > { %5916 = vrot.lane.b32.xlu0 %v8866_v1, %s8996_s20 }
 0x64f   : > { %v8868_v21 = vpop.eup %8867 }
 0x650   : > { %v5910_v8 = vadd.f32 1.0, %v8868_v21 }
 0x652   : > { %8869 = vrcp.f32 %v5910_v8 }
 0x65c   : > { %v8870_v47 = vpop.eup %8869 }
 0x65d   : > { %v5914_v33 = vmul.f32 0.0, %v8870_v47 }
 0x6c0   : > { %v5917_v11 = vpop.permute.xlu0 %5916 }
 0x6c1   : > { %v5919_v25 = vmul.f32 %v8870_v47, %v5917_v11 }
 0x6c3   : > { %5921 = vrot.lane.b32.xlu0 %v5919_v25, %s10980_s26 }
 0x735   : > { %v5922_v58 = vpop.permute.xlu0 %5921 }
 0x736   : > { %v5924_v30 = vadd.f32 %v5922_v58, %v5914_v33  ;;  %v6246_v58 = vld [vmem:[#allocation4 + $0x4] sm:$0x1] }
 0x738   : > { %8871 = vtanh.f32 %v5924_v30 }
 0x742   : > { %v8872_v52 = vpop.eup %8871 }
 0x743   : > { %5927 = vrot.lane.b32.xlu1 %v8872_v52, %s8996_s20 }
 0x7b5   : > { %v5928_v54 = vpop.permute.xlu1 %5927 }
 0x7b6   : > { %v5930_v62 = vmul.f32 %v8870_v47, %v5928_v54 }
 0x7b8   : > { %5932 = vrot.lane.b32.xlu1 %v5930_v62, %s10980_s26 }
 0x82a   : > { %v5933_v17 = vpop.permute.xlu1 %5932 }
 0x82b   : > { %5936 = vst.msk [vmem:[#allocation5] sm:$0x1] %vm5935_vm5, %v5933_v17  ;;  %8318 = vmatmul.mubr.msk.f32.vlgmr.msra.gmra.mrb[34].mxu1 %vm5832_vm6, %v5933_v17 }
 0x82c   : > { %8411 = vmatpush3.bf16.msra.mxu1 %v10791_v16  ;;  %8328 = vmatprep.mubr.msk.f32.mxu1 %vm8994_vm12, %v8993_v49 }
 0x82d   : > { %8412 = vmatprep.subr.bf16.mxu1 %v8995_v12 }
 0x830   : > { %8414 = vmatpush3.bf16.msra.mxu1 %v10801_v36 }
 0x831   : > { %8415 = vmatprep.subr.bf16.mxu1 %v8995_v12 }
 0x8fe   : > { %v6006_v22 = vpop.f32.mrb[34].mxu1 }
 0x8ff   : > { %v6010_v29 = vadd.f32 %v6006_v22, %v5937_v63  ;;  %v8319_v37 = vpop.f32.mrb[35].mxu1 }
 0x901   : > { %8873 = vtanh.f32 %v6010_v29  ;;  %v7225_v19 = vmul.f32 -1.442695, %v6010_v29 }
 0x903   : > { %8875 = vpow2.f32 %v7225_v19 }
 0x90b   : > { %v8874_v50 = vpop.eup %8873 }
 0x90c   : > { %6020 = vrot.lane.b32.xlu0 %v8874_v50, %s8996_s20 }
 0x90d   : > { %v8876_v4 = vpop.eup %8875 }
 0x90e   : > { %v6014_v14 = vadd.f32 1.0, %v8876_v4 }
 0x910   : > { %8877 = vrcp.f32 %v6014_v14 }
 0x91a   : > { %v8878_v23 = vpop.eup %8877 }
 0x91b   : > { %v6018_v24 = vmul.f32 %v8878_v23, %v5924_v30 }
 0x97e   : > { %v6021_v41 = vpop.permute.xlu0 %6020 }
 0x97f   : > { %v6023_v57 = vmul.f32 %v8878_v23, %v6021_v41 }
 0x981   : > { %6025 = vrot.lane.b32.xlu1 %v6023_v57, %s10980_s26 }
 0x9f3   : > { %v6026_v13 = vpop.permute.xlu1 %6025 }
 0x9f4   : > { %v6028_v2 = vadd.f32 %v6026_v13, %v6018_v24  ;;  %v6349_v13 = vld [vmem:[#allocation4 + $0x5] sm:$0x1] }
 0x9f6   : > { %8879 = vtanh.f32 %v6028_v2 }
 0xa00   : > { %v8880_v5 = vpop.eup %8879 }
 0xa01   : > { %6031 = vrot.lane.b32.xlu0 %v8880_v5, %s8996_s20 }
 0xa73   : > { %v6032_v48 = vpop.permute.xlu0 %6031 }
 0xa74   : > { %v6034_v27 = vmul.f32 %v8878_v23, %v6032_v48 }
 0xa76   : > { %6036 = vrot.lane.b32.xlu1 %v6034_v27, %s10980_s26 }
 0xae8   : > { %v6037_v7 = vpop.permute.xlu1 %6036 }
 0xae9   : > { %6039 = vst.msk [vmem:[#allocation5 + $0x1] sm:$0x1] %vm5935_vm5, %v6037_v7  ;;  %8329 = vmatmul.mubr.msk.f32.vlgmr.msra.gmra.mrb[36].mxu1 %vm5832_vm6, %v6037_v7 }
 0xaea   : > { %8417 = vmatpush3.bf16.msra.mxu1 %v10791_v16  ;;  %8339 = vmatprep.mubr.msk.f32.mxu1 %vm8994_vm12, %v8993_v49 }
 0xaeb   : > { %8418 = vmatprep.subr.bf16.mxu1 %v8995_v12 }
 0xaee   : > { %8420 = vmatpush3.bf16.msra.mxu1 %v10801_v36 }
 0xaef   : > { %8421 = vmatprep.subr.bf16.mxu1 %v8995_v12 }
 0xbbc   : > { %v6109_v15 = vpop.f32.mrb[36].mxu1 }
 0xbbd   : > { %v6113_v61 = vadd.f32 %v6109_v15, %v6040_v43  ;;  %v8330_v40 = vpop.f32.mrb[37].mxu1 }
 0xbbf   : > { %8881 = vtanh.f32 %v6113_v61  ;;  %v7227_v44 = vmul.f32 -1.442695, %v6113_v61 }
 0xbc1   : > { %8883 = vpow2.f32 %v7227_v44 }
 0xbc9   : > { %v8882_v60 = vpop.eup %8881 }
 0xbca   : > { %6123 = vrot.lane.b32.xlu0 %v8882_v60, %s8996_s20 }
 0xbcb   : > { %v8884_v38 = vpop.eup %8883 }
 0xbcc   : > { %v6117_v46 = vadd.f32 1.0, %v8884_v38 }
 0xbce   : > { %8885 = vrcp.f32 %v6117_v46 }
 0xbd8   : > { %v8886_v3 = vpop.eup %8885 }
 0xbd9   : > { %v6121_v55 = vmul.f32 %v8886_v3, %v6028_v2 }
 0xc3c   : > { %v6124_v10 = vpop.permute.xlu0 %6123 }
 0xc3d   : > { %v6126_v42 = vmul.f32 %v8886_v3, %v6124_v10 }
 0xc3f   : > { %6128 = vrot.lane.b32.xlu1 %v6126_v42, %s10980_s26 }
 0xcb1   : > { %v6129_v9 = vpop.permute.xlu1 %6128 }
 0xcb2   : > { %v6131_v20 = vadd.f32 %v6129_v9, %v6121_v55  ;;  %v6452_v9 = vld [vmem:[#allocation4 + $0x6] sm:$0x1] }
 0xcb4   : > { %8887 = vtanh.f32 %v6131_v20 }
 0xcbe   : > { %v8888_v31 = vpop.eup %8887 }
 0xcbf   : > { %6134 = vrot.lane.b32.xlu0 %v8888_v31, %s8996_s20 }
 0xd31   : > { %v6135_v53 = vpop.permute.xlu0 %6134 }
 0xd32   : > { %v6137_v18 = vmul.f32 %v8886_v3, %v6135_v53 }
 0xd34   : > { %6139 = vrot.lane.b32.xlu1 %v6137_v18, %s10980_s26 }
 0xda6   : > { %v6140_v45 = vpop.permute.xlu1 %6139 }
 0xda7   : > { %6142 = vst.msk [vmem:[#allocation5 + $0x2] sm:$0x1] %vm5935_vm5, %v6140_v45  ;;  %8340 = vmatmul.mubr.msk.f32.vlgmr.msra.gmra.mrb[38].mxu1 %vm5832_vm6, %v6140_v45 }
 0xda8   : > { %8423 = vmatpush3.bf16.msra.mxu1 %v10791_v16  ;;  %8350 = vmatprep.mubr.msk.f32.mxu1 %vm8994_vm12, %v8993_v49 }
 0xda9   : > { %8424 = vmatprep.subr.bf16.mxu1 %v8995_v12 }
 0xdac   : > { %8426 = vmatpush3.bf16.msra.mxu1 %v10801_v36 }
 0xdad   : > { %8427 = vmatprep.subr.bf16.mxu1 %v8995_v12 }
 0xe7a   : > { %v6212_v26 = vpop.f32.mrb[38].mxu1 }
 0xe7b   : > { %v6216_v28 = vadd.f32 %v6212_v26, %v6143_v51  ;;  %v8341_v32 = vpop.f32.mrb[39].mxu1 }
 0xe7d   : > { %8889 = vtanh.f32 %v6216_v28  ;;  %v7229_v59 = vmul.f32 -1.442695, %v6216_v28 }
 0xe7f   : > { %8891 = vpow2.f32 %v7229_v59 }
 0xe87   : > { %v8890_v34 = vpop.eup %8889 }
 0xe88   : > { %6226 = vrot.lane.b32.xlu0 %v8890_v34, %s8996_s20 }
 0xe89   : > { %v8892_v39 = vpop.eup %8891 }
 0xe8a   : > { %v6220_v6 = vadd.f32 1.0, %v8892_v39 }
 0xe8c   : > { %8893 = vrcp.f32 %v6220_v6 }
 0xe96   : > { %v8894_v35 = vpop.eup %8893 }
 0xe97   : > { %v6224_v56 = vmul.f32 %v8894_v35, %v6131_v20 }
 0xefa   : > { %v6227_v0 = vpop.permute.xlu0 %6226 }
 0xefb   : > { %v6229_v1 = vmul.f32 %v8894_v35, %v6227_v0 }
 0xefd   : > { %6231 = vrot.lane.b32.xlu1 %v6229_v1, %s10980_s26  ;;  %v6555_v1 = vld [vmem:[#allocation4 + $0x7] sm:$0x1] }
 0xf6f   : > { %v6232_v21 = vpop.permute.xlu1 %6231 }
 0xf70   : > { %v6234_v8 = vadd.f32 %v6232_v21, %v6224_v56 }
 0xf72   : > { %8895 = vtanh.f32 %v6234_v8 }
 0xf7c   : > { %v8896_v47 = vpop.eup %8895 }
 0xf7d   : > { %6237 = vrot.lane.b32.xlu0 %v8896_v47, %s8996_s20 }
 0xfef   : > { %v6238_v11 = vpop.permute.xlu0 %6237 }
 0xff0   : > { %v6240_v25 = vmul.f32 %v8894_v35, %v6238_v11 }
 0xff2   : > { %6242 = vrot.lane.b32.xlu1 %v6240_v25, %s10980_s26 }
0x1064   : > { %v6243_v33 = vpop.permute.xlu1 %6242 }
0x1065   : > { %6245 = vst.msk [vmem:[#allocation5 + $0x3] sm:$0x1] %vm5935_vm5, %v6243_v33  ;;  %8351 = vmatmul.mubr.msk.f32.vlgmr.msra.gmra.mrb[40].mxu1 %vm5832_vm6, %v6243_v33 }
0x1066   : > { %8429 = vmatpush3.bf16.msra.mxu1 %v10791_v16  ;;  %8361 = vmatprep.mubr.msk.f32.mxu1 %vm8994_vm12, %v8993_v49 }
0x1067   : > { %8430 = vmatprep.subr.bf16.mxu1 %v8995_v12 }
0x106a   : > { %8432 = vmatpush3.bf16.msra.mxu1 %v10801_v36 }
0x106b   : > { %8433 = vmatprep.subr.bf16.mxu1 %v8995_v12 }
0x1138   : > { %v6315_v30 = vpop.f32.mrb[40].mxu1 }
0x1139   : > { %v6319_v52 = vadd.f32 %v6315_v30, %v6246_v58  ;;  %v8352_v54 = vpop.f32.mrb[41].mxu1 }
0x113b   : > { %8897 = vtanh.f32 %v6319_v52  ;;  %v7231_v17 = vmul.f32 -1.442695, %v6319_v52 }
0x113d   : > { %8899 = vpow2.f32 %v7231_v17 }
0x1145   : > { %v8898_v62 = vpop.eup %8897 }
0x1146   : > { %6329 = vrot.lane.b32.xlu0 %v8898_v62, %s8996_s20 }
0x1147   : > { %v8900_v63 = vpop.eup %8899 }
0x1148   : > { %v6323_v22 = vadd.f32 1.0, %v8900_v63  ;;  %v6659_v63 = vld [vmem:[%s10977_s10] sm:$0xff] }
0x114a   : > { %8901 = vrcp.f32 %v6323_v22  ;;  %v6660_v22 = vld [vmem:[%s10977_s10 + $0x8] sm:$0xff] }
0x1154   : > { %v8902_v29 = vpop.eup %8901 }
0x1155   : > { %v6327_v19 = vmul.f32 %v8902_v29, %v6234_v8 }
0x11b8   : > { %v6330_v37 = vpop.permute.xlu0 %6329 }
0x11b9   : > { %v6332_v50 = vmul.f32 %v8902_v29, %v6330_v37  ;;  %v8446_v37 = vpack.c.bf16 %v6660_v22, %v6659_v63 }
0x11bb   : > { %6334 = vrot.lane.b32.xlu1 %v6332_v50, %s10980_s26  ;;  %v6662_v50 = vld [vmem:[%s10977_s10 + $0x18] sm:$0xff] }
0x122d   : > { %v6335_v4 = vpop.permute.xlu1 %6334 }
0x122e   : > { %v6337_v14 = vadd.f32 %v6335_v4, %v6327_v19 }
0x1230   : > { %8903 = vtanh.f32 %v6337_v14 }
0x123a   : > { %v8904_v23 = vpop.eup %8903 }
0x123b   : > { %6340 = vrot.lane.b32.xlu0 %v8904_v23, %s8996_s20 }
0x12ad   : > { %v6341_v41 = vpop.permute.xlu0 %6340 }
0x12ae   : > { %v6343_v57 = vmul.f32 %v8902_v29, %v6341_v41  ;;  %v6661_v29 = vld [vmem:[%s10977_s10 + $0x10] sm:$0xff] }
0x12af   : > { %v8449_v19 = vpack.c.bf16 %v6662_v50, %v6661_v29 }
0x12b0   : > { %6345 = vrot.lane.b32.xlu1 %v6343_v57, %s10980_s26  ;;  %v7238_v57 = vld [vmem:[%s10978_s11] ss:$0 sm:$0xff] }
0x1322   : > { %v6346_v24 = vpop.permute.xlu1 %6345 }
0x1323   : > { %6348 = vst.msk [vmem:[#allocation5 + $0x4] sm:$0x1] %vm5935_vm5, %v6346_v24  ;;  %8362 = vmatmul.mubr.msk.f32.vlgmr.msra.gmra.mrb[42].mxu1 %vm5832_vm6, %v6346_v24 }
0x1324   : > { %8435 = vmatpush3.bf16.msra.mxu1 %v10791_v16  ;;  %8372 = vmatprep.mubr.msk.f32.mxu1 %vm8994_vm12, %v8993_v49 }
0x1325   : > { %8436 = vmatprep.subr.bf16.mxu1 %v8995_v12 }
0x1328   : > { %8438 = vmatpush3.bf16.msra.mxu1 %v10801_v36 }
0x1329   : > { %8439 = vmatprep.subr.bf16.mxu1 %v8995_v12 }
0x13f6   : > { %v6418_v2 = vpop.f32.mrb[42].mxu1 }
0x13f7   : > { %v6422_v5 = vadd.f32 %v6418_v2, %v6349_v13  ;;  %v8363_v48 = vpop.f32.mrb[43].mxu1 }
0x13f9   : > { %8905 = vtanh.f32 %v6422_v5  ;;  %v7233_v7 = vmul.f32 -1.442695, %v6422_v5 }
0x13fb   : > { %8907 = vpow2.f32 %v7233_v7 }
0x1403   : > { %v8906_v27 = vpop.eup %8905 }
0x1404   : > { %6432 = vrot.lane.b32.xlu0 %v8906_v27, %s8996_s20 }
0x1405   : > { %v8908_v43 = vpop.eup %8907 }
0x1406   : > { %v6426_v15 = vadd.f32 1.0, %v8908_v43 }
0x1408   : > { %8909 = vrcp.f32 %v6426_v15 }
0x1412   : > { %v8910_v61 = vpop.eup %8909 }
0x1413   : > { %v6430_v44 = vmul.f32 %v8910_v61, %v6337_v14 }
0x1476   : > { %v6433_v40 = vpop.permute.xlu0 %6432 }
0x1477   : > { %v6435_v60 = vmul.f32 %v8910_v61, %v6433_v40 }
0x1479   : > { %6437 = vrot.lane.b32.xlu1 %v6435_v60, %s10980_s26 }
0x14eb   : > { %v6438_v38 = vpop.permute.xlu1 %6437 }
0x14ec   : > { %v6440_v46 = vadd.f32 %v6438_v38, %v6430_v44 }
0x14ee   : > { %8911 = vtanh.f32 %v6440_v46 }
0x14f8   : > { %v8912_v3 = vpop.eup %8911 }
0x14f9   : > { %6443 = vrot.lane.b32.xlu0 %v8912_v3, %s8996_s20 }
0x156b   : > { %v6444_v10 = vpop.permute.xlu0 %6443 }
0x156c   : > { %v6446_v42 = vmul.f32 %v8910_v61, %v6444_v10 }
0x156e   : > { %6448 = vrot.lane.b32.xlu1 %v6446_v42, %s10980_s26 }
0x15e0   : > { %v6449_v55 = vpop.permute.xlu1 %6448 }
0x15e1   : > { %6451 = vst.msk [vmem:[#allocation5 + $0x5] sm:$0x1] %vm5935_vm5, %v6449_v55  ;;  %8373 = vmatmul.mubr.msk.f32.vlgmr.msra.gmra.mrb[44].mxu1 %vm5832_vm6, %v6449_v55 }
0x15e2   : > { %8441 = vmatpush3.bf16.msra.mxu1 %v10791_v16  ;;  %8383 = vmatprep.mubr.msk.f32.mxu1 %vm8994_vm12, %v8993_v49 }
0x15e3   : > { %8442 = vmatprep.subr.bf16.mxu1 %v8995_v12 }
0x15e6   : > { %8444 = vmatpush3.bf16.msra.mxu1 %v10801_v36 }
0x15e7   : > { %8445 = vmatprep.subr.bf16.mxu1 %v8995_v12 }
0x16b4   : > { %v6521_v20 = vpop.f32.mrb[44].mxu1 }
0x16b5   : > { %v6525_v31 = vadd.f32 %v6521_v20, %v6452_v9  ;;  %v8374_v53 = vpop.f32.mrb[45].mxu1 }
0x16b7   : > { %8913 = vtanh.f32 %v6525_v31  ;;  %v7235_v45 = vmul.f32 -1.442695, %v6525_v31 }
0x16b9   : > { %8915 = vpow2.f32 %v7235_v45 }
0x16c1   : > { %v8914_v18 = vpop.eup %8913 }
0x16c2   : > { %6535 = vrot.lane.b32.xlu0 %v8914_v18, %s8996_s20 }
0x16c3   : > { %v8916_v16 = vpop.eup %8915 }
0x16c4   : > { %v6529_v51 = vadd.f32 1.0, %v8916_v16 }
0x16c6   : > { %8917 = vrcp.f32 %v6529_v51 }
0x16d0   : > { %v8918_v26 = vpop.eup %8917 }
0x16d1   : > { %v6533_v36 = vmul.f32 %v8918_v26, %v6440_v46 }
0x1734   : > { %v6536_v28 = vpop.permute.xlu0 %6535 }
0x1735   : > { %v6538_v32 = vmul.f32 %v8918_v26, %v6536_v28 }
0x1737   : > { %6540 = vrot.lane.b32.xlu1 %v6538_v32, %s10980_s26 }
0x17a9   : > { %v6541_v34 = vpop.permute.xlu1 %6540 }
0x17aa   : > { %v6543_v59 = vadd.f32 %v6541_v34, %v6533_v36 }
0x17ac   : > { %8919 = vtanh.f32 %v6543_v59 }
0x17b6   : > { %v8920_v39 = vpop.eup %8919 }
0x17b7   : > { %6546 = vrot.lane.b32.xlu0 %v8920_v39, %s8996_s20 }
0x1829   : > { %v6547_v6 = vpop.permute.xlu0 %6546 }
0x182a   : > { %v6549_v35 = vmul.f32 %v8918_v26, %v6547_v6 }
0x182c   : > { %6551 = vrot.lane.b32.xlu1 %v6549_v35, %s10980_s26 }
0x189e   : > { %v6552_v0 = vpop.permute.xlu1 %6551 }
0x189f   : > { %6554 = vst.msk [vmem:[#allocation5 + $0x6] sm:$0x1] %vm5935_vm5, %v6552_v0  ;;  %8384 = vmatmul.mubr.msk.f32.vlgmr.msra.gmra.mrb[46].mxu1 %vm5832_vm6, %v6552_v0 }
0x18a0   : > { %8394 = vmatprep.mubr.msk.f32.mxu1 %vm8994_vm12, %v8993_v49  ;;  %8447 = vmatpush3.bf16.msra.mxu1 %v8446_v37 }
0x18a1   : > { %8448 = vmatprep.subr.bf16.mxu1 %v8995_v12 }
0x18a4   : > { %8450 = vmatpush3.bf16.msra.mxu1 %v8449_v19 }
0x1972   : > { %v6624_v56 = vpop.f32.mrb[46].mxu1 }
0x1973   : > { %v6628_v21 = vadd.f32 %v6624_v56, %v6555_v1  ;;  %v8385_v8 = vpop.f32.mrb[47].mxu1 }
0x1975   : > { %8921 = vtanh.f32 %v6628_v21  ;;  %v7237_v11 = vmul.f32 -1.442695, %v6628_v21 }
0x1977   : > { %8923 = vpow2.f32 %v7237_v11 }
0x197f   : > { %v8922_v47 = vpop.eup %8921 }
0x1980   : > { %6638 = vrot.lane.b32.xlu0 %v8922_v47, %s8996_s20 }
0x1981   : > { %v8924_v25 = vpop.eup %8923 }
0x1982   : > { %v6632_v33 = vadd.f32 1.0, %v8924_v25 }
0x1984   : > { %8925 = vrcp.f32 %v6632_v33 }
0x198e   : > { %v8926_v58 = vpop.eup %8925 }
0x198f   : > { %v6636_v54 = vmul.f32 %v8926_v58, %v6543_v59 }
0x19f2   : > { %v6639_v30 = vpop.permute.xlu0 %6638 }
0x19f3   : > { %v6641_v52 = vmul.f32 %v8926_v58, %v6639_v30 }
0x19f5   : > { %6643 = vrot.lane.b32.xlu1 %v6641_v52, %s10980_s26  ;;  %s6822_s26 = sshll.u32 %s404_s28, 3 }
0x19f6   : > { %s406_s17 = scalar_lea.vmem [#allocation6], %s6822_s26  ;;  %s8933_s26 = sshll.u32 %s8998_s25, 4  ;;  %s8934_s26 = int_to_ptr.vmem [resolvable:$false] %s8933_s26 }
0x19f7   : > { %s6759_s18 = sshll.u32 %s406_s17, 4  ;;  %s8935_s1 = scalar_lea.vmem %s8934_s26, 256  ;;  %s10927_s18 = int_to_ptr.vmem [resolvable:$true] %s6759_s18 }
0x19f8   : > { %s8929_s15 = scalar_lea.vmem %s10927_s18, 128  ;;  %p8936_p0 = scmp.lt.s32.totalorder %s10927_s18, %s8934_s26 }
0x19f9   : > { %p8930_p11 = scmp.ne.s32.totalorder %s10927_s18, %s8929_s15  ;;  %p8937_p1 = scmp.lt.s32.totalorder %s8935_s1, %s8929_s15 }
0x19fb   : > { %p8931_p12 = pnand %p8930_p11, %p9102_p5  ;;  %p8938_p2 = por %p8937_p1, %p8936_p0 }
0x19fd   : > { %p8932_p13 = pneg %p8931_p12 }
0x19ff   : > { %p8939_p3 = pnand %p8938_p2, %p8932_p13 }
0x1a67   : > { %v6644_v49 = vpop.permute.xlu1 %6643 }
0x1a68   : > { %v6646_v62 = vadd.f32 %v6644_v49, %v6636_v54 }
0x1a6a   : > { %8927 = vtanh.f32 %v6646_v62 }
0x1a74   : > { %v8928_v17 = vpop.eup %8927 }
0x1a75   : > { %6649 = vrot.lane.b32.xlu0 %v8928_v17, %s8996_s20  ;;  %s10987_s20 = smov 32  }
0x1ae7   : > { %v6650_v4 = vpop.permute.xlu0 %6649 }
0x1ae8   : > { %v6652_v14 = vmul.f32 %v8926_v58, %v6650_v4 }
0x1aea   : > { %6654 = vrot.lane.b32.xlu1 %v6652_v14, %s10987_s20 }
0x1b5c   : > { %v6655_v23 = vpop.permute.xlu1 %6654 }
0x1b5d   : > { %6657 = vst.msk [vmem:[#allocation5 + $0x7] sm:$0x1] %vm5935_vm5, %v6655_v23 }
0x1b64   : > { %v6658_v41 = vld [vmem:[#allocation5] sm:$0xff] }
0x1b65   : > { %8395 = vmatmul.mubr.msk.f32.vlgmr.msra.gmra.mrb[48].mxu1 %vm5832_vm6, %v6658_v41 }
0x1c38   : > { %v6739_v12 = vpop.f32.mrb[48].mxu1 }
0x1c39   : > { %v6740_v24 = vadd.f32 %v7238_v57, %v6739_v12  ;;  %v8396_v13 = vpop.f32.mrb[49].mxu1 }
0x1c3b   : > { %6744 = vst.msk [vmem:[%s406_s17] sm:$0xff] %vm6743_vm7, %v6740_v24 }
0x1c3c   : > { %8942 = shalt.err (!%p8939_p3)
}
0x1c3d   : > { %s8943_s28 = scalar_lea.hbm %s10925_s0, 128  ;;  %s8947_s19 = scalar_lea.hbm %s10979_s12, 256 }
0x1c3e   : > { %p8944_p4 = scmp.ne.s32.totalorder %s10925_s0, %s8943_s28  ;;  %p8948_p9 = scmp.lt.u32.totalorder %s10925_s0, %s10979_s12 }
0x1c3f   : > { %p8949_p10 = scmp.lt.u32.totalorder %s8947_s19, %s8943_s28  ;;  %p8951_p12 = scmp.lt.u32.totalorder %s8943_s28, %s10925_s0 }
0x1c40   : > { %p8945_p7 = pnand %p8944_p4, %p9102_p5 }
0x1c41   : > { %p8950_p11 = por %p8949_p10, %p8948_p9 }
0x1c42   : > { %p8946_p8 = pneg %p8945_p7 }
0x1c43   : > { %p8952_p13 = por %p8951_p12, %p8950_p11 }
0x1c45   : > { %p8953_p0 = pnand %p8952_p13, %p8946_p8 }
0x1c47   : > { %8956 = shalt.err (!%p8953_p0)
}
0x1c48   : > { %8821 = dma.vmem_to_hbm [thread:$0]  (%p9102_p5), %s10927_s18, 128, %s10925_s0, %s6746_s29  }
0x1c49 PF: > { %p8827_p1 = scmp.ge.s32.totalorder %s8991_s24, 2  ;;  %s6771_s1 = sand.u32 1, %s8979_s21  }
0x1c4a   : > { %s6772_s15 = scalar_lea.sflag [#allocation7], %s6771_s1 }
0x1c4b   : > { %p8824_p2 = pnand %p8827_p1, %p9106_p6 }
0x1c4d   : > { %8974 = dma.done.wait (!%p8824_p2), %s6772_s15, 128  }
0x1c4e   : > { %8976 = vsyncadd (!%p8824_p2), %s6772_s15, 4294967168  ;;  %p22_p3 = scmp.ge.s32.totalorder %s9089_s27, 4   ;;  %s10988_s21 = smov %s8983_s22 }
0x1c4f   : > { %s10989_s22 = smov %s8987_s23  ;;  %s10990_s23 = smov %s9100_s30 }
0x1c50   : > { %s10991_s24 = smov %s9089_s27  ;;  %24 = sbr.rel (!%p22_p3) target bundleno = 6 (0x6), region = 105 }
0x1c57   :  { %6777 = vsyncpa [#allocation7], 1 }
0x1c58   :  { %6779 = vsyncpa [#allocation7 + $0x1], 1 }

</bundles_post_ra>
